<compile_context>
chip_gen: v7x
topology: tpu7x:2x2x1
jax: 0.10.0
libtpu: 0.0.40
codegen_flags: <defaults>
</compile_context>

<pallas_src>
import jax
import jax.numpy as jnp
from jax.experimental import pallas as pl
from jax.experimental.pallas import tpu as pltpu


def _upconv_kernel(x_ref, halo_ref, w_ref, shift_ref, o_ref, xcol_ref):
    """One (batch, row-tile, out-channel-tile) grid step.

    x_ref:     (1, th, W+2, Cp_in)    bf16  main rows of the padded input tile
    halo_ref:  (1, 2,  W+2, Cp_in)    bf16  2-row bottom halo
    w_ref:     (4, 2, 2*Cp_in, tn)    bf16  folded (BN-scaled) weights,
                                            K-concat over the two width taps
    shift_ref: (1, tn)                f32   folded conv-bias + BN shift
    o_ref:     (1, 4, th, W, tn)      bf16  parity-separated output tile
    xcol_ref:  (2, th+2, W, 2*Cp_in)  bf16  scratch: width-pair im2col
    """
    th = x_ref.shape[1]
    Cp_in = x_ref.shape[3]
    W = o_ref.shape[3]
    tn = o_ref.shape[4]

    # Build the im2col scratch once per (batch, row-tile); it is reused across
    # the innermost ("arbitrary") output-channel grid axis.  Channel offsets
    # are multiples of Cp_in (lane-aligned); only the width shift is
    # sublane-unaligned.
    @pl.when(pl.program_id(2) == 0)
    def _():
        for q in range(2):          # output column parity
            for j in range(2):      # width tap of the folded 2x2 conv
                c0 = j * Cp_in
                xcol_ref[q, 0:th, :, c0:c0 + Cp_in] = \
                    x_ref[0, :, q + j:q + j + W, :]
                xcol_ref[q, th:th + 2, :, c0:c0 + Cp_in] = \
                    halo_ref[0, :, q + j:q + j + W, :]

    shift = shift_ref[...]          # (1, tn) f32

    # Each output parity (p, q) is a 2x2 conv on the ORIGINAL image; the two
    # width taps are K-concatenated, so 2 MXU matmuls per parity (8 total),
    # f32 accumulation, BN scale already folded into the weights.
    for p in range(2):
        for q in range(2):
            acc = jnp.dot(
                xcol_ref[q, p:p + th, :, :].reshape(th * W, 2 * Cp_in),
                w_ref[2 * p + q, 0],
                preferred_element_type=jnp.float32)
            acc = acc + jnp.dot(
                xcol_ref[q, p + 1:p + 1 + th, :, :].reshape(th * W, 2 * Cp_in),
                w_ref[2 * p + q, 1],
                preferred_element_type=jnp.float32)
            y = jnp.maximum(acc + shift, 0.0)        # bias + BN shift + ReLU
            o_ref[0, 2 * p + q, :, :, :] = \
                y.reshape(th, W, tn).astype(o_ref.dtype)


def _round_up(x, m):
    return ((x + m - 1) // m) * m


def _vmem_capacity_bytes():
    try:
        return int(pltpu.get_tpu_info().vmem_capacity_bytes)
    except Exception:
        return 64 * 1024 * 1024        # conservative (v7x-sized) fallback


def _vmem_estimate(th, W, Cp_in, tn):
    bf16 = 2
    x_blk = th * (W + 2) * Cp_in * bf16
    halo = 2 * (W + 2) * Cp_in * bf16
    w_blk = 4 * 2 * (2 * Cp_in) * tn * bf16
    shift = tn * 4
    out_blk = 4 * th * W * tn * bf16
    xcol = 2 * (th + 2) * W * (2 * Cp_in) * bf16
    # double-buffered inputs/outputs + single scratch
    return 2 * (x_blk + halo + w_blk + shift + out_blk) + xcol


def _pick_tiles(H, W, Cp_in, Cp_out, vmem_cap):
    # Output-channel tile (divides Cp_out, which is a multiple of 128).
    if Cp_out <= 512:
        tn = Cp_out
    elif Cp_out % 512 == 0:
        tn = 512
    elif Cp_out % 256 == 0:
        tn = 256
    else:
        tn = 128
    # Row tile: ~1.5k matmul rows on 128 MiB parts, ~512 on v7x (64 MiB).
    rows_target = 1536 if vmem_cap >= (100 << 20) else 512
    th = -(-rows_target // max(W, 1))
    th += th % 2                       # even -> halo block index stays integral
    th = max(th, 2)
    if th >= H:
        th = H + (H % 2)
    budget = int(vmem_cap * 0.6)
    while th > 2 and _vmem_estimate(th, W, Cp_in, tn) > budget:
        th = th // 2
        th += th % 2
    return th, tn


def up_conv_pallas(x_nchw, w_oihw, bias, gamma, beta, run_mean, run_var,
                   eps=1e-5, out_dtype=jnp.bfloat16):
    """Forward pass of up_conv. (N, C_in, H, W) -> (N, C_out, 2H, 2W)."""
    N, C_in, H, W = x_nchw.shape
    C_out = w_oihw.shape[0]
    Cp_in = _round_up(C_in, 128)       # lane-dense MXU K (per width tap)
    Cp_out = _round_up(C_out, 128)     # lane-dense output stores

    vmem_cap = _vmem_capacity_bytes()
    th, tn = _pick_tiles(H, W, Cp_in, Cp_out, vmem_cap)
    n_h = -(-H // th)
    n_co = Cp_out // tn
    H_t = n_h * th

    # NCHW -> NHWC, 1-pixel zero ring (+ tail rows so H tiles evenly), channel
    # pad to 128 lanes, cast to bf16.  Original resolution only — the x2
    # nearest upsample never hits HBM.
    x_nhwc = jnp.transpose(x_nchw, (0, 2, 3, 1))
    x_pad = jnp.pad(x_nhwc, ((0, 0), (1, 1 + (H_t - H)), (1, 1),
                             (0, Cp_in - C_in))).astype(jnp.bfloat16)

    # Fold the x2 nearest upsample into the conv weights: for output parity p
    # the 3 row taps collapse onto 2 original rows with tap-sums A[p, i, kh];
    # same matrix for columns.
    w_hwio = jnp.transpose(w_oihw, (2, 3, 1, 0)).astype(jnp.float32)  # (3,3,Ci,Co)
    A = jnp.array([[[1., 0., 0.], [0., 1., 1.]],
                   [[1., 1., 0.], [0., 0., 1.]]], dtype=jnp.float32)  # (p, i, kh)
    w_eff = jnp.einsum('pim,qjn,mncd->pqijcd', A, A, w_hwio)  # (2,2,2,2,Ci,Co)

    # Fold BatchNorm (inference, running stats): scale into the weights,
    # conv-bias + BN shift into a single per-channel shift.
    inv_std = 1.0 / jnp.sqrt(run_var + eps)
    scale_c = gamma * inv_std                                   # (C_out,)
    w_eff = w_eff * scale_c                                     # broadcast on Co
    shift = (bias - run_mean) * scale_c + beta                  # (C_out,)

    # Pad channels, then pack K = (width-tap j, Cp_in) for the K-concat matmul:
    # w2[2p+q, i, j*Cp_in + ci, co].
    w_eff = jnp.pad(w_eff, ((0, 0), (0, 0), (0, 0), (0, 0),
                            (0, Cp_in - C_in), (0, Cp_out - C_out)))
    w2 = w_eff.reshape(4, 2, 2 * Cp_in, Cp_out).astype(jnp.bfloat16)

    shift = jnp.pad(shift, (0, Cp_out - C_out)).reshape(1, Cp_out)
    shift = shift.astype(jnp.float32)

    out = pl.pallas_call(
        _upconv_kernel,
        out_shape=jax.ShapeDtypeStruct((N, 4, H_t, W, Cp_out), jnp.bfloat16),
        grid_spec=pltpu.PrefetchScalarGridSpec(
            num_scalar_prefetch=0,
            grid=(N, n_h, n_co),
            in_specs=[
                # main th rows of the padded input tile (constant across co)
                pl.BlockSpec((1, th, W + 2, Cp_in),
                             lambda n, t, co: (n, t, 0, 0)),
                # 2-row bottom halo (th even -> integral block index)
                pl.BlockSpec((1, 2, W + 2, Cp_in),
                             lambda n, t, co: (n, (t + 1) * (th // 2), 0, 0)),
                # folded weights, blocked on the output-channel axis
                pl.BlockSpec((4, 2, 2 * Cp_in, tn),
                             lambda n, t, co: (0, 0, 0, co)),
                pl.BlockSpec((1, tn), lambda n, t, co: (0, co)),
            ],
            out_specs=pl.BlockSpec((1, 4, th, W, tn),
                                   lambda n, t, co: (n, 0, t, 0, co)),
            scratch_shapes=[pltpu.VMEM((2, th + 2, W, 2 * Cp_in),
                                       jnp.bfloat16)],
        ),
        compiler_params=pltpu.CompilerParams(
            dimension_semantics=("parallel", "parallel", "arbitrary"),
            vmem_limit_bytes=int(vmem_cap * 3 // 4)),
    )(x_pad, x_pad, w2, shift)

    # Parity-separated (N, 2p+q, a, b, c) -> NCHW (N, c, 2a+p, 2b+q).
    # One bf16 slice+transpose pass (fused by XLA); an NHWC consumer could
    # skip it entirely (see TODO at top).
    out = out[:, :, :H, :, :C_out]
    out = out.reshape(N, 2, 2, H, W, C_out)
    out = jnp.transpose(out, (0, 5, 3, 1, 4, 2))       # (N, C, H, 2, W, 2)
    out = out.reshape(N, C_out, 2 * H, 2 * W)
    return out.astype(out_dtype)


def up_conv_reference(x_nchw, w_oihw, bias, gamma, beta, run_mean, run_var,
                      eps=1e-5):
    """Pure-JAX f32 reference (same semantics) for correctness checking."""
    xu = jnp.repeat(jnp.repeat(x_nchw, 2, axis=2), 2, axis=3)
    y = jax.lax.conv_general_dilated(
        xu, w_oihw, window_strides=(1, 1), padding=((1, 1), (1, 1)),
        dimension_numbers=("NCHW", "OIHW", "NCHW"))
    y = y + bias[None, :, None, None]
    y = (y - run_mean[None, :, None, None]) / jnp.sqrt(
        run_var[None, :, None, None] + eps)
    y = y * gamma[None, :, None, None] + beta[None, :, None, None]
    return jnp.maximum(y, 0.0)


if __name__ == "__main__":
    key = jax.random.PRNGKey(0)
    k_x, k_w, k_b, k_g, k_be, k_m, k_v = jax.random.split(key, 7)

    N, C_in, C_out, H, W = 2, 4, 8, 16, 16

    x = jax.random.normal(k_x, (N, C_in, H, W), dtype=jnp.float32)
    w = jax.random.normal(k_w, (C_out, C_in, 3, 3), dtype=jnp.float32) * 0.1
    bias = jax.random.normal(k_b, (C_out,), dtype=jnp.float32) * 0.1
    gamma = 1.0 + 0.1 * jax.random.normal(k_g, (C_out,), dtype=jnp.float32)
    beta = 0.1 * jax.random.normal(k_be, (C_out,), dtype=jnp.float32)
    run_mean = 0.1 * jax.random.normal(k_m, (C_out,), dtype=jnp.float32)
    run_var = jnp.abs(jax.random.normal(k_v, (C_out,), dtype=jnp.float32)) + 0.5

    up_conv_jit = jax.jit(up_conv_pallas)
    out = up_conv_jit(x, w, bias, gamma, beta, run_mean, run_var)
    out = jax.block_until_ready(out)

    ref = up_conv_reference(x, w, bias, gamma, beta, run_mean, run_var)
    ref = jax.block_until_ready(ref)

    assert out.shape == (N, C_out, 2 * H, 2 * W), out.shape
    # bf16 matmul operands AND bf16 output (f32 accumulation) -> loosened tol.
    out_f32 = out.astype(jnp.float32)
    max_err = float(jnp.max(jnp.abs(out_f32 - ref)))
    assert jnp.allclose(out_f32, ref, atol=5e-2, rtol=5e-2), max_err

    print("KERNEL_OK")
</pallas_src>

<mosaic_0001>
module attributes {stable_mosaic.version = 11 : i64} {
  func.func @_upconv_kernel(%arg0: i32, %arg1: i32, %arg2: i32, %arg3: memref<1x16x18x128xbf16, #tpu.memory_space<vmem>>, %arg4: memref<1x2x18x128xbf16, #tpu.memory_space<vmem>>, %arg5: memref<4x2x256x128xbf16, #tpu.memory_space<vmem>>, %arg6: memref<1x128xf32, #tpu.memory_space<vmem>>, %arg7: memref<1x4x16x16x128xbf16, #tpu.memory_space<vmem>>, %arg8: memref<2x18x16x256xbf16, #tpu.memory_space<vmem>>) attributes {dimension_semantics = [#tpu.dimension_semantics<parallel>, #tpu.dimension_semantics<parallel>, #tpu.dimension_semantics<arbitrary>], iteration_bounds = array<i64: 2, 1, 1>, scalar_prefetch = 0 : i64, scratch_operands = 1 : i64, tpu.core_type = #tpu.core_type<tc>, window_params = [{transform_indices = @transform_0, window_bounds = array<i64: 1, 16, 18, 128>}, {transform_indices = @transform_1, window_bounds = array<i64: 1, 2, 18, 128>}, {transform_indices = @transform_2, window_bounds = array<i64: 4, 2, 256, 128>}, {transform_indices = @transform_3, window_bounds = array<i64: 1, 128>}, {transform_indices = @transform_4, window_bounds = array<i64: 1, 4, 16, 16, 128>}]} {
    %c0_i32 = arith.constant 0 : i32
    %0 = arith.cmpi eq, %arg2, %c0_i32 : i32
    %1 = arith.extui %0 : i1 to i32
    %c0_i32_0 = arith.constant 0 : i32
    %2 = arith.cmpi ne, %1, %c0_i32_0 : i32
    scf.if %2 {
      %c0_94 = arith.constant 0 : index
      %c0_95 = arith.constant 0 : index
      %c0_96 = arith.constant 0 : index
      %c0_97 = arith.constant 0 : index
      %92 = vector.load %arg3[%c0_94, %c0_95, %c0_96, %c0_97] : memref<1x16x18x128xbf16, #tpu.memory_space<vmem>>, vector<1x16x16x128xbf16>
      %93 = vector.shape_cast %92 : vector<1x16x16x128xbf16> to vector<16x16x128xbf16>
      %c0_98 = arith.constant 0 : index
      %c0_99 = arith.constant 0 : index
      %c0_100 = arith.constant 0 : index
      %c0_101 = arith.constant 0 : index
      %94 = vector.load %arg8[%c0_98, %c0_99, %c0_100, %c0_101] : memref<2x18x16x256xbf16, #tpu.memory_space<vmem>>, vector<1x16x16x128xbf16>
      %95 = vector.shape_cast %94 : vector<1x16x16x128xbf16> to vector<16x16x128xbf16>
      %96 = vector.shape_cast %93 : vector<16x16x128xbf16> to vector<1x16x16x128xbf16>
      tpu.vector_store %arg8[%c0_98, %c0_99, %c0_100, %c0_101], %96 {strides = array<i32>} : memref<2x18x16x256xbf16, #tpu.memory_space<vmem>>, vector<1x16x16x128xbf16>,
      %c0_102 = arith.constant 0 : index
      %c0_103 = arith.constant 0 : index
      %c0_104 = arith.constant 0 : index
      %c0_105 = arith.constant 0 : index
      %97 = vector.load %arg4[%c0_102, %c0_103, %c0_104, %c0_105] : memref<1x2x18x128xbf16, #tpu.memory_space<vmem>>, vector<1x2x16x128xbf16>
      %98 = vector.shape_cast %97 : vector<1x2x16x128xbf16> to vector<2x16x128xbf16>
      %c0_106 = arith.constant 0 : index
      %c16 = arith.constant 16 : index
      %c0_107 = arith.constant 0 : index
      %c0_108 = arith.constant 0 : index
      %99 = vector.load %arg8[%c0_106, %c16, %c0_107, %c0_108] : memref<2x18x16x256xbf16, #tpu.memory_space<vmem>>, vector<1x2x16x128xbf16>
      %100 = vector.shape_cast %99 : vector<1x2x16x128xbf16> to vector<2x16x128xbf16>
      %101 = vector.shape_cast %98 : vector<2x16x128xbf16> to vector<1x2x16x128xbf16>
      tpu.vector_store %arg8[%c0_106, %c16, %c0_107, %c0_108], %101 {strides = array<i32>} : memref<2x18x16x256xbf16, #tpu.memory_space<vmem>>, vector<1x2x16x128xbf16>,
      %c0_109 = arith.constant 0 : index
      %c0_110 = arith.constant 0 : index
      %c1_111 = arith.constant 1 : index
      %c0_112 = arith.constant 0 : index
      %102 = vector.load %arg3[%c0_109, %c0_110, %c1_111, %c0_112] : memref<1x16x18x128xbf16, #tpu.memory_space<vmem>>, vector<1x16x16x128xbf16>
      %103 = vector.shape_cast %102 : vector<1x16x16x128xbf16> to vector<16x16x128xbf16>
      %c0_113 = arith.constant 0 : index
      %c0_114 = arith.constant 0 : index
      %c0_115 = arith.constant 0 : index
      %c128 = arith.constant 128 : index
      %104 = vector.load %arg8[%c0_113, %c0_114, %c0_115, %c128] : memref<2x18x16x256xbf16, #tpu.memory_space<vmem>>, vector<1x16x16x128xbf16>
      %105 = vector.shape_cast %104 : vector<1x16x16x128xbf16> to vector<16x16x128xbf16>
      %106 = vector.shape_cast %103 : vector<16x16x128xbf16> to vector<1x16x16x128xbf16>
      tpu.vector_store %arg8[%c0_113, %c0_114, %c0_115, %c128], %106 {strides = array<i32>} : memref<2x18x16x256xbf16, #tpu.memory_space<vmem>>, vector<1x16x16x128xbf16>,
      %c0_116 = arith.constant 0 : index
      %c0_117 = arith.constant 0 : index
      %c1_118 = arith.constant 1 : index
      %c0_119 = arith.constant 0 : index
      %107 = vector.load %arg4[%c0_116, %c0_117, %c1_118, %c0_119] : memref<1x2x18x128xbf16, #tpu.memory_space<vmem>>, vector<1x2x16x128xbf16>
      %108 = vector.shape_cast %107 : vector<1x2x16x128xbf16> to vector<2x16x128xbf16>
      %c0_120 = arith.constant 0 : index
      %c16_121 = arith.constant 16 : index
      %c0_122 = arith.constant 0 : index
      %c128_123 = arith.constant 128 : index
      %109 = vector.load %arg8[%c0_120, %c16_121, %c0_122, %c128_123] : memref<2x18x16x256xbf16, #tpu.memory_space<vmem>>, vector<1x2x16x128xbf16>
      %110 = vector.shape_cast %109 : vector<1x2x16x128xbf16> to vector<2x16x128xbf16>
      %111 = vector.shape_cast %108 : vector<2x16x128xbf16> to vector<1x2x16x128xbf16>
      tpu.vector_store %arg8[%c0_120, %c16_121, %c0_122, %c128_123], %111 {strides = array<i32>} : memref<2x18x16x256xbf16, #tpu.memory_space<vmem>>, vector<1x2x16x128xbf16>,
      %c0_124 = arith.constant 0 : index
      %c0_125 = arith.constant 0 : index
      %c1_126 = arith.constant 1 : index
      %c0_127 = arith.constant 0 : index
      %112 = vector.load %arg3[%c0_124, %c0_125, %c1_126, %c0_127] : memref<1x16x18x128xbf16, #tpu.memory_space<vmem>>, vector<1x16x16x128xbf16>
      %113 = vector.shape_cast %112 : vector<1x16x16x128xbf16> to vector<16x16x128xbf16>
      %c1_128 = arith.constant 1 : index
      %c0_129 = arith.constant 0 : index
      %c0_130 = arith.constant 0 : index
      %c0_131 = arith.constant 0 : index
      %114 = vector.load %arg8[%c1_128, %c0_129, %c0_130, %c0_131] : memref<2x18x16x256xbf16, #tpu.memory_space<vmem>>, vector<1x16x16x128xbf16>
      %115 = vector.shape_cast %114 : vector<1x16x16x128xbf16> to vector<16x16x128xbf16>
      %116 = vector.shape_cast %113 : vector<16x16x128xbf16> to vector<1x16x16x128xbf16>
      tpu.vector_store %arg8[%c1_128, %c0_129, %c0_130, %c0_131], %116 {strides = array<i32>} : memref<2x18x16x256xbf16, #tpu.memory_space<vmem>>, vector<1x16x16x128xbf16>,
      %c0_132 = arith.constant 0 : index
      %c0_133 = arith.constant 0 : index
      %c1_134 = arith.constant 1 : index
      %c0_135 = arith.constant 0 : index
      %117 = vector.load %arg4[%c0_132, %c0_133, %c1_134, %c0_135] : memref<1x2x18x128xbf16, #tpu.memory_space<vmem>>, vector<1x2x16x128xbf16>
      %118 = vector.shape_cast %117 : vector<1x2x16x128xbf16> to vector<2x16x128xbf16>
      %c1_136 = arith.constant 1 : index
      %c16_137 = arith.constant 16 : index
      %c0_138 = arith.constant 0 : index
      %c0_139 = arith.constant 0 : index
      %119 = vector.load %arg8[%c1_136, %c16_137, %c0_138, %c0_139] : memref<2x18x16x256xbf16, #tpu.memory_space<vmem>>, vector<1x2x16x128xbf16>
      %120 = vector.shape_cast %119 : vector<1x2x16x128xbf16> to vector<2x16x128xbf16>
      %121 = vector.shape_cast %118 : vector<2x16x128xbf16> to vector<1x2x16x128xbf16>
      tpu.vector_store %arg8[%c1_136, %c16_137, %c0_138, %c0_139], %121 {strides = array<i32>} : memref<2x18x16x256xbf16, #tpu.memory_space<vmem>>, vector<1x2x16x128xbf16>,
      %c0_140 = arith.constant 0 : index
      %c0_141 = arith.constant 0 : index
      %c2_142 = arith.constant 2 : index
      %c0_143 = arith.constant 0 : index
      %122 = vector.load %arg3[%c0_140, %c0_141, %c2_142, %c0_143] : memref<1x16x18x128xbf16, #tpu.memory_space<vmem>>, vector<1x16x16x128xbf16>
      %123 = vector.shape_cast %122 : vector<1x16x16x128xbf16> to vector<16x16x128xbf16>
      %c1_144 = arith.constant 1 : index
      %c0_145 = arith.constant 0 : index
      %c0_146 = arith.constant 0 : index
      %c128_147 = arith.constant 128 : index
      %124 = vector.load %arg8[%c1_144, %c0_145, %c0_146, %c128_147] : memref<2x18x16x256xbf16, #tpu.memory_space<vmem>>, vector<1x16x16x128xbf16>
      %125 = vector.shape_cast %124 : vector<1x16x16x128xbf16> to vector<16x16x128xbf16>
      %126 = vector.shape_cast %123 : vector<16x16x128xbf16> to vector<1x16x16x128xbf16>
      tpu.vector_store %arg8[%c1_144, %c0_145, %c0_146, %c128_147], %126 {strides = array<i32>} : memref<2x18x16x256xbf16, #tpu.memory_space<vmem>>, vector<1x16x16x128xbf16>,
      %c0_148 = arith.constant 0 : index
      %c0_149 = arith.constant 0 : index
      %c2_150 = arith.constant 2 : index
      %c0_151 = arith.constant 0 : index
      %127 = vector.load %arg4[%c0_148, %c0_149, %c2_150, %c0_151] : memref<1x2x18x128xbf16, #tpu.memory_space<vmem>>, vector<1x2x16x128xbf16>
      %128 = vector.shape_cast %127 : vector<1x2x16x128xbf16> to vector<2x16x128xbf16>
      %c1_152 = arith.constant 1 : index
      %c16_153 = arith.constant 16 : index
      %c0_154 = arith.constant 0 : index
      %c128_155 = arith.constant 128 : index
      %129 = vector.load %arg8[%c1_152, %c16_153, %c0_154, %c128_155] : memref<2x18x16x256xbf16, #tpu.memory_space<vmem>>, vector<1x2x16x128xbf16>
      %130 = vector.shape_cast %129 : vector<1x2x16x128xbf16> to vector<2x16x128xbf16>
      %131 = vector.shape_cast %128 : vector<2x16x128xbf16> to vector<1x2x16x128xbf16>
      tpu.vector_store %arg8[%c1_152, %c16_153, %c0_154, %c128_155], %131 {strides = array<i32>} : memref<2x18x16x256xbf16, #tpu.memory_space<vmem>>, vector<1x2x16x128xbf16>,
    } else {
    }
    %c0 = arith.constant 0 : index
    %c0_1 = arith.constant 0 : index
    %3 = vector.load %arg6[%c0, %c0_1] : memref<1x128xf32, #tpu.memory_space<vmem>>, vector<1x128xf32>
    %c0_2 = arith.constant 0 : index
    %c0_3 = arith.constant 0 : index
    %c0_4 = arith.constant 0 : index
    %c0_5 = arith.constant 0 : index
    %4 = vector.load %arg8[%c0_2, %c0_3, %c0_4, %c0_5] : memref<2x18x16x256xbf16, #tpu.memory_space<vmem>>, vector<1x16x16x256xbf16>
    %5 = vector.shape_cast %4 : vector<1x16x16x256xbf16> to vector<16x16x256xbf16>
    %6 = vector.shape_cast %5 : vector<16x16x256xbf16> to vector<256x256xbf16>
    %c0_6 = arith.constant 0 : index
    %c0_7 = arith.constant 0 : index
    %c0_8 = arith.constant 0 : index
    %c0_9 = arith.constant 0 : index
    %7 = vector.load %arg5[%c0_6, %c0_7, %c0_8, %c0_9] : memref<4x2x256x128xbf16, #tpu.memory_space<vmem>>, vector<1x1x256x128xbf16>
    %8 = vector.shape_cast %7 : vector<1x1x256x128xbf16> to vector<256x128xbf16>
    %cst = arith.constant dense<0.000000e+00> : vector<256x128xf32>
    %9 = tpu.matmul %6, %8, %cst {dimension_numbers = #tpu.dot_dimension_numbers<[1], [0], [0], [1], [0, 0, 1, 1], [], []>} : vector<256x256xbf16>, vector<256x128xbf16>, vector<256x128xf32> -> vector<256x128xf32>
    %c0_10 = arith.constant 0 : index
    %c1 = arith.constant 1 : index
    %c0_11 = arith.constant 0 : index
    %c0_12 = arith.constant 0 : index
    %10 = vector.load %arg8[%c0_10, %c1, %c0_11, %c0_12] : memref<2x18x16x256xbf16, #tpu.memory_space<vmem>>, vector<1x16x16x256xbf16>
    %11 = vector.shape_cast %10 : vector<1x16x16x256xbf16> to vector<16x16x256xbf16>
    %12 = vector.shape_cast %11 : vector<16x16x256xbf16> to vector<256x256xbf16>
    %c0_13 = arith.constant 0 : index
    %c1_14 = arith.constant 1 : index
    %c0_15 = arith.constant 0 : index
    %c0_16 = arith.constant 0 : index
    %13 = vector.load %arg5[%c0_13, %c1_14, %c0_15, %c0_16] : memref<4x2x256x128xbf16, #tpu.memory_space<vmem>>, vector<1x1x256x128xbf16>
    %14 = vector.shape_cast %13 : vector<1x1x256x128xbf16> to vector<256x128xbf16>
    %cst_17 = arith.constant dense<0.000000e+00> : vector<256x128xf32>
    %15 = tpu.matmul %12, %14, %cst_17 {dimension_numbers = #tpu.dot_dimension_numbers<[1], [0], [0], [1], [0, 0, 1, 1], [], []>} : vector<256x256xbf16>, vector<256x128xbf16>, vector<256x128xf32> -> vector<256x128xf32>
    %16 = arith.addf %9, %15 : vector<256x128xf32>
    %17 = vector.broadcast %3 : vector<1x128xf32> to vector<256x128xf32>
    %18 = arith.addf %16, %17 : vector<256x128xf32>
    %cst_18 = arith.constant 0.000000e+00 : f32
    %19 = vector.broadcast %cst_18 : f32 to vector<256x128xf32>
    %20 = arith.maximumf %18, %19 : vector<256x128xf32>
    %21 = vector.shape_cast %20 : vector<256x128xf32> to vector<16x16x128xf32>
    %22 = arith.truncf %21 : vector<16x16x128xf32> to vector<16x16x128xbf16>
    %c0_19 = arith.constant 0 : index
    %c0_20 = arith.constant 0 : index
    %c0_21 = arith.constant 0 : index
    %c0_22 = arith.constant 0 : index
    %c0_23 = arith.constant 0 : index
    %23 = vector.load %arg7[%c0_19, %c0_20, %c0_21, %c0_22, %c0_23] : memref<1x4x16x16x128xbf16, #tpu.memory_space<vmem>>, vector<1x1x16x16x128xbf16>
    %24 = vector.shape_cast %23 : vector<1x1x16x16x128xbf16> to vector<16x16x128xbf16>
    %25 = vector.shape_cast %22 : vector<16x16x128xbf16> to vector<1x1x16x16x128xbf16>
    tpu.vector_store %arg7[%c0_19, %c0_20, %c0_21, %c0_22, %c0_23], %25 {strides = array<i32>} : memref<1x4x16x16x128xbf16, #tpu.memory_space<vmem>>, vector<1x1x16x16x128xbf16>,
    %c1_24 = arith.constant 1 : index
    %c0_25 = arith.constant 0 : index
    %c0_26 = arith.constant 0 : index
    %c0_27 = arith.constant 0 : index
    %26 = vector.load %arg8[%c1_24, %c0_25, %c0_26, %c0_27] : memref<2x18x16x256xbf16, #tpu.memory_space<vmem>>, vector<1x16x16x256xbf16>
    %27 = vector.shape_cast %26 : vector<1x16x16x256xbf16> to vector<16x16x256xbf16>
    %28 = vector.shape_cast %27 : vector<16x16x256xbf16> to vector<256x256xbf16>
    %c1_28 = arith.constant 1 : index
    %c0_29 = arith.constant 0 : index
    %c0_30 = arith.constant 0 : index
    %c0_31 = arith.constant 0 : index
    %29 = vector.load %arg5[%c1_28, %c0_29, %c0_30, %c0_31] : memref<4x2x256x128xbf16, #tpu.memory_space<vmem>>, vector<1x1x256x128xbf16>
    %30 = vector.shape_cast %29 : vector<1x1x256x128xbf16> to vector<256x128xbf16>
    %cst_32 = arith.constant dense<0.000000e+00> : vector<256x128xf32>
    %31 = tpu.matmul %28, %30, %cst_32 {dimension_numbers = #tpu.dot_dimension_numbers<[1], [0], [0], [1], [0, 0, 1, 1], [], []>} : vector<256x256xbf16>, vector<256x128xbf16>, vector<256x128xf32> -> vector<256x128xf32>
    %c1_33 = arith.constant 1 : index
    %c1_34 = arith.constant 1 : index
    %c0_35 = arith.constant 0 : index
    %c0_36 = arith.constant 0 : index
    %32 = vector.load %arg8[%c1_33, %c1_34, %c0_35, %c0_36] : memref<2x18x16x256xbf16, #tpu.memory_space<vmem>>, vector<1x16x16x256xbf16>
    %33 = vector.shape_cast %32 : vector<1x16x16x256xbf16> to vector<16x16x256xbf16>
    %34 = vector.shape_cast %33 : vector<16x16x256xbf16> to vector<256x256xbf16>
    %c1_37 = arith.constant 1 : index
    %c1_38 = arith.constant 1 : index
    %c0_39 = arith.constant 0 : index
    %c0_40 = arith.constant 0 : index
    %35 = vector.load %arg5[%c1_37, %c1_38, %c0_39, %c0_40] : memref<4x2x256x128xbf16, #tpu.memory_space<vmem>>, vector<1x1x256x128xbf16>
    %36 = vector.shape_cast %35 : vector<1x1x256x128xbf16> to vector<256x128xbf16>
    %cst_41 = arith.constant dense<0.000000e+00> : vector<256x128xf32>
    %37 = tpu.matmul %34, %36, %cst_41 {dimension_numbers = #tpu.dot_dimension_numbers<[1], [0], [0], [1], [0, 0, 1, 1], [], []>} : vector<256x256xbf16>, vector<256x128xbf16>, vector<256x128xf32> -> vector<256x128xf32>
    %38 = arith.addf %31, %37 : vector<256x128xf32>
    %39 = vector.broadcast %3 : vector<1x128xf32> to vector<256x128xf32>
    %40 = arith.addf %38, %39 : vector<256x128xf32>
    %cst_42 = arith.constant 0.000000e+00 : f32
    %41 = vector.broadcast %cst_42 : f32 to vector<256x128xf32>
    %42 = arith.maximumf %40, %41 : vector<256x128xf32>
    %43 = vector.shape_cast %42 : vector<256x128xf32> to vector<16x16x128xf32>
    %44 = arith.truncf %43 : vector<16x16x128xf32> to vector<16x16x128xbf16>
    %c0_43 = arith.constant 0 : index
    %c1_44 = arith.constant 1 : index
    %c0_45 = arith.constant 0 : index
    %c0_46 = arith.constant 0 : index
    %c0_47 = arith.constant 0 : index
    %45 = vector.load %arg7[%c0_43, %c1_44, %c0_45, %c0_46, %c0_47] : memref<1x4x16x16x128xbf16, #tpu.memory_space<vmem>>, vector<1x1x16x16x128xbf16>
    %46 = vector.shape_cast %45 : vector<1x1x16x16x128xbf16> to vector<16x16x128xbf16>
    %47 = vector.shape_cast %44 : vector<16x16x128xbf16> to vector<1x1x16x16x128xbf16>
    tpu.vector_store %arg7[%c0_43, %c1_44, %c0_45, %c0_46, %c0_47], %47 {strides = array<i32>} : memref<1x4x16x16x128xbf16, #tpu.memory_space<vmem>>, vector<1x1x16x16x128xbf16>,
    %c0_48 = arith.constant 0 : index
    %c1_49 = arith.constant 1 : index
    %c0_50 = arith.constant 0 : index
    %c0_51 = arith.constant 0 : index
    %48 = vector.load %arg8[%c0_48, %c1_49, %c0_50, %c0_51] : memref<2x18x16x256xbf16, #tpu.memory_space<vmem>>, vector<1x16x16x256xbf16>
    %49 = vector.shape_cast %48 : vector<1x16x16x256xbf16> to vector<16x16x256xbf16>
    %50 = vector.shape_cast %49 : vector<16x16x256xbf16> to vector<256x256xbf16>
    %c2 = arith.constant 2 : index
    %c0_52 = arith.constant 0 : index
    %c0_53 = arith.constant 0 : index
    %c0_54 = arith.constant 0 : index
    %51 = vector.load %arg5[%c2, %c0_52, %c0_53, %c0_54] : memref<4x2x256x128xbf16, #tpu.memory_space<vmem>>, vector<1x1x256x128xbf16>
    %52 = vector.shape_cast %51 : vector<1x1x256x128xbf16> to vector<256x128xbf16>
    %cst_55 = arith.constant dense<0.000000e+00> : vector<256x128xf32>
    %53 = tpu.matmul %50, %52, %cst_55 {dimension_numbers = #tpu.dot_dimension_numbers<[1], [0], [0], [1], [0, 0, 1, 1], [], []>} : vector<256x256xbf16>, vector<256x128xbf16>, vector<256x128xf32> -> vector<256x128xf32>
    %c0_56 = arith.constant 0 : index
    %c2_57 = arith.constant 2 : index
    %c0_58 = arith.constant 0 : index
    %c0_59 = arith.constant 0 : index
    %54 = vector.load %arg8[%c0_56, %c2_57, %c0_58, %c0_59] : memref<2x18x16x256xbf16, #tpu.memory_space<vmem>>, vector<1x16x16x256xbf16>
    %55 = vector.shape_cast %54 : vector<1x16x16x256xbf16> to vector<16x16x256xbf16>
    %56 = vector.shape_cast %55 : vector<16x16x256xbf16> to vector<256x256xbf16>
    %c2_60 = arith.constant 2 : index
    %c1_61 = arith.constant 1 : index
    %c0_62 = arith.constant 0 : index
    %c0_63 = arith.constant 0 : index
    %57 = vector.load %arg5[%c2_60, %c1_61, %c0_62, %c0_63] : memref<4x2x256x128xbf16, #tpu.memory_space<vmem>>, vector<1x1x256x128xbf16>
    %58 = vector.shape_cast %57 : vector<1x1x256x128xbf16> to vector<256x128xbf16>
    %cst_64 = arith.constant dense<0.000000e+00> : vector<256x128xf32>
    %59 = tpu.matmul %56, %58, %cst_64 {dimension_numbers = #tpu.dot_dimension_numbers<[1], [0], [0], [1], [0, 0, 1, 1], [], []>} : vector<256x256xbf16>, vector<256x128xbf16>, vector<256x128xf32> -> vector<256x128xf32>
    %60 = arith.addf %53, %59 : vector<256x128xf32>
    %61 = vector.broadcast %3 : vector<1x128xf32> to vector<256x128xf32>
    %62 = arith.addf %60, %61 : vector<256x128xf32>
    %cst_65 = arith.constant 0.000000e+00 : f32
    %63 = vector.broadcast %cst_65 : f32 to vector<256x128xf32>
    %64 = arith.maximumf %62, %63 : vector<256x128xf32>
    %65 = vector.shape_cast %64 : vector<256x128xf32> to vector<16x16x128xf32>
    %66 = arith.truncf %65 : vector<16x16x128xf32> to vector<16x16x128xbf16>
    %c0_66 = arith.constant 0 : index
    %c2_67 = arith.constant 2 : index
    %c0_68 = arith.constant 0 : index
    %c0_69 = arith.constant 0 : index
    %c0_70 = arith.constant 0 : index
    %67 = vector.load %arg7[%c0_66, %c2_67, %c0_68, %c0_69, %c0_70] : memref<1x4x16x16x128xbf16, #tpu.memory_space<vmem>>, vector<1x1x16x16x128xbf16>
    %68 = vector.shape_cast %67 : vector<1x1x16x16x128xbf16> to vector<16x16x128xbf16>
    %69 = vector.shape_cast %66 : vector<16x16x128xbf16> to vector<1x1x16x16x128xbf16>
    tpu.vector_store %arg7[%c0_66, %c2_67, %c0_68, %c0_69, %c0_70], %69 {strides = array<i32>} : memref<1x4x16x16x128xbf16, #tpu.memory_space<vmem>>, vector<1x1x16x16x128xbf16>,
    %c1_71 = arith.constant 1 : index
    %c1_72 = arith.constant 1 : index
    %c0_73 = arith.constant 0 : index
    %c0_74 = arith.constant 0 : index
    %70 = vector.load %arg8[%c1_71, %c1_72, %c0_73, %c0_74] : memref<2x18x16x256xbf16, #tpu.memory_space<vmem>>, vector<1x16x16x256xbf16>
    %71 = vector.shape_cast %70 : vector<1x16x16x256xbf16> to vector<16x16x256xbf16>
    %72 = vector.shape_cast %71 : vector<16x16x256xbf16> to vector<256x256xbf16>
    %c3 = arith.constant 3 : index
    %c0_75 = arith.constant 0 : index
    %c0_76 = arith.constant 0 : index
    %c0_77 = arith.constant 0 : index
    %73 = vector.load %arg5[%c3, %c0_75, %c0_76, %c0_77] : memref<4x2x256x128xbf16, #tpu.memory_space<vmem>>, vector<1x1x256x128xbf16>
    %74 = vector.shape_cast %73 : vector<1x1x256x128xbf16> to vector<256x128xbf16>
    %cst_78 = arith.constant dense<0.000000e+00> : vector<256x128xf32>
    %75 = tpu.matmul %72, %74, %cst_78 {dimension_numbers = #tpu.dot_dimension_numbers<[1], [0], [0], [1], [0, 0, 1, 1], [], []>} : vector<256x256xbf16>, vector<256x128xbf16>, vector<256x128xf32> -> vector<256x128xf32>
    %c1_79 = arith.constant 1 : index
    %c2_80 = arith.constant 2 : index
    %c0_81 = arith.constant 0 : index
    %c0_82 = arith.constant 0 : index
    %76 = vector.load %arg8[%c1_79, %c2_80, %c0_81, %c0_82] : memref<2x18x16x256xbf16, #tpu.memory_space<vmem>>, vector<1x16x16x256xbf16>
    %77 = vector.shape_cast %76 : vector<1x16x16x256xbf16> to vector<16x16x256xbf16>
    %78 = vector.shape_cast %77 : vector<16x16x256xbf16> to vector<256x256xbf16>
    %c3_83 = arith.constant 3 : index
    %c1_84 = arith.constant 1 : index
    %c0_85 = arith.constant 0 : index
    %c0_86 = arith.constant 0 : index
    %79 = vector.load %arg5[%c3_83, %c1_84, %c0_85, %c0_86] : memref<4x2x256x128xbf16, #tpu.memory_space<vmem>>, vector<1x1x256x128xbf16>
    %80 = vector.shape_cast %79 : vector<1x1x256x128xbf16> to vector<256x128xbf16>
    %cst_87 = arith.constant dense<0.000000e+00> : vector<256x128xf32>
    %81 = tpu.matmul %78, %80, %cst_87 {dimension_numbers = #tpu.dot_dimension_numbers<[1], [0], [0], [1], [0, 0, 1, 1], [], []>} : vector<256x256xbf16>, vector<256x128xbf16>, vector<256x128xf32> -> vector<256x128xf32>
    %82 = arith.addf %75, %81 : vector<256x128xf32>
    %83 = vector.broadcast %3 : vector<1x128xf32> to vector<256x128xf32>
    %84 = arith.addf %82, %83 : vector<256x128xf32>
    %cst_88 = arith.constant 0.000000e+00 : f32
    %85 = vector.broadcast %cst_88 : f32 to vector<256x128xf32>
    %86 = arith.maximumf %84, %85 : vector<256x128xf32>
    %87 = vector.shape_cast %86 : vector<256x128xf32> to vector<16x16x128xf32>
    %88 = arith.truncf %87 : vector<16x16x128xf32> to vector<16x16x128xbf16>
    %c0_89 = arith.constant 0 : index
    %c3_90 = arith.constant 3 : index
    %c0_91 = arith.constant 0 : index
    %c0_92 = arith.constant 0 : index
    %c0_93 = arith.constant 0 : index
    %89 = vector.load %arg7[%c0_89, %c3_90, %c0_91, %c0_92, %c0_93] : memref<1x4x16x16x128xbf16, #tpu.memory_space<vmem>>, vector<1x1x16x16x128xbf16>
    %90 = vector.shape_cast %89 : vector<1x1x16x16x128xbf16> to vector<16x16x128xbf16>
    %91 = vector.shape_cast %88 : vector<16x16x128xbf16> to vector<1x1x16x16x128xbf16>
    tpu.vector_store %arg7[%c0_89, %c3_90, %c0_91, %c0_92, %c0_93], %91 {strides = array<i32>} : memref<1x4x16x16x128xbf16, #tpu.memory_space<vmem>>, vector<1x1x16x16x128xbf16>,
    return
  }
  func.func @transform_0(%arg0: i32, %arg1: i32, %arg2: i32) -> (i32, i32, i32, i32) {
    %c0_i32 = arith.constant 0 : i32
    %c0_i32_0 = arith.constant 0 : i32
    %c0_i32_1 = arith.constant 0 : i32
    return %arg0, %arg1, %c0_i32, %c0_i32_0 : i32, i32, i32, i32
  }
  func.func @transform_1(%arg0: i32, %arg1: i32, %arg2: i32) -> (i32, i32, i32, i32) {
    %c1_i32 = arith.constant 1 : i32
    %0 = arith.addi %arg1, %c1_i32 : i32
    %c8_i32 = arith.constant 8 : i32
    %1 = arith.muli %0, %c8_i32 : i32
    %c0_i32 = arith.constant 0 : i32
    %c0_i32_0 = arith.constant 0 : i32
    %c0_i32_1 = arith.constant 0 : i32
    return %arg0, %1, %c0_i32, %c0_i32_0 : i32, i32, i32, i32
  }
  func.func @transform_2(%arg0: i32, %arg1: i32, %arg2: i32) -> (i32, i32, i32, i32) {
    %c0_i32 = arith.constant 0 : i32
    %c0_i32_0 = arith.constant 0 : i32
    %c0_i32_1 = arith.constant 0 : i32
    %c0_i32_2 = arith.constant 0 : i32
    return %c0_i32, %c0_i32_0, %c0_i32_1, %arg2 : i32, i32, i32, i32
  }
  func.func @transform_3(%arg0: i32, %arg1: i32, %arg2: i32) -> (i32, i32) {
    %c0_i32 = arith.constant 0 : i32
    %c0_i32_0 = arith.constant 0 : i32
    return %c0_i32, %arg2 : i32, i32
  }
  func.func @transform_4(%arg0: i32, %arg1: i32, %arg2: i32) -> (i32, i32, i32, i32, i32) {
    %c0_i32 = arith.constant 0 : i32
    %c0_i32_0 = arith.constant 0 : i32
    %c0_i32_1 = arith.constant 0 : i32
    return %arg0, %c0_i32, %arg1, %c0_i32_0, %arg2 : i32, i32, i32, i32, i32
  }
}

</mosaic_0001>

<bundles_post_ra>
// kernel: up_conv_pallas.1
= control target key start
LH: loop header
LB: loop body
LE: loop exit
PB: predicated region body
PF: predicated region fallthrough
CT: control target
= control target key end

     0   :  { %s7843_s15 = smov 0   ;;  %s7845_s16 = smov 0   ;;  %s8962_s0 = inlined_call_operand.vmem [shape: bf16[2,18,18,128], index: 0, kind: input, shape index: {}, may-alias: {0,1}]   ;;  %s8963_s1 = inlined_call_operand.vmem [shape: bf16[2,18,18,128], index: 1, kind: input, shape index: {}, may-alias: {0,1}]   ;;  %s8964_s2 = inlined_call_operand.vmem [shape: bf16[4,2,256,128], index: 2, kind: input, shape index: {}]   ;;  %s8965_s3 = inlined_call_operand.vmem [shape: f32[1,128], index: 3, kind: input, shape index: {}]   ;;  %s8966_s4 = inlined_call_operand.vmem [shape: bf16[2,4,16,16,128], index: 4, kind: output, shape index: {}]  }
   0x1   :  { %s7847_s17 = smov 0  }
   0x2 LB: > { %s33_s18 = sadd.s32 1, %s7812_s16  ;;  %p5375_p0 = scmp.ge.s32.totalorder %s7816_s17, 1  ;;  %s7816_s17 = sphi %s7847_s17, %s14_s17   ;;  %s7812_s16 = sphi %s7845_s16, %s9012_s16   ;;  %s7808_s15 = sphi %s7843_s15, %s9011_s15  }
   0x3   : > { %p35_p1 = scmp.ge.s32.totalorder %s33_s18, 2  ;;  %p246_p2 = scmp.lt.s32.totalorder %s7816_s17, 3 }
   0x5   : > { %s9014_s18 = smov (%p35_p1, %s33_s18), 0  ;;  %p247_p3 = pnand %p5375_p0, %p246_p2 }
   0x7   : > { %250 = sbr.rel (%p247_p3) target bundleno = 779 (0x30b), region = 36 }
   0xe   : > { %v7522_v0 = vld [vmem:[%s8964_s2 + $0xc0] sm:$0xff]   ;;  %p315_p4 = scmp.lt.s32.totalorder %s7808_s15, 1  ;;  %v7526_v4 = vld [vmem:[%s8964_s2 + $0xc8] sm:$0xff]   ;;  %v7530_v8 = vld [vmem:[%s8964_s2 + $0xd0] sm:$0xff]   ;;  %vm710_vm0 = vsmask.f32 7424 }
   0xf   : > { %v7523_v1 = vld [vmem:[%s8964_s2 + $0x40] sm:$0xff]   ;;  %6599 = vmatprep.subr.bf16.mxu0 %v7522_v0  ;;  %v7527_v5 = vld [vmem:[%s8964_s2 + $0x48] sm:$0xff]   ;;  %v7531_v9 = vld [vmem:[%s8964_s2 + $0x50] sm:$0xff]   ;;  %vm1613_vm1 = vcmask 1046528  }
  0x10   : > { %v7524_v2 = vld [vmem:[%s8964_s2 + $0x80] sm:$0xff]   ;;  %6711 = vmatprep.subr.bf16.mxu1 %v7523_v1  ;;  %s9016_s15 = smov (!%p315_p4, %s7808_s15), 1  ;;  %v7528_v6 = vld [vmem:[%s8964_s2 + $0x88] sm:$0xff]   ;;  %v7532_v10 = vld [vmem:[%s8964_s2 + $0x90] sm:$0xff]  }
  0x11   : > { %v7525_v3 = vld [vmem:[%s8964_s2] sm:$0xff]   ;;  %6600 = vmatpush3.bf16.msra.mxu0 %v7524_v2  ;;  %v7529_v7 = vld [vmem:[%s8964_s2 + $0x8] sm:$0xff]   ;;  %v7533_v11 = vld [vmem:[%s8964_s2 + $0x10] sm:$0xff]   ;;  %s7495_s29 = smul.u32 216, %s9016_s15  ;;  %s6087_s13 = sshll.u32 %s9016_s15, 9 }
  0x12   : > { %6712 = vmatpush3.bf16.msra.mxu1 %v7525_v3  ;;  %6601 = vmatprep.subr.bf16.mxu0 %v7526_v4  ;;  %v7534_v12 = vld [vmem:[%s8964_s2 + $0xd8] sm:$0xff]   ;;  %v7538_v16 = vld [vmem:[%s8964_s2 + $0xe0] sm:$0xff]   ;;  %v7542_v20 = vld [vmem:[%s8964_s2 + $0xe8] sm:$0xff]   ;;  %s8504_s20 = scalar_lea.vmem %s8966_s4, %s6087_s13 }
  0x13   : > { %6713 = vmatprep.subr.bf16.mxu1 %v7527_v5  ;;  %v7535_v13 = vld [vmem:[%s8964_s2 + $0x58] sm:$0xff]   ;;  %v7539_v17 = vld [vmem:[%s8964_s2 + $0x60] sm:$0xff]   ;;  %v7543_v21 = vld [vmem:[%s8964_s2 + $0x68] sm:$0xff]   ;;  %s7962_s14 = scalar_lea.vmem %s8962_s0, %s7495_s29  ;;  %s6086_s12 = sadd.s32 192, %s7495_s29 }
  0x14   : > { %v7536_v14 = vld [vmem:[%s8964_s2 + $0x98] sm:$0xff]   ;;  %v7540_v18 = vld [vmem:[%s8964_s2 + $0xa0] sm:$0xff]   ;;  %v7544_v22 = vld [vmem:[%s8964_s2 + $0xa8] sm:$0xff]   ;;  %s8156_s27 = scalar_lea.vmem %s8963_s1, %s6086_s12 }
  0x15   : > { %6602 = vmatpush3.bf16.msra.mxu0 %v7528_v6  ;;  %v7537_v15 = vld [vmem:[%s8964_s2 + $0x18] sm:$0xff]   ;;  %v7541_v19 = vld [vmem:[%s8964_s2 + $0x20] sm:$0xff]   ;;  %v7545_v23 = vld [vmem:[%s8964_s2 + $0x28] sm:$0xff]  }
  0x16   : > { %6714 = vmatpush3.bf16.msra.mxu1 %v7529_v7  ;;  %6603 = vmatprep.subr.bf16.mxu0 %v7530_v8  ;;  %v7546_v24 = vld [vmem:[%s8964_s2 + $0xf0] sm:$0xff]   ;;  %v7550_v28 = vld [vmem:[%s8964_s2 + $0xf8] sm:$0xff]   ;;  %v7556_v37 = vld [vmem:[%s7962_s14] sm:$0xff]  }
  0x17   : > { %6715 = vmatprep.subr.bf16.mxu1 %v7531_v9  ;;  %v7547_v25 = vld [vmem:[%s8964_s2 + $0x70] sm:$0xff]   ;;  %v7551_v29 = vld [vmem:[%s8964_s2 + $0x78] sm:$0xff]   ;;  %v7557_v38 = vld [vmem:[%s7962_s14 + $0x8] ss:$0 sps:$4 sm:$0x11]   ;;  %v712_v41 = vshrl.u32 %v7556_v37, 16 }
  0x18   : > { %v7548_v26 = vld [vmem:[%s8964_s2 + $0xb0] sm:$0xff]   ;;  %v7552_v30 = vld [vmem:[%s8964_s2 + $0xb8] sm:$0xff]   ;;  %v714_v42 = vshll.u32 %v7556_v37, 16  ;;  %v719_v43 = vshll.u32 %v7557_v38, 16  ;;  %v7559_v47 = vld [vmem:[%s7962_s14] sm:$0xff]  }
  0x19   : > { %6604 = vmatpush3.bf16.msra.mxu0 %v7532_v10  ;;  %v7549_v27 = vld [vmem:[%s8964_s2 + $0x30] sm:$0xff]   ;;  %v7553_v31 = vld [vmem:[%s8964_s2 + $0x38] sm:$0xff]   ;;  %v7560_v48 = vld [vmem:[%s8964_s2 + $0x1c0] sm:$0xff]  }
  0x1a   : > { %6716 = vmatpush3.bf16.msra.mxu1 %v7533_v11  ;;  %6605 = vmatprep.subr.bf16.mxu0 %v7534_v12  ;;  %v7554_v32 = vld [vmem:[%s7962_s14 + $0xc] sm:$0xff]   ;;  %v7555_v33 = vld [vmem:[%s7962_s14 + $0x14] ss:$0 sps:$4 sm:$0x11]   ;;  %v716_v46 = vrot.slane %v714_v42, 1  ;;  %v721_v49 = vrot.slane %v719_v43, 1 }
  0x1b   : > { %6717 = vmatprep.subr.bf16.mxu1 %v7535_v13  ;;  %v724_v34 = vshrl.u32 %v7554_v32, 16  ;;  %v726_v35 = vshll.u32 %v7554_v32, 16  ;;  %v731_v36 = vshll.u32 %v7555_v33, 16  ;;  %v7558_v44 = vld [vmem:[%s7962_s14 + $0xc] sm:$0xff]   ;;  %v7561_v50 = vld [vmem:[%s8964_s2 + $0x140] sm:$0xff]   ;;  %v7564_v56 = vld [vmem:[%s7962_s14 + $0x18] sm:$0xff]  }
  0x1c   : > { %v717_v52 = vor.u32 %v716_v46, %v712_v41  ;;  %v7562_v53 = vld [vmem:[%s8964_s2 + $0x180] sm:$0xff]   ;;  %v736_v58 = vshrl.u32 %v7564_v56, 16  ;;  %v738_v59 = vshll.u32 %v7564_v56, 16  ;;  %v7568_v63 = vld [vmem:[%s7962_s14 + $0x2c] ss:$0 sps:$4 sm:$0x11]  }
  0x1d   : > { %6606 = vmatpush3.bf16.msra.mxu0 %v7536_v14  ;;  %v728_v39 = vrot.slane %v726_v35, 1  ;;  %v733_v40 = vrot.slane %v731_v36, 1  ;;  %v7563_v54 = vld [vmem:[%s8964_s2 + $0x100] sm:$0xff]   ;;  %v7566_v1 = vld [vmem:[%s7962_s14 + $0x18] sm:$0xff]   ;;  %v755_v5 = vshll.u32 %v7568_v63, 16  ;;  %v7570_v6 = vld [vmem:[%s8964_s2 + $0x1c8] sm:$0xff]  }
  0x1e   : > { %6718 = vmatpush3.bf16.msra.mxu1 %v7537_v15  ;;  %6607 = vmatprep.subr.bf16.mxu0 %v7538_v16  ;;  %v722_v55 = vsel %vm710_vm0, %v717_v52, %v721_v49  ;;  %v7565_v57 = vld [vmem:[%s7962_s14 + $0x20] ss:$0 sps:$4 sm:$0x11]   ;;  %v7567_v61 = vld [vmem:[%s7962_s14 + $0x24] sm:$0xff]   ;;  %v740_v62 = vrot.slane %v738_v59, 1  ;;  %v7574_v15 = vld [vmem:[%s7962_s14 + $0x30] sm:$0xff]  }
  0x1f   : > { %6719 = vmatprep.subr.bf16.mxu1 %v7539_v17  ;;  %v729_v45 = vor.u32 %v728_v39, %v724_v34  ;;  %2242 = vmatprep.mubr.bf16.mxu1 %v722_v55  ;;  %v743_v60 = vshll.u32 %v7565_v57, 16  ;;  %v748_v2 = vshrl.u32 %v7567_v61, 16  ;;  %v750_v3 = vshll.u32 %v7567_v61, 16  ;;  %v7571_v8 = vld [vmem:[%s8964_s2 + $0x148] sm:$0xff]   ;;  %v7582_v32 = vld [vmem:[%s8964_s2 + $0x190] sm:$0xff]   ;;  %v7579_v49 = vld [vmem:[%s7962_s14 + $0x3c] sm:$0xff]  }
  0x20   : > { %v741_v4 = vor.u32 %v740_v62, %v736_v58  ;;  %v757_v10 = vrot.slane %v755_v5, 1  ;;  %v7572_v11 = vld [vmem:[%s8964_s2 + $0x188] sm:$0xff]   ;;  %v7575_v16 = vld [vmem:[%s7962_s14 + $0x38] ss:$0 sps:$4 sm:$0x11]   ;;  %v760_v17 = vshrl.u32 %v7574_v15, 16 }
  0x21   : > { %6608 = vmatpush3.bf16.msra.mxu0 %v7540_v18  ;;  %v7980_v51 = vsel %vm710_vm0, %v729_v45, %v733_v40  ;;  %v745_v0 = vrot.slane %v743_v60, 1  ;;  %v752_v7 = vrot.slane %v750_v3, 1  ;;  %v7573_v13 = vld [vmem:[%s8964_s2 + $0x108] sm:$0xff]   ;;  %v762_v18 = vshll.u32 %v7574_v15, 16  ;;  %v7583_v36 = vld [vmem:[%s8964_s2 + $0x110] sm:$0xff]   ;;  %v7593_v55 = vld [vmem:[%s8964_s2 + $0x118] sm:$0xff]  }
  0x22   : > { %6720 = vmatpush3.bf16.msra.mxu1 %v7541_v19  ;;  %6609 = vmatprep.subr.bf16.mxu0 %v7542_v20  ;;  %v767_v19 = vshll.u32 %v7575_v16, 16  ;;  %v7577_v20 = vld [vmem:[%s7962_s14 + $0x3c] sm:$0xff]   ;;  %v7584_v37 = vld [vmem:[%s7962_s14 + $0x48] sm:$0xff]   ;;  %v7585_v38 = vld [vmem:[%s7962_s14 + $0x50] ss:$0 sps:$4 sm:$0x11]  }
  0x23   : > { %6721 = vmatprep.subr.bf16.mxu1 %v7543_v21  ;;  %1985 = vmatprep.mubr.bf16.mxu0 %v7980_v51  ;;  %v8003_v9 = vsel %vm710_vm0, %v741_v4, %v745_v0  ;;  %v753_v12 = vor.u32 %v752_v7, %v748_v2  ;;  %v7569_v21 = vld [vmem:[%s7962_s14 + $0x24] sm:$0xff]   ;;  %v7576_v39 = vld [vmem:[%s7962_s14 + $0x30] sm:$0xff]   ;;  %v784_v40 = vshrl.u32 %v7584_v37, 16  ;;  %v786_v41 = vshll.u32 %v7584_v37, 16 }
  0x24   : > { %v791_v42 = vshll.u32 %v7585_v38, 16  ;;  %v7587_v43 = vld [vmem:[%s7962_s14 + $0x54] sm:$0xff]   ;;  %v7588_v46 = vld [vmem:[%s7962_s14 + $0x5c] ss:$0 sps:$4 sm:$0x11]   ;;  %v7594_v60 = vld [vmem:[%s7962_s14 + $0x60] sm:$0xff]  }
  0x25   : > { %6610 = vmatpush3.bf16.msra.mxu0 %v7544_v22  ;;  %v8013_v14 = vsel %vm710_vm0, %v753_v12, %v757_v10  ;;  %v7578_v22 = vld [vmem:[%s7962_s14 + $0x44] ss:$0 sps:$4 sm:$0x11]   ;;  %v788_v45 = vrot.slane %v786_v41, 1  ;;  %v798_v52 = vshll.u32 %v7587_v43, 16  ;;  %v796_v57 = vshrl.u32 %v7587_v43, 16 }
  0x26   : > { %6722 = vmatpush3.bf16.msra.mxu1 %v7545_v23  ;;  %6611 = vmatprep.subr.bf16.mxu0 %v7546_v24  ;;  %v764_v23 = vrot.slane %v762_v18, 1  ;;  %v769_v24 = vrot.slane %v767_v19, 1  ;;  %v803_v59 = vshll.u32 %v7588_v46, 16  ;;  %v7595_v61 = vld [vmem:[%s7962_s14 + $0x68] ss:$0 sps:$4 sm:$0x11]  }
  0x27   : > { %6723 = vmatprep.subr.bf16.mxu1 %v7547_v25  ;;  %v772_v25 = vshrl.u32 %v7577_v20, 16  ;;  %v800_v58 = vrot.slane %v798_v52, 1  ;;  %v7586_v62 = vld [vmem:[%s7962_s14 + $0x48] sm:$0xff]   ;;  %v7600_v2 = vld [vmem:[%s8964_s2 + $0x1e0] sm:$0xff]   ;;  %v808_v3 = vshrl.u32 %v7594_v60, 16  ;;  %v7604_v19 = vld [vmem:[%s7962_s14 + $0x78] sm:$0xff]  }
  0x28   : > { %v805_v0 = vrot.slane %v803_v59, 1  ;;  %v7597_v4 = vld [vmem:[%s7962_s14 + $0x6c] sm:$0xff]   ;;  %v7601_v5 = vld [vmem:[%s8964_s2 + $0x160] sm:$0xff]   ;;  %v7598_v12 = vld [vmem:[%s7962_s14 + $0x74] ss:$0 sps:$4 sm:$0x11]  }
  0x29   : > { %6612 = vmatpush3.bf16.msra.mxu0 %v7548_v26  ;;  %v774_v26 = vshll.u32 %v7577_v20, 16  ;;  %v801_v63 = vor.u32 %v800_v58, %v796_v57  ;;  %v7602_v7 = vld [vmem:[%s8964_s2 + $0x1a0] sm:$0xff]   ;;  %v822_v16 = vshll.u32 %v7597_v4, 16  ;;  %v820_v18 = vshrl.u32 %v7597_v4, 16  ;;  %v7621_v41 = vld [vmem:[%s8964_s2 + $0x170] sm:$0xff]   ;;  %v7606_v57 = vld [vmem:[%s7962_s14 + $0x78] sm:$0xff]  }
  0x2a   : > { %6724 = vmatpush3.bf16.msra.mxu1 %v7549_v27  ;;  %6613 = vmatprep.subr.bf16.mxu0 %v7550_v28  ;;  %v779_v27 = vshll.u32 %v7578_v22, 16  ;;  %v7580_v28 = vld [vmem:[%s8964_s2 + $0x1d0] sm:$0xff]   ;;  %v827_v20 = vshll.u32 %v7598_v12, 16  ;;  %v7607_v37 = vld [vmem:[%s7962_s14 + $0x84] sm:$0xff]  }
  0x2b   : > { %6725 = vmatprep.subr.bf16.mxu1 %v7551_v29  ;;  %v765_v29 = vor.u32 %v764_v23, %v760_v17  ;;  %v7589_v17 = vld [vmem:[%s7962_s14 + $0x54] sm:$0xff]   ;;  %v824_v23 = vrot.slane %v822_v16, 1  ;;  %v7608_v38 = vld [vmem:[%s7962_s14 + $0x8c] ss:$0 sps:$4 sm:$0x11]   ;;  %v846_v43 = vshll.u32 %v7607_v37, 16 }
  0x2c   : > { %v781_v35 = vrot.slane %v779_v27, 1  ;;  %v7613_v27 = vld [vmem:[%s8964_s2 + $0x128] sm:$0xff]   ;;  %v7623_v46 = vld [vmem:[%s8964_s2 + $0x130] sm:$0xff]  }
  0x2d   : > { %6614 = vmatpush3.bf16.msra.mxu0 %v7552_v30  ;;  %v776_v30 = vrot.slane %v774_v26, 1  ;;  %v8032_v33 = vsel %vm710_vm0, %v765_v29, %v769_v24  ;;  %v7605_v24 = vld [vmem:[%s7962_s14 + $0x80] ss:$0 sps:$4 sm:$0x11]   ;;  %v7612_v26 = vld [vmem:[%s8964_s2 + $0x1a8] sm:$0xff]   ;;  %v829_v29 = vrot.slane %v827_v20, 1 }
  0x2e   : > { %6726 = vmatpush3.bf16.msra.mxu1 %v7553_v31  ;;  %6823 = vmatprep.subr.bf16.mxu0 %v7560_v48  ;;  %v7581_v31 = vld [vmem:[%s8964_s2 + $0x150] sm:$0xff]   ;;  %v7590_v48 = vld [vmem:[%s8964_s2 + $0x1d8] sm:$0xff]   ;;  %v848_v52 = vrot.slane %v846_v43, 1  ;;  %v7624_v16 = vld [vmem:[%s7962_s14 + $0xa8] sm:$0xff]  }
  0x2f   : > { %6935 = vmatprep.subr.bf16.mxu1 %v7561_v50  ;;  %v777_v34 = vor.u32 %v776_v30, %v772_v25  ;;  %v789_v50 = vor.u32 %v788_v45, %v784_v40  ;;  %v7611_v25 = vld [vmem:[%s8964_s2 + $0x168] sm:$0xff]   ;;  %v834_v30 = vshll.u32 %v7604_v19, 16  ;;  %v7622_v45 = vld [vmem:[%s8964_s2 + $0x1b0] sm:$0xff]  }
  0x30   : > { %1986 = vmatmul.mubr.bf16.vlgmr.msra.gmra.mrb[0].mxu0 %v7558_v44  ;;  %v7635_v43 = vld [vmem:[%s8156_s27 + $0x8] ss:$0 sps:$4 sm:$0x11]  }
  0x31   : > { %6824 = vmatpush3.bf16.msra.mxu0 %v7562_v53  ;;  %2243 = vmatmul.mubr.bf16.vlgmr.msra.gmra.mrb[0].mxu1 %v7559_v47  ;;  %v793_v47 = vrot.slane %v791_v42, 1  ;;  %v7591_v53 = vld [vmem:[%s8964_s2 + $0x158] sm:$0xff]  }
  0x32   : > { %6936 = vmatpush3.bf16.msra.mxu1 %v7563_v54  ;;  %2250 = vmatprep.mubr.bf16.mxu1 %v7980_v51  ;;  %v7592_v54 = vld [vmem:[%s8964_s2 + $0x198] sm:$0xff]  }
  0x33   : > { %6825 = vmatprep.subr.bf16.mxu0 %v7570_v6  ;;  %1993 = vmatprep.mubr.bf16.mxu0 %v8003_v9  ;;  %v8063_v56 = vsel %vm710_vm0, %v789_v50, %v793_v47  ;;  %v815_v6 = vshll.u32 %v7595_v61, 16  ;;  %v7599_v47 = vld [vmem:[%s7962_s14 + $0x6c] sm:$0xff]  }
  0x34   : > { %6937 = vmatprep.subr.bf16.mxu1 %v7571_v8  ;;  %v8081_v8 = vsel %vm710_vm0, %v801_v63, %v805_v0  ;;  %v7631_v63 = vld [vmem:[%s8964_s2 + $0x178] sm:$0xff]  }
  0x35   : > { %6826 = vmatpush3.bf16.msra.mxu0 %v7572_v11  ;;  %v7603_v11 = vld [vmem:[%s8964_s2 + $0x120] sm:$0xff]   ;;  %v817_v15 = vrot.slane %v815_v6, 1 }
  0x36   : > { %6938 = vmatpush3.bf16.msra.mxu1 %v7573_v13  ;;  %6827 = vmatprep.subr.bf16.mxu0 %v7580_v28  ;;  %v825_v28 = vor.u32 %v824_v23, %v820_v18  ;;  %v7645_v18 = vld [vmem:[%s8964_s2 + $0x2c0] sm:$0xff]   ;;  %v882_v23 = vshll.u32 %v7624_v16, 16 }
  0x37   : > { %6939 = vmatprep.subr.bf16.mxu1 %v7581_v31  ;;  %v7596_v31 = vld [vmem:[%s7962_s14 + $0x60] sm:$0xff]  }
  0x38   : > { %1994 = vmatmul.mubr.bf16.gmra.mrb[4].mxu0 %v7566_v1 }
  0x39   : > { %2251 = vmatmul.mubr.bf16.gmra.mrb[4].mxu1 %v7558_v44  ;;  %2001 = vmatprep.mubr.bf16.mxu0 %v8013_v14  ;;  %v8044_v44 = vsel %vm710_vm0, %v777_v34, %v781_v35  ;;  %v8111_v34 = vsel %vm710_vm0, %v825_v28, %v829_v29  ;;  %v832_v35 = vshrl.u32 %v7604_v19, 16  ;;  %v7625_v19 = vld [vmem:[%s7962_s14 + $0xb0] ss:$0 sps:$4 sm:$0x11]   ;;  %v884_v29 = vrot.slane %v882_v23, 1 }
  0x3a   : > { %2258 = vmatprep.mubr.bf16.mxu1 %v8003_v9  ;;  %6828 = vmatpush3.bf16.msra.mxu0 %v7582_v32  ;;  %v839_v32 = vshll.u32 %v7605_v24, 16  ;;  %v7616_v24 = vld [vmem:[%s7962_s14 + $0x90] sm:$0xff]  }
  0x3b   : > { %6940 = vmatpush3.bf16.msra.mxu1 %v7583_v36  ;;  %6829 = vmatprep.subr.bf16.mxu0 %v7590_v48  ;;  %v836_v36 = vrot.slane %v834_v30, 1  ;;  %v844_v48 = vshrl.u32 %v7607_v37, 16  ;;  %v7627_v30 = vld [vmem:[%s7962_s14 + $0xb4] sm:$0xff]   ;;  %v7619_v37 = vld [vmem:[%s7962_s14 + $0x9c] sm:$0xff]  }
  0x3c   : > { %6941 = vmatprep.subr.bf16.mxu1 %v7591_v53  ;;  %v841_v40 = vrot.slane %v839_v32, 1  ;;  %v851_v53 = vshll.u32 %v7608_v38, 16 }
  0x3d   : > { %v837_v42 = vor.u32 %v836_v36, %v832_v35  ;;  %v849_v58 = vor.u32 %v848_v52, %v844_v48  ;;  %v894_v36 = vshll.u32 %v7627_v30, 16  ;;  %v7626_v48 = vld [vmem:[%s7962_s14 + $0xa8] sm:$0xff]  }
  0x3e   : > { %6830 = vmatpush3.bf16.msra.mxu0 %v7592_v54  ;;  %v7615_v54 = vld [vmem:[%s7962_s14 + $0x98] ss:$0 sps:$4 sm:$0x11]   ;;  %v853_v59 = vrot.slane %v851_v53, 1 }
  0x3f   : > { %6942 = vmatpush3.bf16.msra.mxu1 %v7593_v55  ;;  %6831 = vmatprep.subr.bf16.mxu0 %v7600_v2  ;;  %v8132_v50 = vsel %vm710_vm0, %v837_v42, %v841_v40  ;;  %v863_v0 = vshll.u32 %v7615_v54, 16  ;;  %v896_v42 = vrot.slane %v894_v36, 1  ;;  %v965_v54 = vshll.u32 %v7635_v43, 16  ;;  %v7655_v43 = vld [vmem:[%s7962_s14 + $0x24] sm:$0xff]  }
  0x40   : > { %2002 = vmatmul.mubr.bf16.gmra.mrb[8].mxu0 %v7569_v21  ;;  %6943 = vmatprep.subr.bf16.mxu1 %v7601_v5  ;;  %v8159_v4 = vsel %vm710_vm0, %v849_v58, %v853_v59  ;;  %v7618_v5 = vld [vmem:[%s7962_s14 + $0xa4] ss:$0 sps:$4 sm:$0x11]   ;;  %v7637_v59 = vld [vmem:[%s7962_s14 + $0xc] sm:$0xfe]  }
  0x41   : > { %2259 = vmatmul.mubr.bf16.gmra.mrb[8].mxu1 %v7566_v1  ;;  %2009 = vmatprep.mubr.bf16.mxu0 %v8032_v33  ;;  %v810_v1 = vshll.u32 %v7594_v60, 16  ;;  %v7630_v60 = vld [vmem:[%s8964_s2 + $0x1f8] sm:$0xff]   ;;  %v967_v58 = vrot.slane %v965_v54, 1  ;;  %v7656_v54 = vld [vmem:[%s7962_s14 + $0x2c] ss:$0 sps:$4 sm:$0x11]  }
  0x42   : > { %2266 = vmatprep.mubr.bf16.mxu1 %v8013_v14  ;;  %6832 = vmatpush3.bf16.msra.mxu0 %v7602_v7 }
  0x43   : > { %v812_v10 = vrot.slane %v810_v1, 1  ;;  %6944 = vmatpush3.bf16.msra.mxu1 %v7603_v11  ;;  %v7632_v1 = vld [vmem:[%s8964_s2 + $0x1b8] sm:$0xff]   ;;  %v7609_v11 = vld [vmem:[%s7962_s14 + $0x84] sm:$0xff]  }
  0x44   : > { %6945 = vmatprep.subr.bf16.mxu1 %v7611_v25  ;;  %v7646_v25 = vld [vmem:[%s8964_s2 + $0x240] sm:$0xff]  }
  0x45   : > { %v813_v13 = vor.u32 %v812_v10, %v808_v3  ;;  %v7633_v3 = vld [vmem:[%s8964_s2 + $0x138] sm:$0xff]   ;;  %v865_v10 = vrot.slane %v863_v0, 1  ;;  %v7642_v0 = vld [vmem:[%s7962_s14 + $0x14] ss:$0 sps:$4 sm:$0x11]  }
  0x47   : > { %v8095_v22 = vsel %vm710_vm0, %v813_v13, %v817_v15  ;;  %6946 = vmatpush3.bf16.msra.mxu1 %v7613_v27  ;;  %v875_v15 = vshll.u32 %v7618_v5, 16  ;;  %v887_v27 = vshll.u32 %v7625_v19, 16  ;;  %v1617_v5 = vrot.slane %v7637_v59, 1 }
  0x48   : > { %2010 = vmatmul.mubr.bf16.gmra.mrb[12].mxu0 %v7576_v39  ;;  %6947 = vmatprep.subr.bf16.mxu1 %v7621_v41  ;;  %v892_v41 = vshrl.u32 %v7627_v30, 16  ;;  %v7652_v30 = vld [vmem:[%s7962_s14 + $0x20] ss:$0 sps:$4 sm:$0x11]  }
  0x49   : > { %2267 = vmatmul.mubr.bf16.gmra.mrb[12].mxu1 %v7569_v21  ;;  %2017 = vmatprep.mubr.bf16.mxu0 %v8044_v44  ;;  %v7610_v21 = vld [vmem:[%s8964_s2 + $0x1e8] sm:$0xff]   ;;  %v889_v35 = vrot.slane %v887_v27, 1  ;;  %v7650_v27 = vld [vmem:[%s7962_s14 + $0x20] ss:$0 sps:$4 sm:$0x11]  }
  0x4a   : > { %2274 = vmatprep.mubr.bf16.mxu1 %v8032_v33  ;;  %6833 = vmatprep.subr.bf16.mxu0 %v7610_v21  ;;  %v877_v21 = vrot.slane %v875_v15, 1 }
  0x4b   : > { %6834 = vmatpush3.bf16.msra.mxu0 %v7612_v26  ;;  %6948 = vmatpush3.bf16.msra.mxu1 %v7623_v46  ;;  %v880_v26 = vshrl.u32 %v7624_v16, 16 }
  0x4c   : > { %6949 = vmatprep.subr.bf16.mxu1 %v7631_v63  ;;  %v7640_v63 = vld [vmem:[%s7962_s14 + $0x8] ss:$0 sps:$4 sm:$0x11]  }
  0x4d   : > { %v885_v32 = vor.u32 %v884_v29, %v880_v26 }
  0x4f   : > { %6950 = vmatpush3.bf16.msra.mxu1 %v7633_v3  ;;  %v8189_v40 = vsel %vm710_vm0, %v885_v32, %v889_v35 }
  0x50   : > { %2018 = vmatmul.mubr.bf16.gmra.mrb[16].mxu0 %v7579_v49  ;;  %7159 = vmatprep.subr.bf16.mxu1 %v7646_v25 }
  0x51   : > { %2275 = vmatmul.mubr.bf16.gmra.mrb[16].mxu1 %v7576_v39  ;;  %2025 = vmatprep.mubr.bf16.mxu0 %v8063_v56  ;;  %v7620_v39 = vld [vmem:[%s8964_s2 + $0x1f0] sm:$0xff]  }
  0x52   : > { %2282 = vmatprep.mubr.bf16.mxu1 %v8044_v44  ;;  %6835 = vmatprep.subr.bf16.mxu0 %v7620_v39  ;;  %v7634_v39 = vld [vmem:[%s8156_s27] sm:$0xff]  }
  0x53   : > { %6836 = vmatpush3.bf16.msra.mxu0 %v7622_v45  ;;  %v960_v46 = vshll.u32 %v7634_v39, 16  ;;  %v958_v52 = vshrl.u32 %v7634_v39, 16 }
  0x54   : > { %6837 = vmatprep.subr.bf16.mxu0 %v7630_v60  ;;  %v7638_v60 = vld [vmem:[%s7962_s14 + $0x14] ss:$0 sps:$4 sm:$0x11]  }
  0x55   : > { %v962_v53 = vrot.slane %v960_v46, 1  ;;  %v1193_v46 = vshll.u32 %v7652_v30, 16  ;;  %v7667_v30 = vld [vmem:[%s7962_s14 + $0x3c] sm:$0xff]  }
  0x57   : > { %6838 = vmatpush3.bf16.msra.mxu0 %v7632_v1  ;;  %v7643_v1 = vld [vmem:[%s7962_s14] sm:$0xff]   ;;  %v1195_v59 = vrot.slane %v1193_v46, 1 }
  0x58   : > { %2026 = vmatmul.mubr.bf16.gmra.mrb[20].mxu0 %v7586_v62  ;;  %7047 = vmatprep.subr.bf16.mxu0 %v7645_v18  ;;  %v1181_v18 = vshll.u32 %v7642_v0, 16  ;;  %v1162_v19 = vshrl.u32 %v7643_v1, 16  ;;  %v7668_v46 = vld [vmem:[%s7962_s14 + $0x44] ss:$0 sps:$4 sm:$0x11]  }
  0x59   : > { %2283 = vmatmul.mubr.bf16.gmra.mrb[20].mxu1 %v7579_v49  ;;  %2033 = vmatprep.mubr.bf16.mxu0 %v8081_v8  ;;  %v7614_v49 = vld [vmem:[%s7962_s14 + $0x90] sm:$0xff]  }
  0x5a   : > { %2290 = vmatprep.mubr.bf16.mxu1 %v8063_v56  ;;  %v858_v55 = vshll.u32 %v7614_v49, 16  ;;  %v856_v61 = vshrl.u32 %v7614_v49, 16  ;;  %v1183_v29 = vrot.slane %v1181_v18, 1  ;;  %v7672_v18 = vld [vmem:[%s8964_s2 + $0x210] sm:$0xff]  }
  0x5c   : > { %v860_v2 = vrot.slane %v858_v55, 1  ;;  %v7629_v55 = vld [vmem:[%s7962_s14 + $0xb4] sm:$0xff]  }
  0x5e   : > { %v861_v7 = vor.u32 %v860_v2, %v856_v61  ;;  %v7641_v61 = vld [vmem:[%s7962_s14 + $0xc] sm:$0xff]  }
  0x5f   : > { %v1176_v3 = vshll.u32 %v7641_v61, 16  ;;  %v1174_v15 = vshrl.u32 %v7641_v61, 16 }
  0x60   : > { %2034 = vmatmul.mubr.bf16.gmra.mrb[24].mxu0 %v7589_v17 }
  0x61   : > { %2291 = vmatmul.mubr.bf16.gmra.mrb[24].mxu1 %v7586_v62  ;;  %2041 = vmatprep.mubr.bf16.mxu0 %v8095_v22  ;;  %v7617_v62 = vld [vmem:[%s7962_s14 + $0x9c] sm:$0xff]   ;;  %v1178_v16 = vrot.slane %v1176_v3, 1  ;;  %v1205_v3 = vshll.u32 %v7656_v54, 16  ;;  %v1224_v54 = vshll.u32 %v7667_v30, 16 }
  0x62   : > { %2298 = vmatprep.mubr.bf16.mxu1 %v8081_v8  ;;  %v870_v6 = vshll.u32 %v7617_v62, 16  ;;  %v868_v12 = vshrl.u32 %v7617_v62, 16  ;;  %v7639_v62 = vld [vmem:[%s7962_s14] sm:$0xfe]  }
  0x63   : > { %v1179_v32 = vor.u32 %v1178_v16, %v1174_v15  ;;  %v7671_v16 = vld [vmem:[%s8964_s2 + $0x290] sm:$0xff]  }
  0x64   : > { %v872_v13 = vrot.slane %v870_v6, 1  ;;  %v1618_v6 = vrot.slane %v7638_v60, 1  ;;  %v7659_v60 = vld [vmem:[%s8964_s2 + $0x288] sm:$0xff]  }
  0x66   : > { %v873_v20 = vor.u32 %v872_v13, %v868_v12  ;;  %v1615_v12 = vrot.slane %v7640_v63, 1  ;;  %v7636_v13 = vld [vmem:[%s8156_s27] sm:$0xff]   ;;  %v8218_v25 = vsel %vm1613_vm1, %v1617_v5, %v1618_v6  ;;  %v7660_v63 = vld [vmem:[%s8964_s2 + $0x208] sm:$0xff]   ;;  %v7663_v5 = vld [vmem:[%s7962_s14 + $0x30] sm:$0xff]  }
  0x67   : > { %v7669_v6 = vld [vmem:[%s8964_s2 + $0x2d0] sm:$0xff]  }
  0x68   : > { %2042 = vmatmul.mubr.bf16.gmra.mrb[28].mxu0 %v7596_v31  ;;  %v8180_v28 = vsel %vm710_vm0, %v873_v20, %v877_v21  ;;  %v7651_v20 = vld [vmem:[%s7962_s14 + $0x18] sm:$0xff]  }
  0x69   : > { %2299 = vmatmul.mubr.bf16.gmra.mrb[28].mxu1 %v7589_v17  ;;  %2049 = vmatprep.mubr.bf16.mxu0 %v8111_v34  ;;  %v8167_v17 = vsel %vm710_vm0, %v861_v7, %v865_v10  ;;  %v7644_v7 = vld [vmem:[%s7962_s14 + $0x8] ss:$0 sps:$4 sm:$0x11]   ;;  %v1164_v10 = vshll.u32 %v7643_v1, 16  ;;  %v1186_v39 = vshrl.u32 %v7651_v20, 16 }
  0x6a   : > { %2306 = vmatprep.mubr.bf16.mxu1 %v8095_v22  ;;  %v1169_v23 = vshll.u32 %v7644_v7, 16  ;;  %v7670_v7 = vld [vmem:[%s8964_s2 + $0x250] sm:$0xff]  }
  0x6b   : > { %v1166_v21 = vrot.slane %v1164_v10, 1  ;;  %v7661_v10 = vld [vmem:[%s7962_s14 + $0x30] sm:$0xfe]  }
  0x6c   : > { %v1171_v36 = vrot.slane %v1169_v23, 1  ;;  %v7681_v23 = vld [vmem:[%s8964_s2 + $0x2d8] sm:$0xff]  }
  0x6d   : > { %v1167_v35 = vor.u32 %v1166_v21, %v1162_v19  ;;  %v7664_v21 = vld [vmem:[%s7962_s14 + $0x38] ss:$0 sps:$4 sm:$0x11]  }
  0x70   : > { %2050 = vmatmul.mubr.bf16.gmra.mrb[32].mxu0 %v7599_v47 }
  0x71   : > { %2307 = vmatmul.mubr.bf16.gmra.mrb[32].mxu1 %v7596_v31  ;;  %2057 = vmatprep.mubr.bf16.mxu0 %v8132_v50  ;;  %v7628_v31 = vld [vmem:[%s7962_s14 + $0xbc] ss:$0 sps:$4 sm:$0x11]  }
  0x72   : > { %2314 = vmatprep.mubr.bf16.mxu1 %v8111_v34  ;;  %v899_v38 = vshll.u32 %v7628_v31, 16  ;;  %v1188_v31 = vshll.u32 %v7651_v20, 16  ;;  %v1207_v20 = vrot.slane %v1205_v3, 1  ;;  %v7706_v3 = vld [vmem:[%s8964_s2 + $0x268] sm:$0xff]  }
  0x74   : > { %v901_v45 = vrot.slane %v899_v38, 1  ;;  %v1621_v38 = vrot.slane %v7650_v27, 1 }
  0x78   : > { %2058 = vmatmul.mubr.bf16.gmra.mrb[36].mxu0 %v7606_v57 }
  0x79   : > { %2315 = vmatmul.mubr.bf16.gmra.mrb[36].mxu1 %v7599_v47  ;;  %2065 = vmatprep.mubr.bf16.mxu0 %v8159_v4  ;;  %v897_v47 = vor.u32 %v896_v42, %v892_v41  ;;  %v7647_v41 = vld [vmem:[%s8964_s2 + $0x280] sm:$0xff]  }
  0x7a   : > { %2322 = vmatprep.mubr.bf16.mxu1 %v8132_v50  ;;  %v7648_v42 = vld [vmem:[%s8964_s2 + $0x200] sm:$0xff]  }
  0x7b   : > { %v8196_v49 = vsel %vm710_vm0, %v897_v47, %v901_v45  ;;  %v1190_v45 = vrot.slane %v1188_v31, 1  ;;  %v7654_v47 = vld [vmem:[%s7962_s14 + $0x2c] ss:$0 sps:$4 sm:$0x11]   ;;  %v7683_v31 = vld [vmem:[%s8964_s2 + $0x298] sm:$0xff]  }
  0x7c   : > { %v1624_v1 = vrot.slane %v7654_v47, 1 }
  0x7d   : > { %v1191_v61 = vor.u32 %v1190_v45, %v1186_v39  ;;  %v7694_v39 = vld [vmem:[%s8964_s2 + $0x260] sm:$0xff]  }
  0x7e   : > { %v7665_v45 = vld [vmem:[%s7962_s14 + $0x3c] sm:$0xfe]  }
  0x80   : > { %2066 = vmatmul.mubr.bf16.gmra.mrb[40].mxu0 %v7609_v11 }
  0x81   : > { %2323 = vmatmul.mubr.bf16.gmra.mrb[40].mxu1 %v7606_v57  ;;  %2073 = vmatprep.mubr.bf16.mxu0 %v8167_v17  ;;  %v963_v57 = vor.u32 %v962_v53, %v958_v52  ;;  %v1172_v52 = vsel %vm710_vm0, %v1167_v35, %v1171_v36  ;;  %v7653_v53 = vld [vmem:[%s7962_s14 + $0x24] sm:$0xfe]   ;;  %v7684_v35 = vld [vmem:[%s8964_s2 + $0x218] sm:$0xff]   ;;  %v1210_v36 = vshrl.u32 %v7663_v5, 16 }
  0x82   : > { %2330 = vmatprep.mubr.bf16.mxu1 %v8159_v4  ;;  %v1623_v0 = vrot.slane %v7653_v53, 1  ;;  %v7696_v53 = vld [vmem:[%s8964_s2 + $0x220] sm:$0xff]  }
  0x83   : > { %v8209_v2 = vsel %vm710_vm0, %v963_v57, %v967_v58  ;;  %v7657_v57 = vld [vmem:[%s8964_s2 + $0x2c8] sm:$0xff]  }
  0x84   : > { %v7658_v58 = vld [vmem:[%s8964_s2 + $0x248] sm:$0xff]   ;;  %v8275_v19 = vsel %vm1613_vm1, %v1623_v0, %v1624_v1  ;;  %v1226_v0 = vrot.slane %v1224_v54, 1  ;;  %v1229_v1 = vshll.u32 %v7668_v46, 16 }
  0x88   : > { %2074 = vmatmul.mubr.bf16.gmra.mrb[44].mxu0 %v7616_v24 }
  0x89   : > { %2331 = vmatmul.mubr.bf16.gmra.mrb[44].mxu1 %v7609_v11  ;;  %2081 = vmatprep.mubr.bf16.mxu0 %v8180_v28  ;;  %v1614_v11 = vrot.slane %v7639_v62, 1  ;;  %v1200_v62 = vshll.u32 %v7655_v43, 16 }
  0x8a   : > { %2338 = vmatprep.mubr.bf16.mxu1 %v8167_v17 }
  0x8b   : > { %v1616_v26 = vsel %vm1613_vm1, %v1614_v11, %v1615_v12  ;;  %v7662_v11 = vld [vmem:[%s7962_s14 + $0x38] ss:$0 sps:$4 sm:$0x11]   ;;  %v8266_v12 = vsel %vm710_vm0, %v1191_v61, %v1195_v59  ;;  %v1202_v15 = vrot.slane %v1200_v62, 1  ;;  %v1222_v62 = vshrl.u32 %v7667_v30, 16 }
  0x90   : > { %2082 = vmatmul.mubr.bf16.gmra.mrb[48].mxu0 %v7619_v37 }
  0x91   : > { %2339 = vmatmul.mubr.bf16.gmra.mrb[48].mxu1 %v7616_v24  ;;  %2089 = vmatprep.mubr.bf16.mxu0 %v8189_v40  ;;  %v7649_v24 = vld [vmem:[%s7962_s14 + $0x18] sm:$0xfe]  }
  0x92   : > { %2346 = vmatprep.mubr.bf16.mxu1 %v8180_v28 }
  0x98   : > { %2090 = vmatmul.mubr.bf16.gmra.mrb[52].mxu0 %v7626_v48 }
  0x99   : > { %2347 = vmatmul.mubr.bf16.gmra.mrb[52].mxu1 %v7619_v37  ;;  %2097 = vmatprep.mubr.bf16.mxu0 %v8196_v49  ;;  %v1620_v37 = vrot.slane %v7649_v24, 1  ;;  %v1212_v24 = vshll.u32 %v7663_v5, 16  ;;  %v7707_v5 = vld [vmem:[%s8964_s2 + $0x2a8] sm:$0xff]  }
  0x9a   : > { %2354 = vmatprep.mubr.bf16.mxu1 %v8189_v40 }
  0xa0   : > { %2098 = vmatmul.mubr.bf16.gmra.mrb[56].mxu0 %v7629_v55 }
  0xa1   : > { %2355 = vmatmul.mubr.bf16.gmra.mrb[56].mxu1 %v7626_v48  ;;  %2105 = vmatprep.mubr.bf16.mxu0 %v8209_v2  ;;  %v8233_v48 = vsel %vm710_vm0, %v1179_v32, %v1183_v29  ;;  %v1626_v29 = vrot.slane %v7661_v10, 1  ;;  %v1627_v32 = vrot.slane %v7662_v11, 1  ;;  %v7708_v10 = vld [vmem:[%s8964_s2 + $0x228] sm:$0xff]  }
  0xa2   : > { %2362 = vmatprep.mubr.bf16.mxu1 %v8196_v49 }
  0xa3   : > { %v8308_v47 = vsel %vm1613_vm1, %v1626_v29, %v1627_v32  ;;  %v7679_v29 = vld [vmem:[%s7962_s14 + $0x54] sm:$0xff]  }
  0xa4   : > { %v1246_v54 = vshrl.u32 %v7679_v29, 16 }
  0xa8   : > { %2106 = vmatmul.mubr.bf16.gmra.mrb[60].mxu0 %v7636_v13  ;;  %v1198_v13 = vshrl.u32 %v7655_v43, 16 }
  0xa9   : > { %2363 = vmatmul.mubr.bf16.gmra.mrb[60].mxu1 %v7629_v55  ;;  %2861 = vmatprep.mubr.bf16.mxu0 %v8218_v25  ;;  %v8239_v55 = vsel %vm1613_vm1, %v1620_v37, %v1621_v38  ;;  %v1214_v37 = vrot.slane %v1212_v24, 1  ;;  %v7693_v38 = vld [vmem:[%s8964_s2 + $0x2e0] sm:$0xff]  }
  0xaa   : > { %3118 = vmatprep.mubr.bf16.mxu1 %v1616_v26  ;;  %v7682_v26 = vld [vmem:[%s8964_s2 + $0x258] sm:$0xff]   ;;  %v1203_v27 = vor.u32 %v1202_v15, %v1198_v13  ;;  %v7673_v13 = vld [vmem:[%s7962_s14 + $0x48] sm:$0xfe]   ;;  %v7676_v15 = vld [vmem:[%s7962_s14 + $0x50] ss:$0 sps:$4 sm:$0x11]  }
  0xac   : > { %v8303_v43 = vsel %vm710_vm0, %v1203_v27, %v1207_v20  ;;  %v1231_v20 = vrot.slane %v1229_v1, 1  ;;  %v1241_v27 = vshll.u32 %v7676_v15, 16  ;;  %v7729_v1 = vld [vmem:[%s8964_s2 + $0x2f8] sm:$0xff]   ;;  %v7691_v15 = vld [vmem:[%s7962_s14 + $0x6c] sm:$0xff]  }
  0xb0   : > { %2862 = vmatmul.mubr.bf16.vlgmr.msra.gmra.mrb[64].mxu0 %v8233_v48 }
  0xb1   : > { %3119 = vmatmul.mubr.bf16.vlgmr.msra.gmra.mrb[64].mxu1 %v1172_v52  ;;  %7048 = vmatpush3.bf16.msra.mxu0 %v7647_v41  ;;  %v1217_v41 = vshll.u32 %v7664_v21, 16  ;;  %v7695_v52 = vld [vmem:[%s8964_s2 + $0x2a0] sm:$0xff]   ;;  %v1632_v21 = vrot.slane %v7673_v13, 1 }
  0xb2   : > { %7160 = vmatpush3.bf16.msra.mxu1 %v7648_v42  ;;  %2869 = vmatprep.mubr.bf16.mxu0 %v8239_v55  ;;  %v7666_v42 = vld [vmem:[%s7962_s14 + $0x44] ss:$0 sps:$4 sm:$0x11]  }
  0xb3   : > { %3126 = vmatprep.mubr.bf16.mxu1 %v8218_v25  ;;  %7049 = vmatprep.subr.bf16.mxu0 %v7657_v57  ;;  %v7705_v57 = vld [vmem:[%s8964_s2 + $0x2e8] sm:$0xff]   ;;  %v1219_v59 = vrot.slane %v1217_v41, 1  ;;  %v1630_v61 = vrot.slane %v7666_v42, 1 }
  0xb4   : > { %7161 = vmatprep.subr.bf16.mxu1 %v7658_v58  ;;  %v1215_v58 = vor.u32 %v1214_v37, %v1210_v36  ;;  %v7680_v36 = vld [vmem:[%s7962_s14 + $0x5c] ss:$0 sps:$4 sm:$0x11]   ;;  %v7717_v37 = vld [vmem:[%s8964_s2 + $0x2f0] sm:$0xff]  }
  0xb5   : > { %7050 = vmatpush3.bf16.msra.mxu0 %v7659_v60  ;;  %v1629_v60 = vrot.slane %v7665_v45, 1  ;;  %v7718_v45 = vld [vmem:[%s8964_s2 + $0x270] sm:$0xff]  }
  0xb6   : > { %7162 = vmatpush3.bf16.msra.mxu1 %v7660_v63  ;;  %7051 = vmatprep.subr.bf16.mxu0 %v7669_v6  ;;  %v7675_v63 = vld [vmem:[%s7962_s14 + $0x48] sm:$0xff]   ;;  %v8331_v6 = vsel %vm710_vm0, %v1215_v58, %v1219_v59  ;;  %v1253_v59 = vshll.u32 %v7680_v36, 16  ;;  %v1272_v36 = vshll.u32 %v7691_v15, 16 }
  0xb7   : > { %7163 = vmatprep.subr.bf16.mxu1 %v7670_v7  ;;  %v7674_v7 = vld [vmem:[%s7962_s14 + $0x50] ss:$0 sps:$4 sm:$0x11]   ;;  %v8338_v11 = vsel %vm1613_vm1, %v1629_v60, %v1630_v61  ;;  %v1234_v24 = vshrl.u32 %v7675_v63, 16  ;;  %v7685_v60 = vld [vmem:[%s7962_s14 + $0x60] sm:$0xfe]  }
  0xb8   : > { %2870 = vmatmul.mubr.bf16.gmra.mrb[68].mxu0 %v8266_v12  ;;  %v7687_v61 = vld [vmem:[%s7962_s14 + $0x60] sm:$0xff]  }
  0xb9   : > { %3127 = vmatmul.mubr.bf16.gmra.mrb[68].mxu1 %v8233_v48  ;;  %2877 = vmatprep.mubr.bf16.mxu0 %v8275_v19 }
  0xba   : > { %3134 = vmatprep.mubr.bf16.mxu1 %v8239_v55  ;;  %7052 = vmatpush3.bf16.msra.mxu0 %v7671_v16  ;;  %v1236_v16 = vshll.u32 %v7675_v63, 16  ;;  %v7686_v63 = vld [vmem:[%s7962_s14 + $0x68] ss:$0 sps:$4 sm:$0x11]  }
  0xbb   : > { %7164 = vmatpush3.bf16.msra.mxu1 %v7672_v18  ;;  %7053 = vmatprep.subr.bf16.mxu0 %v7681_v23  ;;  %v1227_v18 = vor.u32 %v1226_v0, %v1222_v62  ;;  %v1633_v23 = vrot.slane %v7674_v7, 1  ;;  %v7688_v0 = vld [vmem:[%s7962_s14 + $0x68] ss:$0 sps:$4 sm:$0x11]   ;;  %v1638_v7 = vrot.slane %v7685_v60, 1  ;;  %v1639_v13 = vrot.slane %v7686_v63, 1 }
  0xbc   : > { %7165 = vmatprep.subr.bf16.mxu1 %v7682_v26  ;;  %v1238_v26 = vrot.slane %v1236_v16, 1  ;;  %v1258_v16 = vshrl.u32 %v7687_v61, 16 }
  0xbd   : > { %v8348_v30 = vsel %vm710_vm0, %v1227_v18, %v1231_v20  ;;  %v8352_v32 = vsel %vm1613_vm1, %v1632_v21, %v1633_v23  ;;  %v1265_v18 = vshll.u32 %v7688_v0, 16  ;;  %v7730_v20 = vld [vmem:[%s8964_s2 + $0x278] sm:$0xff]   ;;  %v7689_v21 = vld [vmem:[%s7962_s14 + $0x6c] sm:$0xfe]  }
  0xbe   : > { %7054 = vmatpush3.bf16.msra.mxu0 %v7683_v31  ;;  %v7677_v31 = vld [vmem:[%s7962_s14 + $0x54] sm:$0xfe]   ;;  %v1239_v41 = vor.u32 %v1238_v26, %v1234_v24  ;;  %v7690_v23 = vld [vmem:[%s7962_s14 + $0x74] ss:$0 sps:$4 sm:$0x11]  }
  0xbf   : > { %7166 = vmatpush3.bf16.msra.mxu1 %v7684_v35  ;;  %7055 = vmatprep.subr.bf16.mxu0 %v7693_v38  ;;  %v7678_v35 = vld [vmem:[%s7962_s14 + $0x5c] ss:$0 sps:$4 sm:$0x11]   ;;  %v1243_v38 = vrot.slane %v1241_v27, 1  ;;  %v1635_v42 = vrot.slane %v7677_v31, 1 }
  0xc0   : > { %7167 = vmatprep.subr.bf16.mxu1 %v7694_v39  ;;  %2878 = vmatmul.mubr.bf16.gmra.mrb[72].mxu0 %v8303_v43  ;;  %v1248_v39 = vshll.u32 %v7679_v29, 16  ;;  %v1636_v46 = vrot.slane %v7678_v35, 1  ;;  %v7692_v24 = vld [vmem:[%s7962_s14 + $0x74] ss:$0 sps:$4 sm:$0x11]   ;;  %v7731_v26 = vld [vmem:[%s8964_s2 + $0x2b8] sm:$0xff]   ;;  %v8406_v35 = vsel %vm1613_vm1, %v1638_v7, %v1639_v13 }
  0xc1   : > { %3135 = vmatmul.mubr.bf16.gmra.mrb[72].mxu1 %v8266_v12  ;;  %2885 = vmatprep.mubr.bf16.mxu0 %v8308_v47  ;;  %v8373_v58 = vsel %vm710_vm0, %v1239_v41, %v1243_v38  ;;  %v7732_v31 = vld [vmem:[%s8964_s2 + $0x238] sm:$0xff]   ;;  %v1267_v38 = vrot.slane %v1265_v18, 1  ;;  %v1641_v41 = vrot.slane %v7689_v21, 1  ;;  %v7703_v7 = vld [vmem:[%s7962_s14 + $0x84] sm:$0xff]  }
  0xc2   : > { %3142 = vmatprep.mubr.bf16.mxu1 %v8275_v19  ;;  %7056 = vmatpush3.bf16.msra.mxu0 %v7695_v52  ;;  %v7719_v52 = vld [vmem:[%s8964_s2 + $0x2b0] sm:$0xff]   ;;  %v8378_v62 = vsel %vm1613_vm1, %v1635_v42, %v1636_v46  ;;  %v1642_v42 = vrot.slane %v7690_v23, 1  ;;  %v7699_v46 = vld [vmem:[%s7962_s14 + $0x78] sm:$0xff]   ;;  %v7702_v13 = vld [vmem:[%s7962_s14 + $0x8c] ss:$0 sps:$4 sm:$0x11]  }
  0xc3   : > { %7168 = vmatpush3.bf16.msra.mxu1 %v7696_v53  ;;  %7057 = vmatprep.subr.bf16.mxu0 %v7705_v57  ;;  %v7720_v53 = vld [vmem:[%s8964_s2 + $0x230] sm:$0xff]   ;;  %v1250_v57 = vrot.slane %v1248_v39, 1  ;;  %v1277_v39 = vshll.u32 %v7692_v24, 16  ;;  %v1284_v0 = vshll.u32 %v7699_v46, 16  ;;  %v1282_v18 = vshrl.u32 %v7699_v46, 16 }
  0xc4   : > { %7169 = vmatprep.subr.bf16.mxu1 %v7706_v3  ;;  %v8423_v63 = vsel %vm1613_vm1, %v1641_v41, %v1642_v42  ;;  %v1296_v24 = vshll.u32 %v7703_v7, 16  ;;  %v7711_v41 = vld [vmem:[%s7962_s14 + $0x90] sm:$0xff]   ;;  %v7712_v42 = vld [vmem:[%s7962_s14 + $0x98] ss:$0 sps:$4 sm:$0x11]  }
  0xc5   : > { %v1251_v3 = vor.u32 %v1250_v57, %v1246_v54  ;;  %v7697_v54 = vld [vmem:[%s7962_s14 + $0x78] sm:$0xfe]   ;;  %v7698_v57 = vld [vmem:[%s7962_s14 + $0x80] ss:$0 sps:$4 sm:$0x11]   ;;  %v1279_v60 = vrot.slane %v1277_v39, 1 }
  0xc6   : > { %7058 = vmatpush3.bf16.msra.mxu0 %v7707_v5  ;;  %v1255_v5 = vrot.slane %v1253_v59, 1  ;;  %8989 = vst [vmem:[#allocation3_spill] sm:$0xff] %v8423_v63  ;;  %v1286_v21 = vrot.slane %v1284_v0, 1  ;;  %v1648_v39 = vrot.slane %v7702_v13, 1  ;;  %v1298_v46 = vrot.slane %v1296_v24, 1 }
  0xc7   : > { %7170 = vmatpush3.bf16.msra.mxu1 %v7708_v10  ;;  %7059 = vmatprep.subr.bf16.mxu0 %v7717_v37  ;;  %v1260_v10 = vshll.u32 %v7687_v61, 16  ;;  %v7737_v61 = vld [vmem:[%s8964_s2 + $0x3c0] sm:$0xff]   ;;  %v1308_v0 = vshll.u32 %v7711_v41, 16 }
  0xc8   : > { %2886 = vmatmul.mubr.bf16.gmra.mrb[76].mxu0 %v8331_v6  ;;  %7171 = vmatprep.subr.bf16.mxu1 %v7718_v45  ;;  %v8400_v27 = vsel %vm710_vm0, %v1251_v3, %v1255_v5  ;;  %v1270_v45 = vshrl.u32 %v7691_v15, 16  ;;  %v7738_v3 = vld [vmem:[%s8964_s2 + $0x340] sm:$0xff]  }
  0xc9   : > { %3143 = vmatmul.mubr.bf16.gmra.mrb[76].mxu1 %v8303_v43  ;;  %2893 = vmatprep.mubr.bf16.mxu0 %v8338_v11  ;;  %v1262_v29 = vrot.slane %v1260_v10, 1  ;;  %v7701_v10 = vld [vmem:[%s7962_s14 + $0x84] sm:$0xfe]  }
  0xca   : > { %3150 = vmatprep.mubr.bf16.mxu1 %v8308_v47  ;;  %7060 = vmatpush3.bf16.msra.mxu0 %v7719_v52  ;;  %v1274_v52 = vrot.slane %v1272_v36, 1 }
  0xcb   : > { %7172 = vmatpush3.bf16.msra.mxu1 %v7720_v53  ;;  %7061 = vmatprep.subr.bf16.mxu0 %v7729_v1  ;;  %v1263_v37 = vor.u32 %v1262_v29, %v1258_v16  ;;  %v7700_v53 = vld [vmem:[%s7962_s14 + $0x80] ss:$0 sps:$4 sm:$0x11]   ;;  %v7704_v1 = vld [vmem:[%s7962_s14 + $0x8c] ss:$0 sps:$4 sm:$0x11]  }
  0xcc   : > { %7173 = vmatprep.subr.bf16.mxu1 %v7730_v20  ;;  %v1289_v5 = vshll.u32 %v7700_v53, 16  ;;  %v1275_v15 = vor.u32 %v1274_v52, %v1270_v45  ;;  %v1644_v16 = vrot.slane %v7697_v54, 1  ;;  %v1645_v20 = vrot.slane %v7698_v57, 1  ;;  %v7715_v53 = vld [vmem:[%s7962_s14 + $0x9c] sm:$0xff]  }
  0xcd   : > { %v8417_v59 = vsel %vm710_vm0, %v1263_v37, %v1267_v38  ;;  %v1301_v29 = vshll.u32 %v7704_v1, 16  ;;  %v7709_v37 = vld [vmem:[%s7962_s14 + $0x90] sm:$0xfe]   ;;  %v1294_v45 = vshrl.u32 %v7703_v7, 16  ;;  %v1287_v54 = vor.u32 %v1286_v21, %v1282_v18  ;;  %v7713_v1 = vld [vmem:[%s7962_s14 + $0x9c] sm:$0xfe]  }
  0xce   : > { %7062 = vmatpush3.bf16.msra.mxu0 %v7731_v26  ;;  %v1291_v23 = vrot.slane %v1289_v5, 1  ;;  %v1647_v26 = vrot.slane %v7701_v10, 1  ;;  %v8438_v36 = vsel %vm710_vm0, %v1275_v15, %v1279_v60  ;;  %v8442_v38 = vsel %vm1613_vm1, %v1644_v16, %v1645_v20 }
  0xcf   : > { %7174 = vmatpush3.bf16.msra.mxu1 %v7732_v31  ;;  %7271 = vmatprep.subr.bf16.mxu0 %v7737_v61  ;;  %v7710_v31 = vld [vmem:[%s7962_s14 + $0x98] ss:$0 sps:$4 sm:$0x11]   ;;  %8990 = vst [vmem:[#allocation4_spill] sm:$0xff] %v8438_v36  ;;  %8991 = vst [vmem:[#allocation5_spill] sm:$0xff] %v8442_v38  ;;  %v1303_v52 = vrot.slane %v1301_v29, 1  ;;  %v1299_v15 = vor.u32 %v1298_v46, %v1294_v45 }
  0xd0   : > { %2894 = vmatmul.mubr.bf16.gmra.mrb[80].mxu0 %v8348_v30  ;;  %7383 = vmatprep.subr.bf16.mxu1 %v7738_v3  ;;  %v1650_v57 = vrot.slane %v7709_v37, 1  ;;  %v1306_v60 = vshrl.u32 %v7711_v41, 16  ;;  %v1651_v61 = vrot.slane %v7710_v31, 1  ;;  %v7714_v3 = vld [vmem:[%s7962_s14 + $0xa4] ss:$0 sps:$4 sm:$0x11]   ;;  %v8454_v10 = vsel %vm710_vm0, %v1287_v54, %v1291_v23 }
  0xd1   : > { %3151 = vmatmul.mubr.bf16.gmra.mrb[80].mxu1 %v8331_v6  ;;  %2901 = vmatprep.mubr.bf16.mxu0 %v8352_v32  ;;  %v1313_v5 = vshll.u32 %v7712_v42, 16  ;;  %v1320_v7 = vshll.u32 %v7715_v53, 16  ;;  %8992 = vst [vmem:[#allocation6_spill] sm:$0xff] %v8454_v10  ;;  %v8457_v13 = vsel %vm1613_vm1, %v1647_v26, %v1648_v39  ;;  %v1310_v16 = vrot.slane %v1308_v0, 1  ;;  %v7723_v45 = vld [vmem:[%s7962_s14 + $0xa8] sm:$0xff]  }
  0xd2   : > { %3158 = vmatprep.mubr.bf16.mxu1 %v8338_v11  ;;  %8993 = vst [vmem:[#allocation7_spill] sm:$0xff] %v8457_v13  ;;  %v1653_v20 = vrot.slane %v7713_v1, 1  ;;  %v1654_v21 = vrot.slane %v7714_v3, 1  ;;  %v1318_v24 = vshrl.u32 %v7715_v53, 16  ;;  %v8465_v26 = vsel %vm710_vm0, %v1299_v15, %v1303_v52  ;;  %v7721_v15 = vld [vmem:[%s7962_s14 + $0xa8] sm:$0xfe]  }
  0xd3   : > { %v1315_v18 = vrot.slane %v1313_v5, 1  ;;  %v1322_v23 = vrot.slane %v1320_v7, 1  ;;  %v7716_v29 = vld [vmem:[%s7962_s14 + $0xa4] ss:$0 sps:$4 sm:$0x11]   ;;  %8994 = vst [vmem:[#allocation8_spill] sm:$0xff] %v8465_v26  ;;  %v8468_v31 = vsel %vm1613_vm1, %v1650_v57, %v1651_v61  ;;  %v1311_v39 = vor.u32 %v1310_v16, %v1306_v60 }
  0xd4   : > { %8995 = vst [vmem:[#allocation9_spill] sm:$0xff] %v8468_v31  ;;  %v1325_v41 = vshll.u32 %v7716_v29, 16  ;;  %v8478_v61 = vld [vmem:[%s8965_s3] ss:$0 sm:$0xff]  ;;  %v8484_v7 = vsel %vm1613_vm1, %v1653_v20, %v1654_v21  ;;  %v1656_v20 = vrot.slane %v7721_v15, 1 }
  0xd5   : > { %v8481_v60 = vsel %vm710_vm0, %v1311_v39, %v1315_v18  ;;  %8997 = vst [vmem:[#allocation11_spill] sm:$0xff] %v8484_v7  ;;  %v7722_v16 = vld [vmem:[%s7962_s14 + $0xb0] ss:$0 sps:$4 sm:$0x11]  }
  0xd6   : > { %8996 = vst [vmem:[#allocation10_spill] sm:$0xff] %v8481_v60  ;;  %v1657_v21 = vrot.slane %v7722_v16, 1 }
  0xd8   : > { %2902 = vmatmul.mubr.bf16.gmra.mrb[84].mxu0 %v8373_v58 }
  0xd9   : > { %3159 = vmatmul.mubr.bf16.gmra.mrb[84].mxu1 %v8348_v30  ;;  %2909 = vmatprep.mubr.bf16.mxu0 %v8378_v62 }
  0xda   : > { %3166 = vmatprep.mubr.bf16.mxu1 %v8352_v32 }
  0xe0   : > { %2910 = vmatmul.mubr.bf16.gmra.mrb[88].mxu0 %v8400_v27 }
  0xe1   : > { %3167 = vmatmul.mubr.bf16.gmra.mrb[88].mxu1 %v8373_v58  ;;  %2917 = vmatprep.mubr.bf16.mxu0 %v8406_v35 }
  0xe2   : > { %3174 = vmatprep.mubr.bf16.mxu1 %v8378_v62 }
  0xe8   : > { %2918 = vmatmul.mubr.bf16.gmra.mrb[92].mxu0 %v8417_v59 }
  0xe9   : > { %3175 = vmatmul.mubr.bf16.gmra.mrb[92].mxu1 %v8400_v27  ;;  %2925 = vmatprep.mubr.bf16.mxu0 %v8423_v63 }
  0xea   : > { %3182 = vmatprep.mubr.bf16.mxu1 %v8406_v35 }
  0xf0   : > { %2926 = vmatmul.mubr.bf16.gmra.mrb[96].mxu0 %v8438_v36 }
  0xf1   : > { %3183 = vmatmul.mubr.bf16.gmra.mrb[96].mxu1 %v8417_v59  ;;  %2933 = vmatprep.mubr.bf16.mxu0 %v8442_v38 }
  0xf2   : > { %3190 = vmatprep.mubr.bf16.mxu1 %v8423_v63 }
  0xf8   : > { %2934 = vmatmul.mubr.bf16.gmra.mrb[100].mxu0 %v8454_v10 }
  0xf9   : > { %3191 = vmatmul.mubr.bf16.gmra.mrb[100].mxu1 %v8438_v36  ;;  %2941 = vmatprep.mubr.bf16.mxu0 %v8457_v13 }
  0xfa   : > { %3198 = vmatprep.mubr.bf16.mxu1 %v8442_v38 }
 0x100   : > { %2942 = vmatmul.mubr.bf16.gmra.mrb[104].mxu0 %v8465_v26 }
 0x101   : > { %3199 = vmatmul.mubr.bf16.gmra.mrb[104].mxu1 %v8454_v10  ;;  %2949 = vmatprep.mubr.bf16.mxu0 %v8468_v31 }
 0x102   : > { %3206 = vmatprep.mubr.bf16.mxu1 %v8457_v13  ;;  %v7725_v13 = vld [vmem:[%s7962_s14 + $0xb4] sm:$0xfe]  }
 0x103   : > { %v6615_v37 = vpop.f32.mrb[0].mxu0 }
 0x104   : > { %v6616_v42 = vpop.f32.mrb[1].mxu0  ;;  %v6727_v46 = vpop.f32.mrb[0].mxu1 }
 0x105   : > { %v6617_v52 = vadd.f32 %v6616_v42, %v6615_v37  ;;  %v6618_v53 = vpop.f32.mrb[2].mxu0  ;;  %v6728_v54 = vpop.f32.mrb[1].mxu1  ;;  %v1323_v42 = vor.u32 %v1322_v23, %v1318_v24 }
 0x106   : > { %v6619_v57 = vpop.f32.mrb[3].mxu0  ;;  %v6729_v0 = vadd.f32 %v6728_v54, %v6727_v46  ;;  %v6730_v1 = vpop.f32.mrb[2].mxu1  ;;  %v1327_v46 = vrot.slane %v1325_v41, 1  ;;  %v7724_v54 = vld [vmem:[%s7962_s14 + $0xb0] ss:$0 sps:$4 sm:$0x11]  }
 0x107   : > { %v6620_v3 = vadd.f32 %v6619_v57, %v6618_v53  ;;  %v6731_v5 = vpop.f32.mrb[3].mxu1  ;;  %v1332_v53 = vshll.u32 %v7723_v45, 16 }
 0x108   : > { %v2245_v29 = vadd.f32 %v6729_v0, %v6617_v52  ;;  %v6732_v37 = vadd.f32 %v6731_v5, %v6730_v1  ;;  %2950 = vmatmul.mubr.bf16.gmra.mrb[108].mxu0 %v8481_v60  ;;  %v8497_v41 = vsel %vm710_vm0, %v1323_v42, %v1327_v46  ;;  %v1330_v1 = vshrl.u32 %v7723_v45, 16 }
 0x109   : > { %3207 = vmatmul.mubr.bf16.gmra.mrb[108].mxu1 %v8465_v26  ;;  %2957 = vmatprep.mubr.bf16.mxu0 %v8484_v7  ;;  %8998 = vst [vmem:[#allocation12_spill] sm:$0xff] %v8497_v41  ;;  %v1337_v5 = vshll.u32 %v7724_v54, 16  ;;  %v8507_v45 = vsel %vm1613_vm1, %v1656_v20, %v1657_v21  ;;  %v7726_v54 = vld [vmem:[%s7962_s14 + $0xbc] ss:$0 sps:$4 sm:$0x11]  }
 0x10a   : > { %v2377_v18 = vadd.f32 %v8478_v61, %v2245_v29  ;;  %v2248_v39 = vadd.f32 %v6732_v37, %v6620_v3  ;;  %3214 = vmatprep.mubr.bf16.mxu1 %v8468_v31  ;;  %v1334_v3 = vrot.slane %v1332_v53, 1  ;;  %v7727_v29 = vld [vmem:[%s7962_s14 + $0xb4] sm:$0xff]   ;;  %8999 = vst [vmem:[#allocation13_spill] sm:$0xff] %v8507_v45 }
 0x10b   : > { %v6621_v57 = vpop.f32.mrb[4].mxu0  ;;  %v1344_v10 = vshll.u32 %v7727_v29, 16 }
 0x10c   : > { %v2378_v52 = vadd.f32 %v8478_v61, %v2248_v39  ;;  %v6733_v0 = vpop.f32.mrb[4].mxu1  ;;  %v6622_v24 = vpop.f32.mrb[5].mxu0  ;;  %v2409_v37 = vmax.f32 %v2377_v18, 0.0 }
 0x10d   : > { %v6734_v23 = vpop.f32.mrb[5].mxu1  ;;  %v6623_v15 = vadd.f32 %v6622_v24, %v6621_v57  ;;  %v6624_v26 = vpop.f32.mrb[6].mxu0  ;;  %v1339_v24 = vrot.slane %v1337_v5, 1 }
 0x10e   : > { %v2410_v31 = vmax.f32 %v2378_v52, 0.0  ;;  %v6735_v16 = vadd.f32 %v6734_v23, %v6733_v0  ;;  %v6736_v39 = vpop.f32.mrb[6].mxu1  ;;  %v6625_v42 = vpop.f32.mrb[7].mxu0  ;;  %v1335_v0 = vor.u32 %v1334_v3, %v1330_v1  ;;  %v7728_v23 = vld [vmem:[%s7962_s14 + $0xbc] ss:$0 sps:$4 sm:$0x11]  }
 0x10f   : > { %v6737_v46 = vpop.f32.mrb[7].mxu1  ;;  %v6626_v52 = vadd.f32 %v6625_v42, %v6624_v26  ;;  %v1660_v26 = vrot.slane %v7726_v54, 1  ;;  %v7735_v42 = vld [vmem:[%s8156_s27] sm:$0xff]  }
 0x110   : > { %v6219_v53 = vpack.c.bf16 %v2410_v31, %v2409_v37  ;;  %v2253_v18 = vadd.f32 %v6735_v16, %v6623_v15  ;;  %v6738_v57 = vadd.f32 %v6737_v46, %v6736_v39  ;;  %2958 = vmatmul.mubr.bf16.gmra.mrb[112].mxu0 %v8497_v41  ;;  %v1659_v31 = vrot.slane %v7725_v13, 1 }
 0x111   : > { %3215 = vmatmul.mubr.bf16.gmra.mrb[112].mxu1 %v8481_v60  ;;  %2965 = vmatprep.mubr.bf16.mxu0 %v8507_v45  ;;  %v8519_v5 = vsel %vm710_vm0, %v1335_v0, %v1339_v24  ;;  %v1342_v15 = vshrl.u32 %v7727_v29, 16  ;;  %v1346_v16 = vrot.slane %v1344_v10, 1  ;;  %v1349_v39 = vshll.u32 %v7728_v23, 16  ;;  %v7734_v0 = vld [vmem:[%s8156_s27 + $0x8] ss:$0 sps:$4 sm:$0x11]  }
 0x112   : > { %6220 = vst [vmem:[%s8504_s20] sm:$0xff] %v6219_v53   ;;  %v2379_v38 = vadd.f32 %v8478_v61, %v2253_v18  ;;  %v2256_v36 = vadd.f32 %v6738_v57, %v6626_v52  ;;  %3222 = vmatprep.mubr.bf16.mxu1 %v8484_v7  ;;  %v7733_v52 = vld [vmem:[%s8156_s27] sm:$0xfe]   ;;  %v8524_v60 = vsel %vm1613_vm1, %v1659_v31, %v1660_v26  ;;  %v1717_v26 = vrot.slane %v7734_v0, 1 }
 0x113   : > { %v6627_v21 = vpop.f32.mrb[8].mxu0  ;;  %v1716_v31 = vrot.slane %v7733_v52, 1 }
 0x114   : > { %v2380_v20 = vadd.f32 %v8478_v61, %v2256_v36  ;;  %v6739_v37 = vpop.f32.mrb[8].mxu1  ;;  %v6628_v1 = vpop.f32.mrb[9].mxu0  ;;  %v2411_v46 = vmax.f32 %v2379_v38, 0.0  ;;  %v1347_v38 = vor.u32 %v1346_v16, %v1342_v15  ;;  %v1409_v16 = vshrl.u32 %v7735_v42, 16 }
 0x115   : > { %v6740_v3 = vpop.f32.mrb[9].mxu1  ;;  %v6629_v18 = vadd.f32 %v6628_v1, %v6627_v21  ;;  %v6630_v54 = vpop.f32.mrb[10].mxu0  ;;  %v7736_v21 = vld [vmem:[%s8156_s27 + $0x8] ss:$0 sps:$4 sm:$0x11]  }
 0x116   : > { %v2412_v53 = vmax.f32 %v2380_v20, 0.0  ;;  %v6741_v13 = vadd.f32 %v6740_v3, %v6739_v37  ;;  %v6742_v36 = vpop.f32.mrb[10].mxu1  ;;  %v6631_v57 = vpop.f32.mrb[11].mxu0  ;;  %v1351_v20 = vrot.slane %v1349_v39, 1  ;;  %v1411_v37 = vshll.u32 %v7735_v42, 16 }
 0x117   : > { %v6743_v7 = vpop.f32.mrb[11].mxu1  ;;  %v6632_v10 = vadd.f32 %v6631_v57, %v6630_v54  ;;  %v1416_v54 = vshll.u32 %v7736_v21, 16 }
 0x118   : > { %v6224_v24 = vpack.c.bf16 %v2412_v53, %v2411_v46  ;;  %v2261_v29 = vadd.f32 %v6741_v13, %v6629_v18  ;;  %v6744_v23 = vadd.f32 %v6743_v7, %v6742_v36  ;;  %2966 = vmatmul.mubr.bf16.gmra.mrb[116].mxu0 %v8519_v5  ;;  %v8536_v15 = vsel %vm710_vm0, %v1347_v38, %v1351_v20 }
 0x119   : > { %3223 = vmatmul.mubr.bf16.gmra.mrb[116].mxu1 %v8497_v41  ;;  %2973 = vmatprep.mubr.bf16.mxu0 %v8524_v60  ;;  %v1413_v39 = vrot.slane %v1411_v37, 1  ;;  %v1418_v20 = vrot.slane %v1416_v54, 1 }
 0x11a   : > { %6536 = vst [vmem:[%s8504_s20 + $0x8] sm:$0xff] %v6224_v24   ;;  %v2381_v1 = vadd.f32 %v8478_v61, %v2261_v29  ;;  %v2264_v3 = vadd.f32 %v6744_v23, %v6632_v10  ;;  %3230 = vmatprep.mubr.bf16.mxu1 %v8507_v45 }
 0x11b   : > { %v6633_v46 = vpop.f32.mrb[12].mxu0  ;;  %v1414_v42 = vor.u32 %v1413_v39, %v1409_v16 }
 0x11c   : > { %v2382_v7 = vadd.f32 %v8478_v61, %v2264_v3  ;;  %v6745_v53 = vpop.f32.mrb[12].mxu1  ;;  %v6634_v18 = vpop.f32.mrb[13].mxu0  ;;  %v2413_v36 = vmax.f32 %v2381_v1, 0.0  ;;  %v8539_v3 = vsel %vm1613_vm1, %v1716_v31, %v1717_v26 }
 0x11d   : > { %v6746_v13 = vpop.f32.mrb[13].mxu1  ;;  %v6635_v24 = vadd.f32 %v6634_v18, %v6633_v46  ;;  %v6636_v10 = vpop.f32.mrb[14].mxu0 }
 0x11e   : > { %v2414_v57 = vmax.f32 %v2382_v7, 0.0  ;;  %v6747_v29 = vadd.f32 %v6746_v13, %v6745_v53  ;;  %v6748_v52 = vpop.f32.mrb[14].mxu1  ;;  %v6637_v0 = vpop.f32.mrb[15].mxu0  ;;  %v8549_v53 = vsel %vm710_vm0, %v1414_v42, %v1418_v20 }
 0x11f   : > { %v6749_v23 = vpop.f32.mrb[15].mxu1  ;;  %v6638_v63 = vadd.f32 %v6637_v0, %v6636_v10 }
 0x120   : > { %v6229_v45 = vpack.c.bf16 %v2414_v57, %v2413_v36  ;;  %v2269_v41 = vadd.f32 %v6747_v29, %v6635_v24  ;;  %v6750_v38 = vadd.f32 %v6749_v23, %v6748_v52  ;;  %2974 = vmatmul.mubr.bf16.gmra.mrb[120].mxu0 %v8536_v15 }
 0x121   : > { %3231 = vmatmul.mubr.bf16.gmra.mrb[120].mxu1 %v8519_v5  ;;  %2981 = vmatprep.mubr.bf16.mxu0 %v8539_v3 }
 0x122   : > { %6537 = vst [vmem:[%s8504_s20 + $0x10] sm:$0xff] %v6229_v45   ;;  %v2383_v21 = vadd.f32 %v8478_v61, %v2269_v41  ;;  %v2272_v37 = vadd.f32 %v6750_v38, %v6638_v63  ;;  %3238 = vmatprep.mubr.bf16.mxu1 %v8524_v60 }
 0x123   : > { %v6639_v31 = vpop.f32.mrb[16].mxu0 }
 0x124   : > { %v2384_v1 = vadd.f32 %v8478_v61, %v2272_v37  ;;  %v6751_v26 = vpop.f32.mrb[16].mxu1  ;;  %v6640_v7 = vpop.f32.mrb[17].mxu0  ;;  %v2415_v18 = vmax.f32 %v2383_v21, 0.0 }
 0x125   : > { %v6752_v46 = vpop.f32.mrb[17].mxu1  ;;  %v6641_v45 = vadd.f32 %v6640_v7, %v6639_v31  ;;  %v6642_v41 = vpop.f32.mrb[18].mxu0 }
 0x126   : > { %v2416_v13 = vmax.f32 %v2384_v1, 0.0  ;;  %v6753_v16 = vadd.f32 %v6752_v46, %v6751_v26  ;;  %v6754_v63 = vpop.f32.mrb[18].mxu1  ;;  %v6643_v39 = vpop.f32.mrb[19].mxu0  ;;  %v7739_v46 = vld [vmem:[%s8964_s2 + $0x380] sm:$0xff]  }
 0x127   : > { %v6755_v54 = vpop.f32.mrb[19].mxu1  ;;  %v6644_v24 = vadd.f32 %v6643_v39, %v6642_v41  ;;  %v7741_v39 = vld [vmem:[%s8964_s2 + $0x3c8] sm:$0xff]  }
 0x128   : > { %v6234_v36 = vpack.c.bf16 %v2416_v13, %v2415_v18  ;;  %v2277_v57 = vadd.f32 %v6753_v16, %v6641_v45  ;;  %v6756_v29 = vadd.f32 %v6755_v54, %v6754_v63  ;;  %2982 = vmatmul.mubr.bf16.gmra.mrb[124].mxu0 %v8549_v53  ;;  %v7742_v54 = vld [vmem:[%s8964_s2 + $0x348] sm:$0xff]  }
 0x129   : > { %3239 = vmatmul.mubr.bf16.gmra.mrb[124].mxu1 %v8536_v15  ;;  %3731 = vmatprep.mubr.bf16.mxu0 %v8003_v9 }
 0x12a   : > { %6538 = vst [vmem:[%s8504_s20 + $0x18] sm:$0xff] %v6234_v36   ;;  %v2385_v10 = vadd.f32 %v8478_v61, %v2277_v57  ;;  %v2280_v52 = vadd.f32 %v6756_v29, %v6644_v24  ;;  %3988 = vmatprep.mubr.bf16.mxu1 %v7980_v51  ;;  %v7740_v51 = vld [vmem:[%s8964_s2 + $0x300] sm:$0xff]   ;;  %v7776_v36 = vld [vmem:[%s7962_s14 + $0x18] sm:$0xff]   ;;  %v7777_v57 = vld [vmem:[%s7962_s14 + $0xc] sm:$0xff]  }
 0x12b   : > { %v6645_v23 = vpop.f32.mrb[20].mxu0 }
 0x12c   : > { %v2386_v0 = vadd.f32 %v8478_v61, %v2280_v52  ;;  %v6757_v38 = vpop.f32.mrb[20].mxu1  ;;  %v6646_v42 = vpop.f32.mrb[21].mxu0  ;;  %v2417_v21 = vmax.f32 %v2385_v10, 0.0  ;;  %v7743_v10 = vld [vmem:[%s8964_s2 + $0x388] sm:$0xff]  }
 0x12d   : > { %v6758_v20 = vpop.f32.mrb[21].mxu1  ;;  %v6647_v1 = vadd.f32 %v6646_v42, %v6645_v23  ;;  %v6648_v26 = vpop.f32.mrb[22].mxu0  ;;  %v7744_v52 = vld [vmem:[%s8964_s2 + $0x308] sm:$0xff]   ;;  %v7746_v23 = vld [vmem:[%s8964_s2 + $0x350] sm:$0xff]  }
 0x12e   : > { %v2418_v37 = vmax.f32 %v2386_v0, 0.0  ;;  %v6759_v31 = vadd.f32 %v6758_v20, %v6757_v38  ;;  %v6760_v7 = vpop.f32.mrb[22].mxu1  ;;  %v6649_v18 = vpop.f32.mrb[23].mxu0  ;;  %v7745_v0 = vld [vmem:[%s8964_s2 + $0x3d0] sm:$0xff]  }
 0x12f   : > { %v6761_v13 = vpop.f32.mrb[23].mxu1  ;;  %v6650_v41 = vadd.f32 %v6649_v18, %v6648_v26 }
 0x130   : > { %v6239_v45 = vpack.c.bf16 %v2418_v37, %v2417_v21  ;;  %v2285_v16 = vadd.f32 %v6759_v31, %v6647_v1  ;;  %v6762_v63 = vadd.f32 %v6761_v13, %v6760_v7  ;;  %3732 = vmatmul.mubr.bf16.vlgmr.msra.gmra.mrb[128].mxu0 %v7776_v36  ;;  %v7747_v13 = vld [vmem:[%s8964_s2 + $0x390] sm:$0xff]  }
 0x131   : > { %3989 = vmatmul.mubr.bf16.vlgmr.msra.gmra.mrb[128].mxu1 %v7777_v57  ;;  %7272 = vmatpush3.bf16.msra.mxu0 %v7739_v46  ;;  %v7750_v57 = vld [vmem:[%s8964_s2 + $0x358] sm:$0xff]  }
 0x132   : > { %6539 = vst [vmem:[%s8504_s20 + $0x20] sm:$0xff] %v6239_v45   ;;  %v2387_v24 = vadd.f32 %v8478_v61, %v2285_v16  ;;  %v2288_v29 = vadd.f32 %v6762_v63, %v6650_v41  ;;  %7384 = vmatpush3.bf16.msra.mxu1 %v7740_v51  ;;  %3739 = vmatprep.mubr.bf16.mxu0 %v8013_v14  ;;  %v7748_v45 = vld [vmem:[%s8964_s2 + $0x310] sm:$0xff]  }
 0x133   : > { %3996 = vmatprep.mubr.bf16.mxu1 %v8003_v9  ;;  %v6651_v42 = vpop.f32.mrb[24].mxu0  ;;  %7273 = vmatprep.subr.bf16.mxu0 %v7741_v39 }
 0x134   : > { %v2388_v38 = vadd.f32 %v8478_v61, %v2288_v29  ;;  %v6763_v20 = vpop.f32.mrb[24].mxu1  ;;  %7385 = vmatprep.subr.bf16.mxu1 %v7742_v54  ;;  %v6652_v21 = vpop.f32.mrb[25].mxu0  ;;  %v2419_v1 = vmax.f32 %v2387_v24, 0.0  ;;  %v7749_v54 = vld [vmem:[%s8964_s2 + $0x3d8] sm:$0xff]   ;;  %v7778_v24 = vld [vmem:[%s7962_s14 + $0x24] sm:$0xff]  }
 0x135   : > { %v6764_v37 = vpop.f32.mrb[25].mxu1  ;;  %v6653_v26 = vadd.f32 %v6652_v21, %v6651_v42  ;;  %v6654_v7 = vpop.f32.mrb[26].mxu0  ;;  %7274 = vmatpush3.bf16.msra.mxu0 %v7743_v10 }
 0x136   : > { %v2420_v31 = vmax.f32 %v2388_v38, 0.0  ;;  %v6765_v9 = vadd.f32 %v6764_v37, %v6763_v20  ;;  %v6766_v46 = vpop.f32.mrb[26].mxu1  ;;  %7386 = vmatpush3.bf16.msra.mxu1 %v7744_v52  ;;  %v6655_v51 = vpop.f32.mrb[27].mxu0  ;;  %7275 = vmatprep.subr.bf16.mxu0 %v7745_v0  ;;  %v7751_v52 = vld [vmem:[%s8964_s2 + $0x398] sm:$0xff]  }
 0x137   : > { %v6767_v18 = vpop.f32.mrb[27].mxu1  ;;  %7387 = vmatprep.subr.bf16.mxu1 %v7746_v23  ;;  %v6656_v63 = vadd.f32 %v6655_v51, %v6654_v7  ;;  %v7752_v0 = vld [vmem:[%s8964_s2 + $0x318] sm:$0xff]   ;;  %v7754_v51 = vld [vmem:[%s8964_s2 + $0x360] sm:$0xff]  }
 0x138   : > { %v6244_v16 = vpack.c.bf16 %v2420_v31, %v2419_v1  ;;  %v2293_v41 = vadd.f32 %v6765_v9, %v6653_v26  ;;  %v6768_v39 = vadd.f32 %v6767_v18, %v6766_v46  ;;  %3740 = vmatmul.mubr.bf16.gmra.mrb[132].mxu0 %v7778_v24  ;;  %v7755_v18 = vld [vmem:[%s8964_s2 + $0x3a0] sm:$0xff]  }
 0x139   : > { %3997 = vmatmul.mubr.bf16.gmra.mrb[132].mxu1 %v7776_v36  ;;  %3747 = vmatprep.mubr.bf16.mxu0 %v8032_v33 }
 0x13a   : > { %6540 = vst [vmem:[%s8504_s20 + $0x28] sm:$0xff] %v6244_v16   ;;  %v2389_v29 = vadd.f32 %v8478_v61, %v2293_v41  ;;  %v2296_v10 = vadd.f32 %v6768_v39, %v6656_v63  ;;  %4004 = vmatprep.mubr.bf16.mxu1 %v8013_v14  ;;  %7276 = vmatpush3.bf16.msra.mxu0 %v7747_v13  ;;  %v7753_v14 = vld [vmem:[%s8964_s2 + $0x3e0] sm:$0xff]   ;;  %v7757_v39 = vld [vmem:[%s8964_s2 + $0x3e8] sm:$0xff]  }
 0x13b   : > { %7388 = vmatpush3.bf16.msra.mxu1 %v7748_v45  ;;  %v6657_v23 = vpop.f32.mrb[28].mxu0  ;;  %7277 = vmatprep.subr.bf16.mxu0 %v7749_v54  ;;  %v7756_v63 = vld [vmem:[%s8964_s2 + $0x320] sm:$0xff]   ;;  %v7779_v54 = vld [vmem:[%s7962_s14 + $0x30] sm:$0xff]  }
 0x13c   : > { %v2390_v36 = vadd.f32 %v8478_v61, %v2296_v10  ;;  %v6769_v38 = vpop.f32.mrb[28].mxu1  ;;  %7389 = vmatprep.subr.bf16.mxu1 %v7750_v57  ;;  %v6658_v42 = vpop.f32.mrb[29].mxu0  ;;  %v2421_v21 = vmax.f32 %v2389_v29, 0.0  ;;  %v7758_v57 = vld [vmem:[%s8964_s2 + $0x368] sm:$0xff]  }
 0x13d   : > { %v6770_v20 = vpop.f32.mrb[29].mxu1  ;;  %v6659_v1 = vadd.f32 %v6658_v42, %v6657_v23  ;;  %v6660_v26 = vpop.f32.mrb[30].mxu0  ;;  %v7760_v23 = vld [vmem:[%s8964_s2 + $0x328] sm:$0xff]  }
 0x13e   : > { %v2422_v37 = vmax.f32 %v2390_v36, 0.0  ;;  %v6771_v31 = vadd.f32 %v6770_v20, %v6769_v38  ;;  %v6772_v9 = vpop.f32.mrb[30].mxu1  ;;  %v6661_v7 = vpop.f32.mrb[31].mxu0  ;;  %7278 = vmatpush3.bf16.msra.mxu0 %v7751_v52  ;;  %v7759_v52 = vld [vmem:[%s8964_s2 + $0x3a8] sm:$0xff]  }
 0x13f   : > { %v6773_v46 = vpop.f32.mrb[31].mxu1  ;;  %7390 = vmatpush3.bf16.msra.mxu1 %v7752_v0  ;;  %v6662_v16 = vadd.f32 %v6661_v7, %v6660_v26  ;;  %7279 = vmatprep.subr.bf16.mxu0 %v7753_v14  ;;  %v7762_v7 = vld [vmem:[%s8964_s2 + $0x370] sm:$0xff]  }
 0x140   : > { %v6249_v13 = vpack.c.bf16 %v2422_v37, %v2421_v21  ;;  %v2301_v45 = vadd.f32 %v6771_v31, %v6659_v1  ;;  %v6774_v41 = vadd.f32 %v6773_v46, %v6772_v9  ;;  %3748 = vmatmul.mubr.bf16.gmra.mrb[136].mxu0 %v7779_v54  ;;  %7391 = vmatprep.subr.bf16.mxu1 %v7754_v51  ;;  %v7761_v9 = vld [vmem:[%s8964_s2 + $0x3f0] sm:$0xff]  }
 0x141   : > { %4005 = vmatmul.mubr.bf16.gmra.mrb[136].mxu1 %v7778_v24  ;;  %3755 = vmatprep.mubr.bf16.mxu0 %v8044_v44 }
 0x142   : > { %6541 = vst [vmem:[%s8504_s20 + $0x30] sm:$0xff] %v6249_v13   ;;  %v2391_v29 = vadd.f32 %v8478_v61, %v2301_v45  ;;  %v2304_v10 = vadd.f32 %v6774_v41, %v6662_v16  ;;  %4012 = vmatprep.mubr.bf16.mxu1 %v8032_v33  ;;  %7280 = vmatpush3.bf16.msra.mxu0 %v7755_v18  ;;  %v7763_v45 = vld [vmem:[%s8964_s2 + $0x3b0] sm:$0xff]   ;;  %v7780_v41 = vld [vmem:[%s7962_s14 + $0x3c] sm:$0xff]  }
 0x143   : > { %v6663_v0 = vpop.f32.mrb[32].mxu0  ;;  %7392 = vmatpush3.bf16.msra.mxu1 %v7756_v63  ;;  %7281 = vmatprep.subr.bf16.mxu0 %v7757_v39  ;;  %v7764_v16 = vld [vmem:[%s8964_s2 + $0x330] sm:$0xff]   ;;  %v7765_v63 = vld [vmem:[%s8964_s2 + $0x3f8] sm:$0xff]  }
 0x144   : > { %v2392_v24 = vadd.f32 %v8478_v61, %v2304_v10  ;;  %v6775_v36 = vpop.f32.mrb[32].mxu1  ;;  %v6664_v38 = vpop.f32.mrb[33].mxu0  ;;  %7393 = vmatprep.subr.bf16.mxu1 %v7758_v57  ;;  %v2423_v33 = vmax.f32 %v2391_v29, 0.0  ;;  %v7766_v39 = vld [vmem:[%s8964_s2 + $0x378] sm:$0xff]  }
 0x145   : > { %v6776_v14 = vpop.f32.mrb[33].mxu1  ;;  %v6665_v20 = vadd.f32 %v6664_v38, %v6663_v0  ;;  %v6666_v37 = vpop.f32.mrb[34].mxu0 }
 0x146   : > { %v2424_v42 = vmax.f32 %v2392_v24, 0.0  ;;  %v6777_v21 = vadd.f32 %v6776_v14, %v6775_v36  ;;  %v6778_v1 = vpop.f32.mrb[34].mxu1  ;;  %v6667_v31 = vpop.f32.mrb[35].mxu0  ;;  %7282 = vmatpush3.bf16.msra.mxu0 %v7759_v52  ;;  %v7767_v24 = vld [vmem:[%s8964_s2 + $0x3b8] sm:$0xff]  }
 0x147   : > { %v6779_v26 = vpop.f32.mrb[35].mxu1  ;;  %v6668_v18 = vadd.f32 %v6667_v31, %v6666_v37  ;;  %7394 = vmatpush3.bf16.msra.mxu1 %v7760_v23  ;;  %7283 = vmatprep.subr.bf16.mxu0 %v7761_v9  ;;  %v7768_v37 = vld [vmem:[%s8964_s2 + $0x338] sm:$0xff]  }
 0x148   : > { %v6254_v46 = vpack.c.bf16 %v2424_v42, %v2423_v33  ;;  %v2309_v51 = vadd.f32 %v6777_v21, %v6665_v20  ;;  %v6780_v13 = vadd.f32 %v6779_v26, %v6778_v1  ;;  %3756 = vmatmul.mubr.bf16.gmra.mrb[140].mxu0 %v7780_v41  ;;  %7395 = vmatprep.subr.bf16.mxu1 %v7762_v7  ;;  %v7781_v7 = vld [vmem:[%s7962_s14 + $0x48] sm:$0xff]  }
 0x149   : > { %4013 = vmatmul.mubr.bf16.gmra.mrb[140].mxu1 %v7779_v54  ;;  %3763 = vmatprep.mubr.bf16.mxu0 %v8063_v56 }
 0x14a   : > { %6542 = vst [vmem:[%s8504_s20 + $0x38] sm:$0xff] %v6254_v46   ;;  %v2393_v57 = vadd.f32 %v8478_v61, %v2309_v51  ;;  %v2312_v29 = vadd.f32 %v6780_v13, %v6668_v18  ;;  %4020 = vmatprep.mubr.bf16.mxu1 %v8044_v44  ;;  %7284 = vmatpush3.bf16.msra.mxu0 %v7763_v45 }
 0x14b   : > { %v6669_v10 = vpop.f32.mrb[36].mxu0  ;;  %7396 = vmatpush3.bf16.msra.mxu1 %v7764_v16  ;;  %7285 = vmatprep.subr.bf16.mxu0 %v7765_v63 }
 0x14c   : > { %v2394_v54 = vadd.f32 %v8478_v61, %v2312_v29  ;;  %v6781_v52 = vpop.f32.mrb[36].mxu1  ;;  %v6670_v0 = vpop.f32.mrb[37].mxu0  ;;  %7397 = vmatprep.subr.bf16.mxu1 %v7766_v39  ;;  %v2425_v23 = vmax.f32 %v2393_v57, 0.0 }
 0x14d   : > { %v6782_v36 = vpop.f32.mrb[37].mxu1  ;;  %v6671_v44 = vadd.f32 %v6670_v0, %v6669_v10  ;;  %v6672_v33 = vpop.f32.mrb[38].mxu0 }
 0x14e   : > { %v2426_v38 = vmax.f32 %v2394_v54, 0.0  ;;  %v6783_v14 = vadd.f32 %v6782_v36, %v6781_v52  ;;  %v6784_v42 = vpop.f32.mrb[38].mxu1  ;;  %v6673_v20 = vpop.f32.mrb[39].mxu0  ;;  %7286 = vmatpush3.bf16.msra.mxu0 %v7767_v24 }
 0x14f   : > { %v6785_v21 = vpop.f32.mrb[39].mxu1  ;;  %v6674_v26 = vadd.f32 %v6673_v20, %v6672_v33  ;;  %7398 = vmatpush3.bf16.msra.mxu1 %v7768_v37 }
 0x150   : > { %v6259_v1 = vpack.c.bf16 %v2426_v38, %v2425_v23  ;;  %v2317_v31 = vadd.f32 %v6783_v14, %v6671_v44  ;;  %v6786_v9 = vadd.f32 %v6785_v21, %v6784_v42  ;;  %3764 = vmatmul.mubr.bf16.gmra.mrb[144].mxu0 %v7781_v7  ;;  %v7782_v38 = vld [vmem:[%s7962_s14 + $0x54] sm:$0xff]  }
 0x151   : > { %4021 = vmatmul.mubr.bf16.gmra.mrb[144].mxu1 %v7780_v41  ;;  %3771 = vmatprep.mubr.bf16.mxu0 %v8081_v8 }
 0x152   : > { %6543 = vst [vmem:[%s8504_s20 + $0x40] sm:$0xff] %v6259_v1   ;;  %v2395_v46 = vadd.f32 %v8478_v61, %v2317_v31  ;;  %v2320_v51 = vadd.f32 %v6786_v9, %v6674_v26  ;;  %4028 = vmatprep.mubr.bf16.mxu1 %v8063_v56 }
 0x153   : > { %v6675_v13 = vpop.f32.mrb[40].mxu0 }
 0x154   : > { %v2396_v18 = vadd.f32 %v8478_v61, %v2320_v51  ;;  %v6787_v45 = vpop.f32.mrb[40].mxu1  ;;  %v6676_v16 = vpop.f32.mrb[41].mxu0  ;;  %v2427_v39 = vmax.f32 %v2395_v46, 0.0 }
 0x155   : > { %v6788_v63 = vpop.f32.mrb[41].mxu1  ;;  %v6677_v41 = vadd.f32 %v6676_v16, %v6675_v13  ;;  %v6678_v54 = vpop.f32.mrb[42].mxu0 }
 0x156   : > { %v2428_v57 = vmax.f32 %v2396_v18, 0.0  ;;  %v6789_v29 = vadd.f32 %v6788_v63, %v6787_v45  ;;  %v6790_v10 = vpop.f32.mrb[42].mxu1  ;;  %v6679_v52 = vpop.f32.mrb[43].mxu0  ;;  %v7783_v63 = vld [vmem:[%s7962_s14 + $0x60] sm:$0xff]  }
 0x157   : > { %v6791_v24 = vpop.f32.mrb[43].mxu1  ;;  %v6680_v56 = vadd.f32 %v6679_v52, %v6678_v54 }
 0x158   : > { %v6264_v0 = vpack.c.bf16 %v2428_v57, %v2427_v39  ;;  %v2325_v36 = vadd.f32 %v6789_v29, %v6677_v41  ;;  %v6792_v23 = vadd.f32 %v6791_v24, %v6790_v10  ;;  %3772 = vmatmul.mubr.bf16.gmra.mrb[148].mxu0 %v7782_v38 }
 0x159   : > { %4029 = vmatmul.mubr.bf16.gmra.mrb[148].mxu1 %v7781_v7  ;;  %3779 = vmatprep.mubr.bf16.mxu0 %v8095_v22 }
 0x15a   : > { %6544 = vst [vmem:[%s8504_s20 + $0x48] sm:$0xff] %v6264_v0   ;;  %v2397_v44 = vadd.f32 %v8478_v61, %v2325_v36  ;;  %v2328_v14 = vadd.f32 %v6792_v23, %v6680_v56  ;;  %4036 = vmatprep.mubr.bf16.mxu1 %v8081_v8 }
 0x15b   : > { %v6681_v42 = vpop.f32.mrb[44].mxu0 }
 0x15c   : > { %v2398_v33 = vadd.f32 %v8478_v61, %v2328_v14  ;;  %v6793_v20 = vpop.f32.mrb[44].mxu1  ;;  %v6682_v21 = vpop.f32.mrb[45].mxu0  ;;  %v2429_v1 = vmax.f32 %v2397_v44, 0.0 }
 0x15d   : > { %v6794_v37 = vpop.f32.mrb[45].mxu1  ;;  %v6683_v26 = vadd.f32 %v6682_v21, %v6681_v42  ;;  %v6684_v7 = vpop.f32.mrb[46].mxu0  ;;  %v7784_v21 = vld [vmem:[%s7962_s14 + $0x6c] sm:$0xff]  }
 0x15e   : > { %v2430_v31 = vmax.f32 %v2398_v33, 0.0  ;;  %v6795_v9 = vadd.f32 %v6794_v37, %v6793_v20  ;;  %v6796_v46 = vpop.f32.mrb[46].mxu1  ;;  %v6685_v51 = vpop.f32.mrb[47].mxu0 }
 0x15f   : > { %v6797_v18 = vpop.f32.mrb[47].mxu1  ;;  %v6686_v16 = vadd.f32 %v6685_v51, %v6684_v7 }
 0x160   : > { %v6269_v13 = vpack.c.bf16 %v2430_v31, %v2429_v1  ;;  %v2333_v45 = vadd.f32 %v6795_v9, %v6683_v26  ;;  %v6798_v8 = vadd.f32 %v6797_v18, %v6796_v46  ;;  %3780 = vmatmul.mubr.bf16.gmra.mrb[152].mxu0 %v7783_v63 }
 0x161   : > { %4037 = vmatmul.mubr.bf16.gmra.mrb[152].mxu1 %v7782_v38  ;;  %3787 = vmatprep.mubr.bf16.mxu0 %v8111_v34 }
 0x162   : > { %6545 = vst [vmem:[%s8504_s20 + $0x50] sm:$0xff] %v6269_v13   ;;  %v2399_v39 = vadd.f32 %v8478_v61, %v2333_v45  ;;  %v2336_v57 = vadd.f32 %v6798_v8, %v6686_v16  ;;  %4044 = vmatprep.mubr.bf16.mxu1 %v8095_v22 }
 0x163   : > { %v6687_v29 = vpop.f32.mrb[48].mxu0 }
 0x164   : > { %v2400_v41 = vadd.f32 %v8478_v61, %v2336_v57  ;;  %v6799_v54 = vpop.f32.mrb[48].mxu1  ;;  %v6688_v10 = vpop.f32.mrb[49].mxu0  ;;  %v2431_v24 = vmax.f32 %v2399_v39, 0.0 }
 0x165   : > { %v6800_v52 = vpop.f32.mrb[49].mxu1  ;;  %v6689_v36 = vadd.f32 %v6688_v10, %v6687_v29  ;;  %v6690_v23 = vpop.f32.mrb[50].mxu0 }
 0x166   : > { %v2432_v0 = vmax.f32 %v2400_v41, 0.0  ;;  %v6801_v56 = vadd.f32 %v6800_v52, %v6799_v54  ;;  %v6802_v38 = vpop.f32.mrb[50].mxu1  ;;  %v6691_v44 = vpop.f32.mrb[51].mxu0  ;;  %v7785_v54 = vld [vmem:[%s7962_s14 + $0x78] sm:$0xff]  }
 0x167   : > { %v6803_v14 = vpop.f32.mrb[51].mxu1  ;;  %v6692_v20 = vadd.f32 %v6691_v44, %v6690_v23 }
 0x168   : > { %v6274_v33 = vpack.c.bf16 %v2432_v0, %v2431_v24  ;;  %v2341_v42 = vadd.f32 %v6801_v56, %v6689_v36  ;;  %v6804_v22 = vadd.f32 %v6803_v14, %v6802_v38  ;;  %3788 = vmatmul.mubr.bf16.gmra.mrb[156].mxu0 %v7784_v21 }
 0x169   : > { %4045 = vmatmul.mubr.bf16.gmra.mrb[156].mxu1 %v7783_v63  ;;  %3795 = vmatprep.mubr.bf16.mxu0 %v8132_v50 }
 0x16a   : > { %6546 = vst [vmem:[%s8504_s20 + $0x58] sm:$0xff] %v6274_v33   ;;  %v2401_v37 = vadd.f32 %v8478_v61, %v2341_v42  ;;  %v2344_v1 = vadd.f32 %v6804_v22, %v6692_v20  ;;  %4052 = vmatprep.mubr.bf16.mxu1 %v8111_v34 }
 0x16b   : > { %v6693_v26 = vpop.f32.mrb[52].mxu0 }
 0x16c   : > { %v2402_v31 = vadd.f32 %v8478_v61, %v2344_v1  ;;  %v6805_v9 = vpop.f32.mrb[52].mxu1  ;;  %v6694_v7 = vpop.f32.mrb[53].mxu0  ;;  %v2433_v51 = vmax.f32 %v2401_v37, 0.0 }
 0x16d   : > { %v6806_v46 = vpop.f32.mrb[53].mxu1  ;;  %v6695_v13 = vadd.f32 %v6694_v7, %v6693_v26  ;;  %v6696_v16 = vpop.f32.mrb[54].mxu0  ;;  %v7786_v26 = vld [vmem:[%s7962_s14 + $0x84] sm:$0xff]  }
 0x16e   : > { %v2434_v18 = vmax.f32 %v2402_v31, 0.0  ;;  %v6807_v45 = vadd.f32 %v6806_v46, %v6805_v9  ;;  %v6808_v8 = vpop.f32.mrb[54].mxu1  ;;  %v6697_v63 = vpop.f32.mrb[55].mxu0 }
 0x16f   : > { %v6809_v39 = vpop.f32.mrb[55].mxu1  ;;  %v6698_v29 = vadd.f32 %v6697_v63, %v6696_v16 }
 0x170   : > { %v6279_v57 = vpack.c.bf16 %v2434_v18, %v2433_v51  ;;  %v2349_v41 = vadd.f32 %v6807_v45, %v6695_v13  ;;  %v6810_v34 = vadd.f32 %v6809_v39, %v6808_v8  ;;  %3796 = vmatmul.mubr.bf16.gmra.mrb[160].mxu0 %v7785_v54 }
 0x171   : > { %4053 = vmatmul.mubr.bf16.gmra.mrb[160].mxu1 %v7784_v21  ;;  %3803 = vmatprep.mubr.bf16.mxu0 %v8159_v4 }
 0x172   : > { %6547 = vst [vmem:[%s8504_s20 + $0x60] sm:$0xff] %v6279_v57   ;;  %v2403_v10 = vadd.f32 %v8478_v61, %v2349_v41  ;;  %v2352_v52 = vadd.f32 %v6810_v34, %v6698_v29  ;;  %4060 = vmatprep.mubr.bf16.mxu1 %v8132_v50 }
 0x173   : > { %v6699_v0 = vpop.f32.mrb[56].mxu0 }
 0x174   : > { %v2404_v24 = vadd.f32 %v8478_v61, %v2352_v52  ;;  %v6811_v36 = vpop.f32.mrb[56].mxu1  ;;  %v6700_v56 = vpop.f32.mrb[57].mxu0  ;;  %v2435_v38 = vmax.f32 %v2403_v10, 0.0 }
 0x175   : > { %v6812_v23 = vpop.f32.mrb[57].mxu1  ;;  %v6701_v14 = vadd.f32 %v6700_v56, %v6699_v0  ;;  %v6702_v42 = vpop.f32.mrb[58].mxu0 }
 0x176   : > { %v2436_v44 = vmax.f32 %v2404_v24, 0.0  ;;  %v6813_v33 = vadd.f32 %v6812_v23, %v6811_v36  ;;  %v6814_v20 = vpop.f32.mrb[58].mxu1  ;;  %v6703_v22 = vpop.f32.mrb[59].mxu0  ;;  %v7787_v24 = vld [vmem:[%s7962_s14 + $0x90] sm:$0xff]  }
 0x177   : > { %v6815_v21 = vpop.f32.mrb[59].mxu1  ;;  %v6704_v31 = vadd.f32 %v6703_v22, %v6702_v42 }
 0x178   : > { %v6284_v37 = vpack.c.bf16 %v2436_v44, %v2435_v38  ;;  %v2357_v1 = vadd.f32 %v6813_v33, %v6701_v14  ;;  %v6816_v50 = vadd.f32 %v6815_v21, %v6814_v20  ;;  %3804 = vmatmul.mubr.bf16.gmra.mrb[164].mxu0 %v7786_v26 }
 0x179   : > { %4061 = vmatmul.mubr.bf16.gmra.mrb[164].mxu1 %v7785_v54  ;;  %3811 = vmatprep.mubr.bf16.mxu0 %v8167_v17 }
 0x17a   : > { %6548 = vst [vmem:[%s8504_s20 + $0x68] sm:$0xff] %v6284_v37   ;;  %v2405_v9 = vadd.f32 %v8478_v61, %v2357_v1  ;;  %v2360_v7 = vadd.f32 %v6816_v50, %v6704_v31  ;;  %4068 = vmatprep.mubr.bf16.mxu1 %v8159_v4 }
 0x17b   : > { %v6705_v51 = vpop.f32.mrb[60].mxu0 }
 0x17c   : > { %v2406_v46 = vadd.f32 %v8478_v61, %v2360_v7  ;;  %v6817_v18 = vpop.f32.mrb[60].mxu1  ;;  %v6706_v13 = vpop.f32.mrb[61].mxu0  ;;  %v2437_v16 = vmax.f32 %v2405_v9, 0.0  ;;  %v7788_v7 = vld [vmem:[%s7962_s14 + $0x9c] sm:$0xff]  }
 0x17d   : > { %v6818_v45 = vpop.f32.mrb[61].mxu1  ;;  %v6707_v63 = vadd.f32 %v6706_v13, %v6705_v51  ;;  %v6708_v57 = vpop.f32.mrb[62].mxu0 }
 0x17e   : > { %v2438_v8 = vmax.f32 %v2406_v46, 0.0  ;;  %v6819_v39 = vadd.f32 %v6818_v45, %v6817_v18  ;;  %v6820_v41 = vpop.f32.mrb[62].mxu1  ;;  %v6709_v29 = vpop.f32.mrb[63].mxu0 }
 0x17f   : > { %v6821_v34 = vpop.f32.mrb[63].mxu1  ;;  %v6710_v52 = vadd.f32 %v6709_v29, %v6708_v57 }
 0x180   : > { %v6289_v54 = vpack.c.bf16 %v2438_v8, %v2437_v16  ;;  %v2365_v10 = vadd.f32 %v6819_v39, %v6707_v63  ;;  %v6822_v4 = vadd.f32 %v6821_v34, %v6820_v41  ;;  %3812 = vmatmul.mubr.bf16.gmra.mrb[168].mxu0 %v7787_v24 }
 0x181   : > { %4069 = vmatmul.mubr.bf16.gmra.mrb[168].mxu1 %v7786_v26  ;;  %3819 = vmatprep.mubr.bf16.mxu0 %v8180_v28 }
 0x182   : > { %6549 = vst [vmem:[%s8504_s20 + $0x70] sm:$0xff] %v6289_v54   ;;  %v2407_v0 = vadd.f32 %v8478_v61, %v2365_v10  ;;  %v2368_v36 = vadd.f32 %v6822_v4, %v6710_v52  ;;  %4076 = vmatprep.mubr.bf16.mxu1 %v8167_v17  ;;  %v7769_v52 = vld [vmem:[%s8156_s27 + $0xc] sm:$0xff]  }
 0x183   : > { %v6839_v23 = vpop.f32.mrb[64].mxu0 }
 0x184   : > { %v2408_v56 = vadd.f32 %v8478_v61, %v2368_v36  ;;  %v6951_v38 = vpop.f32.mrb[64].mxu1  ;;  %v6840_v44 = vpop.f32.mrb[65].mxu0  ;;  %v2439_v33 = vmax.f32 %v2407_v0, 0.0  ;;  %v7789_v0 = vld [vmem:[%s7962_s14 + $0xa8] sm:$0xff]   ;;  %v8727_v36 = vld [vmem:[%s8965_s3] ss:$0 sm:$0xff] }
 0x185   : > { %v6952_v14 = vpop.f32.mrb[65].mxu1  ;;  %v6841_v20 = vadd.f32 %v6840_v44, %v6839_v23  ;;  %v6842_v21 = vpop.f32.mrb[66].mxu0  ;;  %v972_v44 = vshll.u32 %v7769_v52, 16 }
 0x186   : > { %v2440_v42 = vmax.f32 %v2408_v56, 0.0  ;;  %v6953_v22 = vadd.f32 %v6952_v14, %v6951_v38  ;;  %v6954_v37 = vpop.f32.mrb[66].mxu1  ;;  %v6843_v1 = vpop.f32.mrb[67].mxu0  ;;  %v7770_v38 = vld [vmem:[%s8156_s27 + $0x14] ss:$0 sps:$4 sm:$0x11]  }
 0x187   : > { %v6955_v31 = vpop.f32.mrb[67].mxu1  ;;  %v6844_v9 = vadd.f32 %v6843_v1, %v6842_v21 }
 0x188   : > { %v6294_v50 = vpack.c.bf16 %v2440_v42, %v2439_v33  ;;  %v3121_v26 = vadd.f32 %v6953_v22, %v6841_v20  ;;  %v6956_v17 = vadd.f32 %v6955_v31, %v6954_v37  ;;  %3820 = vmatmul.mubr.bf16.gmra.mrb[172].mxu0 %v7788_v7 }
 0x189   : > { %4077 = vmatmul.mubr.bf16.gmra.mrb[172].mxu1 %v7787_v24  ;;  %3827 = vmatprep.mubr.bf16.mxu0 %v8189_v40 }
 0x18a   : > { %6550 = vst [vmem:[%s8504_s20 + $0x78] sm:$0xff] %v6294_v50   ;;  %v3247_v46 = vadd.f32 %v8478_v61, %v3121_v26  ;;  %v3124_v51 = vadd.f32 %v6956_v17, %v6844_v9  ;;  %4084 = vmatprep.mubr.bf16.mxu1 %v8180_v28 }
 0x18b   : > { %v6845_v13 = vpop.f32.mrb[68].mxu0 }
 0x18c   : > { %v3248_v18 = vadd.f32 %v8478_v61, %v3124_v51  ;;  %v6957_v45 = vpop.f32.mrb[68].mxu1  ;;  %v6846_v16 = vpop.f32.mrb[69].mxu0  ;;  %v3279_v63 = vmax.f32 %v3247_v46, 0.0  ;;  %v977_v46 = vshll.u32 %v7770_v38, 16 }
 0x18d   : > { %v6958_v8 = vpop.f32.mrb[69].mxu1  ;;  %v6847_v57 = vadd.f32 %v6846_v16, %v6845_v13  ;;  %v6848_v29 = vpop.f32.mrb[70].mxu0  ;;  %v7791_v16 = vld [vmem:[%s7962_s14 + $0xb4] sm:$0xff]  }
 0x18e   : > { %v3280_v39 = vmax.f32 %v3248_v18, 0.0  ;;  %v6959_v41 = vadd.f32 %v6958_v8, %v6957_v45  ;;  %v6960_v34 = vpop.f32.mrb[70].mxu1  ;;  %v6849_v54 = vpop.f32.mrb[71].mxu0 }
 0x18f   : > { %v6961_v10 = vpop.f32.mrb[71].mxu1  ;;  %v6850_v24 = vadd.f32 %v6849_v54, %v6848_v29 }
 0x190   : > { %v6299_v4 = vpack.c.bf16 %v3280_v39, %v3279_v63  ;;  %v3129_v28 = vadd.f32 %v6959_v41, %v6847_v57  ;;  %v6962_v61 = vadd.f32 %v6961_v10, %v6960_v34  ;;  %3828 = vmatmul.mubr.bf16.gmra.mrb[176].mxu0 %v7789_v0  ;;  %v979_v57 = vrot.slane %v977_v46, 1 }
 0x191   : > { %4085 = vmatmul.mubr.bf16.gmra.mrb[176].mxu1 %v7788_v7  ;;  %3835 = vmatprep.mubr.bf16.mxu0 %v8196_v49  ;;  %v970_v7 = vshrl.u32 %v7769_v52, 16 }
 0x192   : > { %6551 = vst [vmem:[%s8504_s20 + $0x80] sm:$0xff] %v6299_v4   ;;  %v3249_v56 = vadd.f32 %v8727_v36, %v3129_v28  ;;  %v3132_v23 = vadd.f32 %v6962_v61, %v6850_v24  ;;  %4092 = vmatprep.mubr.bf16.mxu1 %v8189_v40  ;;  %v974_v40 = vrot.slane %v972_v44, 1 }
 0x193   : > { %v6851_v33 = vpop.f32.mrb[72].mxu0 }
 0x194   : > { %v3250_v14 = vadd.f32 %v8727_v36, %v3132_v23  ;;  %v6963_v42 = vpop.f32.mrb[72].mxu1  ;;  %v6852_v20 = vpop.f32.mrb[73].mxu0  ;;  %v3281_v21 = vmax.f32 %v3249_v56, 0.0  ;;  %v975_v39 = vor.u32 %v974_v40, %v970_v7 }
 0x195   : > { %v6964_v22 = vpop.f32.mrb[73].mxu1  ;;  %v6853_v1 = vadd.f32 %v6852_v20, %v6851_v33  ;;  %v6854_v50 = vpop.f32.mrb[74].mxu0 }
 0x196   : > { %v3282_v37 = vmax.f32 %v3250_v14, 0.0  ;;  %v6965_v31 = vadd.f32 %v6964_v22, %v6963_v42  ;;  %v6966_v26 = vpop.f32.mrb[74].mxu1  ;;  %v6855_v9 = vpop.f32.mrb[75].mxu0  ;;  %v7792_v42 = vld [vmem:[%s8156_s27] sm:$0xff]  }
 0x197   : > { %v6967_v17 = vpop.f32.mrb[75].mxu1  ;;  %v6856_v13 = vadd.f32 %v6855_v9, %v6854_v50 }
 0x198   : > { %v6304_v51 = vpack.c.bf16 %v3282_v37, %v3281_v21  ;;  %v3137_v18 = vadd.f32 %v6965_v31, %v6853_v1  ;;  %v6968_v45 = vadd.f32 %v6967_v17, %v6966_v26  ;;  %3836 = vmatmul.mubr.bf16.gmra.mrb[180].mxu0 %v7791_v16  ;;  %v7771_v26 = vld [vmem:[%s8156_s27 + $0xc] sm:$0xff]  }
 0x199   : > { %4093 = vmatmul.mubr.bf16.gmra.mrb[180].mxu1 %v7789_v0  ;;  %3843 = vmatprep.mubr.bf16.mxu0 %v8209_v2 }
 0x19a   : > { %6552 = vst [vmem:[%s8504_s20 + $0x88] sm:$0xff] %v6304_v51   ;;  %v3251_v8 = vadd.f32 %v8727_v36, %v3137_v18  ;;  %v3140_v63 = vadd.f32 %v6968_v45, %v6856_v13  ;;  %4100 = vmatprep.mubr.bf16.mxu1 %v8196_v49  ;;  %v980_v49 = vsel %vm710_vm0, %v975_v39, %v979_v57 }
 0x19b   : > { %v6857_v29 = vpop.f32.mrb[76].mxu0 }
 0x19c   : > { %v3252_v41 = vadd.f32 %v8727_v36, %v3140_v63  ;;  %v6969_v34 = vpop.f32.mrb[76].mxu1  ;;  %v6858_v54 = vpop.f32.mrb[77].mxu0  ;;  %v3283_v52 = vmax.f32 %v3251_v8, 0.0 }
 0x19d   : > { %v6970_v10 = vpop.f32.mrb[77].mxu1  ;;  %v6859_v28 = vadd.f32 %v6858_v54, %v6857_v29  ;;  %v6860_v61 = vpop.f32.mrb[78].mxu0 }
 0x19e   : > { %v3284_v4 = vmax.f32 %v3252_v41, 0.0  ;;  %v6971_v24 = vadd.f32 %v6970_v10, %v6969_v34  ;;  %v6972_v0 = vpop.f32.mrb[78].mxu1  ;;  %v6861_v56 = vpop.f32.mrb[79].mxu0 }
 0x19f   : > { %v6973_v23 = vpop.f32.mrb[79].mxu1  ;;  %v6862_v14 = vadd.f32 %v6861_v56, %v6860_v61 }
 0x1a0   : > { %v6309_v38 = vpack.c.bf16 %v3284_v4, %v3283_v52  ;;  %v3145_v44 = vadd.f32 %v6971_v24, %v6859_v28  ;;  %v6974_v33 = vadd.f32 %v6973_v23, %v6972_v0  ;;  %3844 = vmatmul.mubr.bf16.gmra.mrb[184].mxu0 %v7792_v42 }
 0x1a1   : > { %4101 = vmatmul.mubr.bf16.gmra.mrb[184].mxu1 %v7791_v16  ;;  %3851 = vmatprep.mubr.bf16.mxu0 %v980_v49 }
 0x1a2   : > { %6553 = vst [vmem:[%s8504_s20 + $0x90] sm:$0xff] %v6309_v38   ;;  %v3253_v20 = vadd.f32 %v8727_v36, %v3145_v44  ;;  %v3148_v22 = vadd.f32 %v6974_v33, %v6862_v14  ;;  %4108 = vmatprep.mubr.bf16.mxu1 %v8209_v2 }
 0x1a3   : > { %v6863_v37 = vpop.f32.mrb[80].mxu0 }
 0x1a4   : > { %v3254_v21 = vadd.f32 %v8727_v36, %v3148_v22  ;;  %v6975_v1 = vpop.f32.mrb[80].mxu1  ;;  %v6864_v31 = vpop.f32.mrb[81].mxu0  ;;  %v3285_v9 = vmax.f32 %v3253_v20, 0.0 }
 0x1a5   : > { %v6976_v50 = vpop.f32.mrb[81].mxu1  ;;  %v6865_v7 = vadd.f32 %v6864_v31, %v6863_v37  ;;  %v6866_v46 = vpop.f32.mrb[82].mxu0 }
 0x1a6   : > { %v3286_v17 = vmax.f32 %v3254_v21, 0.0  ;;  %v6977_v40 = vadd.f32 %v6976_v50, %v6975_v1  ;;  %v6978_v51 = vpop.f32.mrb[82].mxu1  ;;  %v6867_v18 = vpop.f32.mrb[83].mxu0 }
 0x1a7   : > { %v6979_v13 = vpop.f32.mrb[83].mxu1  ;;  %v6868_v8 = vadd.f32 %v6867_v18, %v6866_v46 }
 0x1a8   : > { %v6314_v45 = vpack.c.bf16 %v3286_v17, %v3285_v9  ;;  %v3153_v16 = vadd.f32 %v6977_v40, %v6865_v7  ;;  %v6980_v2 = vadd.f32 %v6979_v13, %v6978_v51  ;;  %3852 = vmatmul.mubr.bf16.gmra.mrb[188].mxu0 %v7771_v26 }
 0x1a9   : > { %4109 = vmatmul.mubr.bf16.gmra.mrb[188].mxu1 %v7792_v42  ;;  %4601 = vmatprep.mubr.bf16.mxu0 %v8239_v55 }
 0x1aa   : > { %6554 = vst [vmem:[%s8504_s20 + $0x98] sm:$0xff] %v6314_v45   ;;  %v3255_v63 = vadd.f32 %v8727_v36, %v3153_v16  ;;  %v3156_v39 = vadd.f32 %v6980_v2, %v6868_v8  ;;  %4858 = vmatprep.mubr.bf16.mxu1 %v8218_v25 }
 0x1ab   : > { %v6869_v41 = vpop.f32.mrb[84].mxu0 }
 0x1ac   : > { %v3256_v57 = vadd.f32 %v8727_v36, %v3156_v39  ;;  %v6981_v29 = vpop.f32.mrb[84].mxu1  ;;  %v6870_v34 = vpop.f32.mrb[85].mxu0  ;;  %v3287_v10 = vmax.f32 %v3255_v63, 0.0 }
 0x1ad   : > { %v6982_v54 = vpop.f32.mrb[85].mxu1  ;;  %v6871_v4 = vadd.f32 %v6870_v34, %v6869_v41  ;;  %v6872_v24 = vpop.f32.mrb[86].mxu0 }
 0x1ae   : > { %v3288_v52 = vmax.f32 %v3256_v57, 0.0  ;;  %v6983_v28 = vadd.f32 %v6982_v54, %v6981_v29  ;;  %v6984_v61 = vpop.f32.mrb[86].mxu1  ;;  %v6873_v0 = vpop.f32.mrb[87].mxu0 }
 0x1af   : > { %v6985_v56 = vpop.f32.mrb[87].mxu1  ;;  %v6874_v38 = vadd.f32 %v6873_v0, %v6872_v24 }
 0x1b0   : > { %v6319_v23 = vpack.c.bf16 %v3288_v52, %v3287_v10  ;;  %v3161_v49 = vadd.f32 %v6983_v28, %v6871_v4  ;;  %v6986_v44 = vadd.f32 %v6985_v56, %v6984_v61  ;;  %4602 = vmatmul.mubr.bf16.vlgmr.msra.gmra.mrb[192].mxu0 %v8266_v12 }
 0x1b1   : > { %4859 = vmatmul.mubr.bf16.vlgmr.msra.gmra.mrb[192].mxu1 %v8233_v48  ;;  %4609 = vmatprep.mubr.bf16.mxu0 %v8275_v19 }
 0x1b2   : > { %6555 = vst [vmem:[%s8504_s20 + $0xa0] sm:$0xff] %v6319_v23   ;;  %v3257_v25 = vadd.f32 %v8727_v36, %v3161_v49  ;;  %v3164_v14 = vadd.f32 %v6986_v44, %v6874_v38  ;;  %4866 = vmatprep.mubr.bf16.mxu1 %v8239_v55 }
 0x1b3   : > { %v6875_v42 = vpop.f32.mrb[88].mxu0 }
 0x1b4   : > { %v3258_v33 = vadd.f32 %v8727_v36, %v3164_v14  ;;  %v6987_v20 = vpop.f32.mrb[88].mxu1  ;;  %v6876_v22 = vpop.f32.mrb[89].mxu0  ;;  %v3289_v37 = vmax.f32 %v3257_v25, 0.0 }
 0x1b5   : > { %v6988_v21 = vpop.f32.mrb[89].mxu1  ;;  %v6877_v31 = vadd.f32 %v6876_v22, %v6875_v42  ;;  %v6878_v48 = vpop.f32.mrb[90].mxu0 }
 0x1b6   : > { %v3290_v1 = vmax.f32 %v3258_v33, 0.0  ;;  %v6989_v50 = vadd.f32 %v6988_v21, %v6987_v20  ;;  %v6990_v26 = vpop.f32.mrb[90].mxu1  ;;  %v6879_v9 = vpop.f32.mrb[91].mxu0 }
 0x1b7   : > { %v6991_v17 = vpop.f32.mrb[91].mxu1  ;;  %v6880_v46 = vadd.f32 %v6879_v9, %v6878_v48 }
 0x1b8   : > { %v6324_v7 = vpack.c.bf16 %v3290_v1, %v3289_v37  ;;  %v3169_v40 = vadd.f32 %v6989_v50, %v6877_v31  ;;  %v6992_v51 = vadd.f32 %v6991_v17, %v6990_v26  ;;  %4610 = vmatmul.mubr.bf16.gmra.mrb[196].mxu0 %v8303_v43 }
 0x1b9   : > { %4867 = vmatmul.mubr.bf16.gmra.mrb[196].mxu1 %v8266_v12  ;;  %4617 = vmatprep.mubr.bf16.mxu0 %v8308_v47 }
 0x1ba   : > { %6556 = vst [vmem:[%s8504_s20 + $0xa8] sm:$0xff] %v6324_v7   ;;  %v3259_v55 = vadd.f32 %v8727_v36, %v3169_v40  ;;  %v3172_v18 = vadd.f32 %v6992_v51, %v6880_v46  ;;  %4874 = vmatprep.mubr.bf16.mxu1 %v8275_v19 }
 0x1bb   : > { %v6881_v45 = vpop.f32.mrb[92].mxu0 }
 0x1bc   : > { %v3260_v13 = vadd.f32 %v8727_v36, %v3172_v18  ;;  %v6993_v16 = vpop.f32.mrb[92].mxu1  ;;  %v6882_v8 = vpop.f32.mrb[93].mxu0  ;;  %v3291_v63 = vmax.f32 %v3259_v55, 0.0 }
 0x1bd   : > { %v6994_v2 = vpop.f32.mrb[93].mxu1  ;;  %v6883_v57 = vadd.f32 %v6882_v8, %v6881_v45  ;;  %v6884_v12 = vpop.f32.mrb[94].mxu0 }
 0x1be   : > { %v3292_v39 = vmax.f32 %v3260_v13, 0.0  ;;  %v6995_v41 = vadd.f32 %v6994_v2, %v6993_v16  ;;  %v6996_v29 = vpop.f32.mrb[94].mxu1  ;;  %v6885_v34 = vpop.f32.mrb[95].mxu0 }
 0x1bf   : > { %v6997_v54 = vpop.f32.mrb[95].mxu1  ;;  %v6886_v4 = vadd.f32 %v6885_v34, %v6884_v12 }
 0x1c0   : > { %v6329_v10 = vpack.c.bf16 %v3292_v39, %v3291_v63  ;;  %v3177_v52 = vadd.f32 %v6995_v41, %v6883_v57  ;;  %v6998_v28 = vadd.f32 %v6997_v54, %v6996_v29  ;;  %4618 = vmatmul.mubr.bf16.gmra.mrb[200].mxu0 %v8331_v6 }
 0x1c1   : > { %4875 = vmatmul.mubr.bf16.gmra.mrb[200].mxu1 %v8303_v43  ;;  %4625 = vmatprep.mubr.bf16.mxu0 %v8338_v11 }
 0x1c2   : > { %6557 = vst [vmem:[%s8504_s20 + $0xb0] sm:$0xff] %v6329_v10   ;;  %v3261_v19 = vadd.f32 %v8727_v36, %v3177_v52  ;;  %v3180_v24 = vadd.f32 %v6998_v28, %v6886_v4  ;;  %4882 = vmatprep.mubr.bf16.mxu1 %v8308_v47 }
 0x1c3   : > { %v6887_v0 = vpop.f32.mrb[96].mxu0 }
 0x1c4   : > { %v3262_v61 = vadd.f32 %v8727_v36, %v3180_v24  ;;  %v6999_v56 = vpop.f32.mrb[96].mxu1  ;;  %v6888_v23 = vpop.f32.mrb[97].mxu0  ;;  %v3293_v38 = vmax.f32 %v3261_v19, 0.0 }
 0x1c5   : > { %v7000_v49 = vpop.f32.mrb[97].mxu1  ;;  %v6889_v25 = vadd.f32 %v6888_v23, %v6887_v0  ;;  %v6890_v43 = vpop.f32.mrb[98].mxu0 }
 0x1c6   : > { %v3294_v44 = vmax.f32 %v3262_v61, 0.0  ;;  %v7001_v14 = vadd.f32 %v7000_v49, %v6999_v56  ;;  %v7002_v33 = vpop.f32.mrb[98].mxu1  ;;  %v6891_v42 = vpop.f32.mrb[99].mxu0 }
 0x1c7   : > { %v7003_v20 = vpop.f32.mrb[99].mxu1  ;;  %v6892_v37 = vadd.f32 %v6891_v42, %v6890_v43 }
 0x1c8   : > { %v6334_v22 = vpack.c.bf16 %v3294_v44, %v3293_v38  ;;  %v3185_v21 = vadd.f32 %v7001_v14, %v6889_v25  ;;  %v7004_v1 = vadd.f32 %v7003_v20, %v7002_v33  ;;  %4626 = vmatmul.mubr.bf16.gmra.mrb[204].mxu0 %v8348_v30 }
 0x1c9   : > { %4883 = vmatmul.mubr.bf16.gmra.mrb[204].mxu1 %v8331_v6  ;;  %4633 = vmatprep.mubr.bf16.mxu0 %v8352_v32 }
 0x1ca   : > { %6558 = vst [vmem:[%s8504_s20 + $0xb8] sm:$0xff] %v6334_v22   ;;  %v3263_v47 = vadd.f32 %v8727_v36, %v3185_v21  ;;  %v3188_v31 = vadd.f32 %v7004_v1, %v6892_v37  ;;  %4890 = vmatprep.mubr.bf16.mxu1 %v8338_v11 }
 0x1cb   : > { %v6893_v48 = vpop.f32.mrb[100].mxu0 }
 0x1cc   : > { %v3264_v50 = vadd.f32 %v8727_v36, %v3188_v31  ;;  %v7005_v26 = vpop.f32.mrb[100].mxu1  ;;  %v6894_v9 = vpop.f32.mrb[101].mxu0  ;;  %v3295_v7 = vmax.f32 %v3263_v47, 0.0 }
 0x1cd   : > { %v7006_v17 = vpop.f32.mrb[101].mxu1  ;;  %v6895_v46 = vadd.f32 %v6894_v9, %v6893_v48  ;;  %v6896_v6 = vpop.f32.mrb[102].mxu0 }
 0x1ce   : > { %v3296_v40 = vmax.f32 %v3264_v50, 0.0  ;;  %v7007_v51 = vadd.f32 %v7006_v17, %v7005_v26  ;;  %v7008_v55 = vpop.f32.mrb[102].mxu1  ;;  %v6897_v18 = vpop.f32.mrb[103].mxu0  ;;  %v9000_v26 = vld [vmem:[#allocation3_spill] sm:$0xff] }
 0x1cf   : > { %v7009_v13 = vpop.f32.mrb[103].mxu1  ;;  %v6898_v8 = vadd.f32 %v6897_v18, %v6896_v6 }
 0x1d0   : > { %v6339_v45 = vpack.c.bf16 %v3296_v40, %v3295_v7  ;;  %v3193_v16 = vadd.f32 %v7007_v51, %v6895_v46  ;;  %v7010_v2 = vadd.f32 %v7009_v13, %v7008_v55  ;;  %4634 = vmatmul.mubr.bf16.gmra.mrb[208].mxu0 %v8373_v58 }
 0x1d1   : > { %4891 = vmatmul.mubr.bf16.gmra.mrb[208].mxu1 %v8348_v30  ;;  %4641 = vmatprep.mubr.bf16.mxu0 %v8378_v62 }
 0x1d2   : > { %6559 = vst [vmem:[%s8504_s20 + $0xc0] sm:$0xff] %v6339_v45   ;;  %v3265_v11 = vadd.f32 %v8727_v36, %v3193_v16  ;;  %v3196_v63 = vadd.f32 %v7010_v2, %v6898_v8  ;;  %4898 = vmatprep.mubr.bf16.mxu1 %v8352_v32 }
 0x1d3   : > { %v6899_v57 = vpop.f32.mrb[104].mxu0 }
 0x1d4   : > { %v3266_v39 = vadd.f32 %v8727_v36, %v3196_v63  ;;  %v7011_v41 = vpop.f32.mrb[104].mxu1  ;;  %v6900_v12 = vpop.f32.mrb[105].mxu0  ;;  %v3297_v34 = vmax.f32 %v3265_v11, 0.0 }
 0x1d5   : > { %v7012_v29 = vpop.f32.mrb[105].mxu1  ;;  %v6901_v10 = vadd.f32 %v6900_v12, %v6899_v57  ;;  %v6902_v30 = vpop.f32.mrb[106].mxu0 }
 0x1d6   : > { %v3298_v54 = vmax.f32 %v3266_v39, 0.0  ;;  %v7013_v52 = vadd.f32 %v7012_v29, %v7011_v41  ;;  %v7014_v4 = vpop.f32.mrb[106].mxu1  ;;  %v6903_v28 = vpop.f32.mrb[107].mxu0  ;;  %v9002_v41 = vld [vmem:[#allocation5_spill] sm:$0xff] }
 0x1d7   : > { %v7015_v19 = vpop.f32.mrb[107].mxu1  ;;  %v6904_v0 = vadd.f32 %v6903_v28, %v6902_v30 }
 0x1d8   : > { %v6344_v24 = vpack.c.bf16 %v3298_v54, %v3297_v34  ;;  %v3201_v61 = vadd.f32 %v7013_v52, %v6901_v10  ;;  %v7016_v56 = vadd.f32 %v7015_v19, %v7014_v4  ;;  %4642 = vmatmul.mubr.bf16.gmra.mrb[212].mxu0 %v8400_v27 }
 0x1d9   : > { %4899 = vmatmul.mubr.bf16.gmra.mrb[212].mxu1 %v8373_v58  ;;  %4649 = vmatprep.mubr.bf16.mxu0 %v8406_v35 }
 0x1da   : > { %6560 = vst [vmem:[%s8504_s20 + $0xc8] sm:$0xff] %v6344_v24   ;;  %v3267_v32 = vadd.f32 %v8727_v36, %v3201_v61  ;;  %v3204_v23 = vadd.f32 %v7016_v56, %v6904_v0  ;;  %4906 = vmatprep.mubr.bf16.mxu1 %v8378_v62 }
 0x1db   : > { %v6905_v38 = vpop.f32.mrb[108].mxu0 }
 0x1dc   : > { %v3268_v49 = vadd.f32 %v8727_v36, %v3204_v23  ;;  %v7017_v44 = vpop.f32.mrb[108].mxu1  ;;  %v6906_v25 = vpop.f32.mrb[109].mxu0  ;;  %v3299_v43 = vmax.f32 %v3267_v32, 0.0 }
 0x1dd   : > { %v7018_v14 = vpop.f32.mrb[109].mxu1  ;;  %v6907_v42 = vadd.f32 %v6906_v25, %v6905_v38  ;;  %v6908_v58 = vpop.f32.mrb[110].mxu0  ;;  %v9004_v25 = vld [vmem:[#allocation7_spill] sm:$0xff] }
 0x1de   : > { %v3300_v33 = vmax.f32 %v3268_v49, 0.0  ;;  %v7019_v20 = vadd.f32 %v7018_v14, %v7017_v44  ;;  %v7020_v22 = vpop.f32.mrb[110].mxu1  ;;  %v6909_v21 = vpop.f32.mrb[111].mxu0  ;;  %v9003_v49 = vld [vmem:[#allocation6_spill] sm:$0xff] }
 0x1df   : > { %v7021_v37 = vpop.f32.mrb[111].mxu1  ;;  %v6910_v31 = vadd.f32 %v6909_v21, %v6908_v58 }
 0x1e0   : > { %v6349_v1 = vpack.c.bf16 %v3300_v33, %v3299_v43  ;;  %v3209_v47 = vadd.f32 %v7019_v20, %v6907_v42  ;;  %v7022_v50 = vadd.f32 %v7021_v37, %v7020_v22  ;;  %4650 = vmatmul.mubr.bf16.gmra.mrb[216].mxu0 %v8417_v59 }
 0x1e1   : > { %4907 = vmatmul.mubr.bf16.gmra.mrb[216].mxu1 %v8400_v27  ;;  %4657 = vmatprep.mubr.bf16.mxu0 %v9000_v26 }
 0x1e2   : > { %6561 = vst [vmem:[%s8504_s20 + $0xd0] sm:$0xff] %v6349_v1   ;;  %v3269_v62 = vadd.f32 %v8727_v36, %v3209_v47  ;;  %v3212_v48 = vadd.f32 %v7022_v50, %v6910_v31  ;;  %4914 = vmatprep.mubr.bf16.mxu1 %v8406_v35  ;;  %v9001_v35 = vld [vmem:[#allocation4_spill] sm:$0xff] }
 0x1e3   : > { %v6911_v17 = vpop.f32.mrb[112].mxu0 }
 0x1e4   : > { %v3270_v9 = vadd.f32 %v8727_v36, %v3212_v48  ;;  %v7023_v7 = vpop.f32.mrb[112].mxu1  ;;  %v6912_v40 = vpop.f32.mrb[113].mxu0  ;;  %v3301_v51 = vmax.f32 %v3269_v62, 0.0 }
 0x1e5   : > { %v7024_v46 = vpop.f32.mrb[113].mxu1  ;;  %v6913_v55 = vadd.f32 %v6912_v40, %v6911_v17  ;;  %v6914_v27 = vpop.f32.mrb[114].mxu0  ;;  %v9005_v17 = vld [vmem:[#allocation8_spill] sm:$0xff] }
 0x1e6   : > { %v3302_v6 = vmax.f32 %v3270_v9, 0.0  ;;  %v7025_v18 = vadd.f32 %v7024_v46, %v7023_v7  ;;  %v7026_v13 = vpop.f32.mrb[114].mxu1  ;;  %v6915_v45 = vpop.f32.mrb[115].mxu0  ;;  %v9006_v46 = vld [vmem:[#allocation9_spill] sm:$0xff] }
 0x1e7   : > { %v7027_v16 = vpop.f32.mrb[115].mxu1  ;;  %v6916_v11 = vadd.f32 %v6915_v45, %v6914_v27 }
 0x1e8   : > { %v6354_v8 = vpack.c.bf16 %v3302_v6, %v3301_v51  ;;  %v3217_v2 = vadd.f32 %v7025_v18, %v6913_v55  ;;  %v7028_v63 = vadd.f32 %v7027_v16, %v7026_v13  ;;  %4658 = vmatmul.mubr.bf16.gmra.mrb[220].mxu0 %v9001_v35 }
 0x1e9   : > { %4915 = vmatmul.mubr.bf16.gmra.mrb[220].mxu1 %v8417_v59  ;;  %4665 = vmatprep.mubr.bf16.mxu0 %v9002_v41 }
 0x1ea   : > { %6562 = vst [vmem:[%s8504_s20 + $0xd8] sm:$0xff] %v6354_v8   ;;  %v3271_v39 = vadd.f32 %v8727_v36, %v3217_v2  ;;  %v3220_v57 = vadd.f32 %v7028_v63, %v6916_v11  ;;  %4922 = vmatprep.mubr.bf16.mxu1 %v9000_v26 }
 0x1eb   : > { %v6917_v29 = vpop.f32.mrb[116].mxu0 }
 0x1ec   : > { %v3272_v12 = vadd.f32 %v8727_v36, %v3220_v57  ;;  %v7029_v34 = vpop.f32.mrb[116].mxu1  ;;  %v6918_v54 = vpop.f32.mrb[117].mxu0  ;;  %v3303_v52 = vmax.f32 %v3271_v39, 0.0 }
 0x1ed   : > { %v7030_v10 = vpop.f32.mrb[117].mxu1  ;;  %v6919_v4 = vadd.f32 %v6918_v54, %v6917_v29  ;;  %v6920_v59 = vpop.f32.mrb[118].mxu0  ;;  %v9007_v29 = vld [vmem:[#allocation10_spill] sm:$0xff] }
 0x1ee   : > { %v3304_v30 = vmax.f32 %v3272_v12, 0.0  ;;  %v7031_v28 = vadd.f32 %v7030_v10, %v7029_v34  ;;  %v7032_v19 = vpop.f32.mrb[118].mxu1  ;;  %v6921_v24 = vpop.f32.mrb[119].mxu0  ;;  %v9008_v10 = vld [vmem:[#allocation11_spill] sm:$0xff] }
 0x1ef   : > { %v7033_v61 = vpop.f32.mrb[119].mxu1  ;;  %v6922_v32 = vadd.f32 %v6921_v24, %v6920_v59 }
 0x1f0   : > { %v6359_v0 = vpack.c.bf16 %v3304_v30, %v3303_v52  ;;  %v3225_v56 = vadd.f32 %v7031_v28, %v6919_v4  ;;  %v7034_v23 = vadd.f32 %v7033_v61, %v7032_v19  ;;  %4666 = vmatmul.mubr.bf16.gmra.mrb[224].mxu0 %v9003_v49 }
 0x1f1   : > { %4923 = vmatmul.mubr.bf16.gmra.mrb[224].mxu1 %v9001_v35  ;;  %4673 = vmatprep.mubr.bf16.mxu0 %v9004_v25 }
 0x1f2   : > { %6563 = vst [vmem:[%s8504_s20 + $0xe0] sm:$0xff] %v6359_v0   ;;  %v3273_v38 = vadd.f32 %v8727_v36, %v3225_v56  ;;  %v3228_v44 = vadd.f32 %v7034_v23, %v6922_v32  ;;  %4930 = vmatprep.mubr.bf16.mxu1 %v9002_v41 }
 0x1f3   : > { %v6923_v43 = vpop.f32.mrb[120].mxu0 }
 0x1f4   : > { %v3274_v14 = vadd.f32 %v8727_v36, %v3228_v44  ;;  %v7035_v33 = vpop.f32.mrb[120].mxu1  ;;  %v6924_v42 = vpop.f32.mrb[121].mxu0  ;;  %v3305_v58 = vmax.f32 %v3273_v38, 0.0 }
 0x1f5   : > { %v7036_v20 = vpop.f32.mrb[121].mxu1  ;;  %v6925_v21 = vadd.f32 %v6924_v42, %v6923_v43  ;;  %v6926_v1 = vpop.f32.mrb[122].mxu0  ;;  %v9009_v43 = vld [vmem:[#allocation12_spill] sm:$0xff] }
 0x1f6   : > { %v3306_v22 = vmax.f32 %v3274_v14, 0.0  ;;  %v7037_v37 = vadd.f32 %v7036_v20, %v7035_v33  ;;  %v7038_v47 = vpop.f32.mrb[122].mxu1  ;;  %v6927_v31 = vpop.f32.mrb[123].mxu0  ;;  %v9010_v20 = vld [vmem:[#allocation13_spill] sm:$0xff] }
 0x1f7   : > { %v7039_v50 = vpop.f32.mrb[123].mxu1  ;;  %v6928_v26 = vadd.f32 %v6927_v31, %v6926_v1 }
 0x1f8   : > { %v6364_v62 = vpack.c.bf16 %v3306_v22, %v3305_v58  ;;  %v3233_v48 = vadd.f32 %v7037_v37, %v6925_v21  ;;  %v7040_v9 = vadd.f32 %v7039_v50, %v7038_v47  ;;  %4674 = vmatmul.mubr.bf16.gmra.mrb[228].mxu0 %v9005_v17 }
 0x1f9   : > { %4931 = vmatmul.mubr.bf16.gmra.mrb[228].mxu1 %v9003_v49  ;;  %4681 = vmatprep.mubr.bf16.mxu0 %v9006_v46 }
 0x1fa   : > { %6564 = vst [vmem:[%s8504_s20 + $0xe8] sm:$0xff] %v6364_v62   ;;  %v3275_v7 = vadd.f32 %v8727_v36, %v3233_v48  ;;  %v3236_v40 = vadd.f32 %v7040_v9, %v6928_v26  ;;  %4938 = vmatprep.mubr.bf16.mxu1 %v9004_v25 }
 0x1fb   : > { %v6929_v6 = vpop.f32.mrb[124].mxu0 }
 0x1fc   : > { %v3276_v51 = vadd.f32 %v8727_v36, %v3236_v40  ;;  %v7041_v55 = vpop.f32.mrb[124].mxu1  ;;  %v6930_v18 = vpop.f32.mrb[125].mxu0  ;;  %v3307_v13 = vmax.f32 %v3275_v7, 0.0 }
 0x1fd   : > { %v7042_v27 = vpop.f32.mrb[125].mxu1  ;;  %v6931_v16 = vadd.f32 %v6930_v18, %v6929_v6  ;;  %v6932_v2 = vpop.f32.mrb[126].mxu0 }
 0x1fe   : > { %v3308_v45 = vmax.f32 %v3276_v51, 0.0  ;;  %v7043_v8 = vadd.f32 %v7042_v27, %v7041_v55  ;;  %v7044_v11 = vpop.f32.mrb[126].mxu1  ;;  %v6933_v63 = vpop.f32.mrb[127].mxu0 }
 0x1ff   : > { %v7045_v35 = vpop.f32.mrb[127].mxu1  ;;  %v6934_v41 = vadd.f32 %v6933_v63, %v6932_v2 }
 0x200   : > { %v6369_v39 = vpack.c.bf16 %v3308_v45, %v3307_v13  ;;  %v3241_v57 = vadd.f32 %v7043_v8, %v6931_v16  ;;  %v7046_v12 = vadd.f32 %v7045_v35, %v7044_v11  ;;  %4682 = vmatmul.mubr.bf16.gmra.mrb[232].mxu0 %v9007_v29  ;;  %v7774_v8 = vld [vmem:[%s8156_s27 + $0xc] sm:$0xff]  }
 0x201   : > { %4939 = vmatmul.mubr.bf16.gmra.mrb[232].mxu1 %v9005_v17  ;;  %4689 = vmatprep.mubr.bf16.mxu0 %v9008_v10 }
 0x202   : > { %6565 = vst [vmem:[%s8504_s20 + $0xf0] sm:$0xff] %v6369_v39   ;;  %v3277_v34 = vadd.f32 %v8727_v36, %v3241_v57  ;;  %v3244_v54 = vadd.f32 %v7046_v12, %v6934_v41  ;;  %4946 = vmatprep.mubr.bf16.mxu1 %v9006_v46  ;;  %v7772_v41 = vld [vmem:[%s8156_s27 + $0xc] sm:$0xfe]  }
 0x203   : > { %v7063_v30 = vpop.f32.mrb[128].mxu0 }
 0x204   : > { %v3278_v52 = vadd.f32 %v8727_v36, %v3244_v54  ;;  %v7175_v4 = vpop.f32.mrb[128].mxu1  ;;  %v7064_v28 = vpop.f32.mrb[129].mxu0  ;;  %v3309_v19 = vmax.f32 %v3277_v34, 0.0  ;;  %v7773_v34 = vld [vmem:[%s8156_s27 + $0x14] ss:$0 sps:$4 sm:$0x11]  }
 0x205   : > { %v7176_v59 = vpop.f32.mrb[129].mxu1  ;;  %v7065_v61 = vadd.f32 %v7064_v28, %v7063_v30  ;;  %v7066_v56 = vpop.f32.mrb[130].mxu0  ;;  %v1423_v28 = vshll.u32 %v7774_v8, 16 }
 0x206   : > { %v3310_v24 = vmax.f32 %v3278_v52, 0.0  ;;  %v7177_v0 = vadd.f32 %v7176_v59, %v7175_v4  ;;  %v7178_v32 = vpop.f32.mrb[130].mxu1  ;;  %v7067_v23 = vpop.f32.mrb[131].mxu0  ;;  %v7775_v4 = vld [vmem:[%s8156_s27 + $0x14] ss:$0 sps:$4 sm:$0x11]  }
 0x207   : > { %v7179_v49 = vpop.f32.mrb[131].mxu1  ;;  %v7068_v25 = vadd.f32 %v7067_v23, %v7066_v56 }
 0x208   : > { %v6374_v38 = vpack.c.bf16 %v3310_v24, %v3309_v19  ;;  %v3991_v44 = vadd.f32 %v7177_v0, %v7065_v61  ;;  %v7180_v14 = vadd.f32 %v7179_v49, %v7178_v32  ;;  %4690 = vmatmul.mubr.bf16.gmra.mrb[236].mxu0 %v9009_v43  ;;  %v1719_v24 = vrot.slane %v7772_v41, 1 }
 0x209   : > { %4947 = vmatmul.mubr.bf16.gmra.mrb[236].mxu1 %v9007_v29  ;;  %4697 = vmatprep.mubr.bf16.mxu0 %v9010_v20  ;;  %v1720_v61 = vrot.slane %v7773_v34, 1 }
 0x20a   : > { %6566 = vst [vmem:[%s8504_s20 + $0xf8] sm:$0xff] %v6374_v38   ;;  %v4117_v33 = vadd.f32 %v8727_v36, %v3991_v44  ;;  %v3994_v42 = vadd.f32 %v7180_v14, %v7068_v25  ;;  %4954 = vmatprep.mubr.bf16.mxu1 %v9008_v10  ;;  %v1421_v38 = vshrl.u32 %v7774_v8, 16  ;;  %v1428_v44 = vshll.u32 %v7775_v4, 16 }
 0x20b   : > { %v7069_v22 = vpop.f32.mrb[132].mxu0 }
 0x20c   : > { %v4118_v58 = vadd.f32 %v8727_v36, %v3994_v42  ;;  %v7181_v21 = vpop.f32.mrb[132].mxu1  ;;  %v7070_v37 = vpop.f32.mrb[133].mxu0  ;;  %v4149_v47 = vmax.f32 %v4117_v33, 0.0 }
 0x20d   : > { %v7182_v1 = vpop.f32.mrb[133].mxu1  ;;  %v7071_v50 = vadd.f32 %v7070_v37, %v7069_v22  ;;  %v7072_v48 = vpop.f32.mrb[134].mxu0  ;;  %v1721_v22 = vsel %vm1613_vm1, %v1719_v24, %v1720_v61 }
 0x20e   : > { %v4150_v31 = vmax.f32 %v4118_v58, 0.0  ;;  %v7183_v62 = vadd.f32 %v7182_v1, %v7181_v21  ;;  %v7184_v26 = vpop.f32.mrb[134].mxu1  ;;  %v7073_v9 = vpop.f32.mrb[135].mxu0 }
 0x20f   : > { %v7185_v17 = vpop.f32.mrb[135].mxu1  ;;  %v7074_v46 = vadd.f32 %v7073_v9, %v7072_v48 }
 0x210   : > { %v6379_v7 = vpack.c.bf16 %v4150_v31, %v4149_v47  ;;  %v3999_v40 = vadd.f32 %v7183_v62, %v7071_v50  ;;  %v7186_v51 = vadd.f32 %v7185_v17, %v7184_v26  ;;  %4698 = vmatmul.mubr.bf16.gmra.mrb[240].mxu0 %v8519_v5  ;;  %v1430_v50 = vrot.slane %v1428_v44, 1 }
 0x211   : > { %4955 = vmatmul.mubr.bf16.gmra.mrb[240].mxu1 %v9009_v43  ;;  %4705 = vmatprep.mubr.bf16.mxu0 %v8524_v60 }
 0x212   : > { %6567 = vst [vmem:[%s8504_s20 + $0x100] sm:$0xff] %v6379_v7   ;;  %v4119_v6 = vadd.f32 %v8727_v36, %v3999_v40  ;;  %v4002_v55 = vadd.f32 %v7186_v51, %v7074_v46  ;;  %4962 = vmatprep.mubr.bf16.mxu1 %v9010_v20 }
 0x213   : > { %v7075_v27 = vpop.f32.mrb[136].mxu0 }
 0x214   : > { %v4120_v18 = vadd.f32 %v8727_v36, %v4002_v55  ;;  %v7187_v13 = vpop.f32.mrb[136].mxu1  ;;  %v7076_v45 = vpop.f32.mrb[137].mxu0  ;;  %v4151_v2 = vmax.f32 %v4119_v6, 0.0 }
 0x215   : > { %v7188_v16 = vpop.f32.mrb[137].mxu1  ;;  %v7077_v63 = vadd.f32 %v7076_v45, %v7075_v27  ;;  %v7078_v39 = vpop.f32.mrb[138].mxu0 }
 0x216   : > { %v4152_v11 = vmax.f32 %v4120_v18, 0.0  ;;  %v7189_v35 = vadd.f32 %v7188_v16, %v7187_v13  ;;  %v7190_v57 = vpop.f32.mrb[138].mxu1  ;;  %v7079_v12 = vpop.f32.mrb[139].mxu0 }
 0x217   : > { %v7191_v29 = vpop.f32.mrb[139].mxu1  ;;  %v7080_v52 = vadd.f32 %v7079_v12, %v7078_v39 }
 0x218   : > { %v6384_v54 = vpack.c.bf16 %v4152_v11, %v4151_v2  ;;  %v4007_v10 = vadd.f32 %v7189_v35, %v7077_v63  ;;  %v7192_v30 = vadd.f32 %v7191_v29, %v7190_v57  ;;  %4706 = vmatmul.mubr.bf16.gmra.mrb[244].mxu0 %v8536_v15 }
 0x219   : > { %4963 = vmatmul.mubr.bf16.gmra.mrb[244].mxu1 %v8519_v5  ;;  %4713 = vmatprep.mubr.bf16.mxu0 %v8539_v3  ;;  %v1425_v5 = vrot.slane %v1423_v28, 1 }
 0x21a   : > { %6568 = vst [vmem:[%s8504_s20 + $0x108] sm:$0xff] %v6384_v54   ;;  %v4121_v59 = vadd.f32 %v8727_v36, %v4007_v10  ;;  %v4010_v19 = vadd.f32 %v7192_v30, %v7080_v52  ;;  %4970 = vmatprep.mubr.bf16.mxu1 %v8524_v60 }
 0x21b   : > { %v7081_v56 = vpop.f32.mrb[140].mxu0  ;;  %v1426_v31 = vor.u32 %v1425_v5, %v1421_v38 }
 0x21c   : > { %v4122_v0 = vadd.f32 %v8727_v36, %v4010_v19  ;;  %v7193_v32 = vpop.f32.mrb[140].mxu1  ;;  %v7082_v23 = vpop.f32.mrb[141].mxu0  ;;  %v4153_v25 = vmax.f32 %v4121_v59, 0.0 }
 0x21d   : > { %v7194_v49 = vpop.f32.mrb[141].mxu1  ;;  %v7083_v43 = vadd.f32 %v7082_v23, %v7081_v56  ;;  %v7084_v42 = vpop.f32.mrb[142].mxu0  ;;  %v1431_v46 = vsel %vm710_vm0, %v1426_v31, %v1430_v50 }
 0x21e   : > { %v4154_v14 = vmax.f32 %v4122_v0, 0.0  ;;  %v7195_v33 = vadd.f32 %v7194_v49, %v7193_v32  ;;  %v7196_v20 = vpop.f32.mrb[142].mxu1  ;;  %v7085_v58 = vpop.f32.mrb[143].mxu0 }
 0x21f   : > { %v7197_v60 = vpop.f32.mrb[143].mxu1  ;;  %v7086_v1 = vadd.f32 %v7085_v58, %v7084_v42 }
 0x220   : > { %v6389_v21 = vpack.c.bf16 %v4154_v14, %v4153_v25  ;;  %v4015_v37 = vadd.f32 %v7195_v33, %v7083_v43  ;;  %v7198_v47 = vadd.f32 %v7197_v60, %v7196_v20  ;;  %4714 = vmatmul.mubr.bf16.gmra.mrb[248].mxu0 %v8549_v53 }
 0x221   : > { %4971 = vmatmul.mubr.bf16.gmra.mrb[248].mxu1 %v8536_v15  ;;  %4721 = vmatprep.mubr.bf16.mxu0 %v1721_v22 }
 0x222   : > { %6569 = vst [vmem:[%s8504_s20 + $0x110] sm:$0xff] %v6389_v21   ;;  %v4123_v62 = vadd.f32 %v8727_v36, %v4015_v37  ;;  %v4018_v48 = vadd.f32 %v7198_v47, %v7086_v1  ;;  %4978 = vmatprep.mubr.bf16.mxu1 %v8539_v3 }
 0x223   : > { %v7087_v9 = vpop.f32.mrb[144].mxu0 }
 0x224   : > { %v4124_v26 = vadd.f32 %v8727_v36, %v4018_v48  ;;  %v7199_v17 = vpop.f32.mrb[144].mxu1  ;;  %v7088_v7 = vpop.f32.mrb[145].mxu0  ;;  %v4155_v51 = vmax.f32 %v4123_v62, 0.0 }
 0x225   : > { %v7200_v40 = vpop.f32.mrb[145].mxu1  ;;  %v7089_v6 = vadd.f32 %v7088_v7, %v7087_v9  ;;  %v7090_v18 = vpop.f32.mrb[146].mxu0 }
 0x226   : > { %v4156_v15 = vmax.f32 %v4124_v26, 0.0  ;;  %v7201_v55 = vadd.f32 %v7200_v40, %v7199_v17  ;;  %v7202_v27 = vpop.f32.mrb[146].mxu1  ;;  %v7091_v13 = vpop.f32.mrb[147].mxu0 }
 0x227   : > { %v7203_v45 = vpop.f32.mrb[147].mxu1  ;;  %v7092_v3 = vadd.f32 %v7091_v13, %v7090_v18 }
 0x228   : > { %v6394_v16 = vpack.c.bf16 %v4156_v15, %v4155_v51  ;;  %v4023_v8 = vadd.f32 %v7201_v55, %v7089_v6  ;;  %v7204_v2 = vadd.f32 %v7203_v45, %v7202_v27  ;;  %4722 = vmatmul.mubr.bf16.gmra.mrb[252].mxu0 %v1431_v46 }
 0x229   : > { %4979 = vmatmul.mubr.bf16.gmra.mrb[252].mxu1 %v8549_v53 }
 0x22a   : > { %6570 = vst [vmem:[%s8504_s20 + $0x118] sm:$0xff] %v6394_v16   ;;  %v4125_v11 = vadd.f32 %v8727_v36, %v4023_v8  ;;  %v4026_v63 = vadd.f32 %v7204_v2, %v7092_v3 }
 0x22b   : > { %v7093_v39 = vpop.f32.mrb[148].mxu0 }
 0x22c   : > { %v4126_v35 = vadd.f32 %v8727_v36, %v4026_v63  ;;  %v7205_v57 = vpop.f32.mrb[148].mxu1  ;;  %v7094_v41 = vpop.f32.mrb[149].mxu0  ;;  %v4157_v29 = vmax.f32 %v4125_v11, 0.0 }
 0x22d   : > { %v7206_v12 = vpop.f32.mrb[149].mxu1  ;;  %v7095_v54 = vadd.f32 %v7094_v41, %v7093_v39  ;;  %v7096_v52 = vpop.f32.mrb[150].mxu0 }
 0x22e   : > { %v4158_v34 = vmax.f32 %v4126_v35, 0.0  ;;  %v7207_v10 = vadd.f32 %v7206_v12, %v7205_v57  ;;  %v7208_v30 = vpop.f32.mrb[150].mxu1  ;;  %v7097_v4 = vpop.f32.mrb[151].mxu0 }
 0x22f   : > { %v7209_v28 = vpop.f32.mrb[151].mxu1  ;;  %v7098_v19 = vadd.f32 %v7097_v4, %v7096_v52 }
 0x230   : > { %v6399_v53 = vpack.c.bf16 %v4158_v34, %v4157_v29  ;;  %v4031_v59 = vadd.f32 %v7207_v10, %v7095_v54  ;;  %v7210_v24 = vadd.f32 %v7209_v28, %v7208_v30 }
 0x232   : > { %6571 = vst [vmem:[%s8504_s20 + $0x120] sm:$0xff] %v6399_v53   ;;  %v4127_v61 = vadd.f32 %v8727_v36, %v4031_v59  ;;  %v4034_v0 = vadd.f32 %v7210_v24, %v7098_v19 }
 0x233   : > { %v7099_v32 = vpop.f32.mrb[152].mxu0 }
 0x234   : > { %v4128_v56 = vadd.f32 %v8727_v36, %v4034_v0  ;;  %v7211_v23 = vpop.f32.mrb[152].mxu1  ;;  %v7100_v49 = vpop.f32.mrb[153].mxu0  ;;  %v4159_v5 = vmax.f32 %v4127_v61, 0.0  ;;  %v8873_v36 = vld [vmem:[%s8965_s3] ss:$0 sm:$0xff] }
 0x235   : > { %v7212_v38 = vpop.f32.mrb[153].mxu1  ;;  %v7101_v25 = vadd.f32 %v7100_v49, %v7099_v32  ;;  %v7102_v43 = vpop.f32.mrb[154].mxu0 }
 0x236   : > { %v4160_v44 = vmax.f32 %v4128_v56, 0.0  ;;  %v7213_v14 = vadd.f32 %v7212_v38, %v7211_v23  ;;  %v7214_v33 = vpop.f32.mrb[154].mxu1  ;;  %v7103_v42 = vpop.f32.mrb[155].mxu0 }
 0x237   : > { %v7215_v20 = vpop.f32.mrb[155].mxu1  ;;  %v7104_v22 = vadd.f32 %v7103_v42, %v7102_v43 }
 0x238   : > { %v6404_v58 = vpack.c.bf16 %v4160_v44, %v4159_v5  ;;  %v4039_v60 = vadd.f32 %v7213_v14, %v7101_v25  ;;  %v7216_v21 = vadd.f32 %v7215_v20, %v7214_v33 }
 0x23a   : > { %6572 = vst [vmem:[%s8504_s20 + $0x128] sm:$0xff] %v6404_v58   ;;  %v4129_v37 = vadd.f32 %v8873_v36, %v4039_v60  ;;  %v4042_v1 = vadd.f32 %v7216_v21, %v7104_v22 }
 0x23b   : > { %v7105_v31 = vpop.f32.mrb[156].mxu0 }
 0x23c   : > { %v4130_v47 = vadd.f32 %v8873_v36, %v4042_v1  ;;  %v7217_v50 = vpop.f32.mrb[156].mxu1  ;;  %v7106_v62 = vpop.f32.mrb[157].mxu0  ;;  %v4161_v26 = vmax.f32 %v4129_v37, 0.0 }
 0x23d   : > { %v7218_v48 = vpop.f32.mrb[157].mxu1  ;;  %v7107_v17 = vadd.f32 %v7106_v62, %v7105_v31  ;;  %v7108_v40 = vpop.f32.mrb[158].mxu0 }
 0x23e   : > { %v4162_v9 = vmax.f32 %v4130_v47, 0.0  ;;  %v7219_v7 = vadd.f32 %v7218_v48, %v7217_v50  ;;  %v7220_v46 = vpop.f32.mrb[158].mxu1  ;;  %v7109_v51 = vpop.f32.mrb[159].mxu0 }
 0x23f   : > { %v7221_v15 = vpop.f32.mrb[159].mxu1  ;;  %v7110_v18 = vadd.f32 %v7109_v51, %v7108_v40 }
 0x240   : > { %v6409_v6 = vpack.c.bf16 %v4162_v9, %v4161_v26  ;;  %v4047_v55 = vadd.f32 %v7219_v7, %v7107_v17  ;;  %v7222_v27 = vadd.f32 %v7221_v15, %v7220_v46 }
 0x242   : > { %6573 = vst [vmem:[%s8504_s20 + $0x130] sm:$0xff] %v6409_v6   ;;  %v4131_v13 = vadd.f32 %v8873_v36, %v4047_v55  ;;  %v4050_v45 = vadd.f32 %v7222_v27, %v7110_v18 }
 0x243   : > { %v7111_v8 = vpop.f32.mrb[160].mxu0 }
 0x244   : > { %v4132_v16 = vadd.f32 %v8873_v36, %v4050_v45  ;;  %v7223_v3 = vpop.f32.mrb[160].mxu1  ;;  %v7112_v2 = vpop.f32.mrb[161].mxu0  ;;  %v4163_v63 = vmax.f32 %v4131_v13, 0.0 }
 0x245   : > { %v7224_v11 = vpop.f32.mrb[161].mxu1  ;;  %v7113_v39 = vadd.f32 %v7112_v2, %v7111_v8  ;;  %v7114_v41 = vpop.f32.mrb[162].mxu0 }
 0x246   : > { %v4164_v35 = vmax.f32 %v4132_v16, 0.0  ;;  %v7225_v57 = vadd.f32 %v7224_v11, %v7223_v3  ;;  %v7226_v12 = vpop.f32.mrb[162].mxu1  ;;  %v7115_v29 = vpop.f32.mrb[163].mxu0 }
 0x247   : > { %v7227_v34 = vpop.f32.mrb[163].mxu1  ;;  %v7116_v52 = vadd.f32 %v7115_v29, %v7114_v41 }
 0x248   : > { %v6414_v54 = vpack.c.bf16 %v4164_v35, %v4163_v63  ;;  %v4055_v10 = vadd.f32 %v7225_v57, %v7113_v39  ;;  %v7228_v30 = vadd.f32 %v7227_v34, %v7226_v12 }
 0x24a   : > { %6574 = vst [vmem:[%s8504_s20 + $0x138] sm:$0xff] %v6414_v54   ;;  %v4133_v4 = vadd.f32 %v8873_v36, %v4055_v10  ;;  %v4058_v28 = vadd.f32 %v7228_v30, %v7116_v52 }
 0x24b   : > { %v7117_v59 = vpop.f32.mrb[164].mxu0 }
 0x24c   : > { %v4134_v53 = vadd.f32 %v8873_v36, %v4058_v28  ;;  %v7229_v19 = vpop.f32.mrb[164].mxu1  ;;  %v7118_v24 = vpop.f32.mrb[165].mxu0  ;;  %v4165_v0 = vmax.f32 %v4133_v4, 0.0 }
 0x24d   : > { %v7230_v61 = vpop.f32.mrb[165].mxu1  ;;  %v7119_v32 = vadd.f32 %v7118_v24, %v7117_v59  ;;  %v7120_v49 = vpop.f32.mrb[166].mxu0 }
 0x24e   : > { %v4166_v56 = vmax.f32 %v4134_v53, 0.0  ;;  %v7231_v23 = vadd.f32 %v7230_v61, %v7229_v19  ;;  %v7232_v38 = vpop.f32.mrb[166].mxu1  ;;  %v7121_v5 = vpop.f32.mrb[167].mxu0 }
 0x24f   : > { %v7233_v44 = vpop.f32.mrb[167].mxu1  ;;  %v7122_v43 = vadd.f32 %v7121_v5, %v7120_v49 }
 0x250   : > { %v6419_v25 = vpack.c.bf16 %v4166_v56, %v4165_v0  ;;  %v4063_v14 = vadd.f32 %v7231_v23, %v7119_v32  ;;  %v7234_v33 = vadd.f32 %v7233_v44, %v7232_v38 }
 0x252   : > { %6575 = vst [vmem:[%s8504_s20 + $0x140] sm:$0xff] %v6419_v25   ;;  %v4135_v42 = vadd.f32 %v8873_v36, %v4063_v14  ;;  %v4066_v20 = vadd.f32 %v7234_v33, %v7122_v43 }
 0x253   : > { %v7123_v60 = vpop.f32.mrb[168].mxu0 }
 0x254   : > { %v4136_v58 = vadd.f32 %v8873_v36, %v4066_v20  ;;  %v7235_v22 = vpop.f32.mrb[168].mxu1  ;;  %v7124_v21 = vpop.f32.mrb[169].mxu0  ;;  %v4167_v1 = vmax.f32 %v4135_v42, 0.0 }
 0x255   : > { %v7236_v37 = vpop.f32.mrb[169].mxu1  ;;  %v7125_v31 = vadd.f32 %v7124_v21, %v7123_v60  ;;  %v7126_v62 = vpop.f32.mrb[170].mxu0 }
 0x256   : > { %v4168_v47 = vmax.f32 %v4136_v58, 0.0  ;;  %v7237_v50 = vadd.f32 %v7236_v37, %v7235_v22  ;;  %v7238_v48 = vpop.f32.mrb[170].mxu1  ;;  %v7127_v26 = vpop.f32.mrb[171].mxu0 }
 0x257   : > { %v7239_v9 = vpop.f32.mrb[171].mxu1  ;;  %v7128_v40 = vadd.f32 %v7127_v26, %v7126_v62 }
 0x258   : > { %v6424_v17 = vpack.c.bf16 %v4168_v47, %v4167_v1  ;;  %v4071_v7 = vadd.f32 %v7237_v50, %v7125_v31  ;;  %v7240_v46 = vadd.f32 %v7239_v9, %v7238_v48 }
 0x25a   : > { %6576 = vst [vmem:[%s8504_s20 + $0x148] sm:$0xff] %v6424_v17   ;;  %v4137_v51 = vadd.f32 %v8873_v36, %v4071_v7  ;;  %v4074_v15 = vadd.f32 %v7240_v46, %v7128_v40 }
 0x25b   : > { %v7129_v55 = vpop.f32.mrb[172].mxu0 }
 0x25c   : > { %v4138_v6 = vadd.f32 %v8873_v36, %v4074_v15  ;;  %v7241_v18 = vpop.f32.mrb[172].mxu1  ;;  %v7130_v27 = vpop.f32.mrb[173].mxu0  ;;  %v4169_v45 = vmax.f32 %v4137_v51, 0.0 }
 0x25d   : > { %v7242_v13 = vpop.f32.mrb[173].mxu1  ;;  %v7131_v8 = vadd.f32 %v7130_v27, %v7129_v55  ;;  %v7132_v2 = vpop.f32.mrb[174].mxu0 }
 0x25e   : > { %v4170_v16 = vmax.f32 %v4138_v6, 0.0  ;;  %v7243_v3 = vadd.f32 %v7242_v13, %v7241_v18  ;;  %v7244_v11 = vpop.f32.mrb[174].mxu1  ;;  %v7133_v63 = vpop.f32.mrb[175].mxu0 }
 0x25f   : > { %v7245_v35 = vpop.f32.mrb[175].mxu1  ;;  %v7134_v41 = vadd.f32 %v7133_v63, %v7132_v2 }
 0x260   : > { %v6429_v39 = vpack.c.bf16 %v4170_v16, %v4169_v45  ;;  %v4079_v57 = vadd.f32 %v7243_v3, %v7131_v8  ;;  %v7246_v12 = vadd.f32 %v7245_v35, %v7244_v11 }
 0x262   : > { %6577 = vst [vmem:[%s8504_s20 + $0x150] sm:$0xff] %v6429_v39   ;;  %v4139_v29 = vadd.f32 %v8873_v36, %v4079_v57  ;;  %v4082_v34 = vadd.f32 %v7246_v12, %v7134_v41 }
 0x263   : > { %v7135_v10 = vpop.f32.mrb[176].mxu0 }
 0x264   : > { %v4140_v54 = vadd.f32 %v8873_v36, %v4082_v34  ;;  %v7247_v52 = vpop.f32.mrb[176].mxu1  ;;  %v7136_v30 = vpop.f32.mrb[177].mxu0  ;;  %v4171_v28 = vmax.f32 %v4139_v29, 0.0 }
 0x265   : > { %v7248_v4 = vpop.f32.mrb[177].mxu1  ;;  %v7137_v59 = vadd.f32 %v7136_v30, %v7135_v10  ;;  %v7138_v24 = vpop.f32.mrb[178].mxu0 }
 0x266   : > { %v4172_v53 = vmax.f32 %v4140_v54, 0.0  ;;  %v7249_v19 = vadd.f32 %v7248_v4, %v7247_v52  ;;  %v7250_v61 = vpop.f32.mrb[178].mxu1  ;;  %v7139_v0 = vpop.f32.mrb[179].mxu0 }
 0x267   : > { %v7251_v56 = vpop.f32.mrb[179].mxu1  ;;  %v7140_v49 = vadd.f32 %v7139_v0, %v7138_v24 }
 0x268   : > { %v6434_v32 = vpack.c.bf16 %v4172_v53, %v4171_v28  ;;  %v4087_v23 = vadd.f32 %v7249_v19, %v7137_v59  ;;  %v7252_v38 = vadd.f32 %v7251_v56, %v7250_v61 }
 0x26a   : > { %6578 = vst [vmem:[%s8504_s20 + $0x158] sm:$0xff] %v6434_v32   ;;  %v4141_v5 = vadd.f32 %v8873_v36, %v4087_v23  ;;  %v4090_v44 = vadd.f32 %v7252_v38, %v7140_v49 }
 0x26b   : > { %v7141_v14 = vpop.f32.mrb[180].mxu0 }
 0x26c   : > { %v4142_v25 = vadd.f32 %v8873_v36, %v4090_v44  ;;  %v7253_v43 = vpop.f32.mrb[180].mxu1  ;;  %v7142_v33 = vpop.f32.mrb[181].mxu0  ;;  %v4173_v20 = vmax.f32 %v4141_v5, 0.0 }
 0x26d   : > { %v7254_v42 = vpop.f32.mrb[181].mxu1  ;;  %v7143_v60 = vadd.f32 %v7142_v33, %v7141_v14  ;;  %v7144_v21 = vpop.f32.mrb[182].mxu0 }
 0x26e   : > { %v4174_v58 = vmax.f32 %v4142_v25, 0.0  ;;  %v7255_v22 = vadd.f32 %v7254_v42, %v7253_v43  ;;  %v7256_v37 = vpop.f32.mrb[182].mxu1  ;;  %v7145_v1 = vpop.f32.mrb[183].mxu0 }
 0x26f   : > { %v7257_v47 = vpop.f32.mrb[183].mxu1  ;;  %v7146_v62 = vadd.f32 %v7145_v1, %v7144_v21 }
 0x270   : > { %v6439_v31 = vpack.c.bf16 %v4174_v58, %v4173_v20  ;;  %v4095_v50 = vadd.f32 %v7255_v22, %v7143_v60  ;;  %v7258_v48 = vadd.f32 %v7257_v47, %v7256_v37 }
 0x272   : > { %6579 = vst [vmem:[%s8504_s20 + $0x160] sm:$0xff] %v6439_v31   ;;  %v4143_v26 = vadd.f32 %v8873_v36, %v4095_v50  ;;  %v4098_v9 = vadd.f32 %v7258_v48, %v7146_v62 }
 0x273   : > { %v7147_v7 = vpop.f32.mrb[184].mxu0 }
 0x274   : > { %v4144_v17 = vadd.f32 %v8873_v36, %v4098_v9  ;;  %v7259_v40 = vpop.f32.mrb[184].mxu1  ;;  %v7148_v46 = vpop.f32.mrb[185].mxu0  ;;  %v4175_v15 = vmax.f32 %v4143_v26, 0.0 }
 0x275   : > { %v7260_v51 = vpop.f32.mrb[185].mxu1  ;;  %v7149_v55 = vadd.f32 %v7148_v46, %v7147_v7  ;;  %v7150_v27 = vpop.f32.mrb[186].mxu0 }
 0x276   : > { %v4176_v6 = vmax.f32 %v4144_v17, 0.0  ;;  %v7261_v18 = vadd.f32 %v7260_v51, %v7259_v40  ;;  %v7262_v13 = vpop.f32.mrb[186].mxu1  ;;  %v7151_v45 = vpop.f32.mrb[187].mxu0 }
 0x277   : > { %v7263_v16 = vpop.f32.mrb[187].mxu1  ;;  %v7152_v2 = vadd.f32 %v7151_v45, %v7150_v27 }
 0x278   : > { %v6444_v8 = vpack.c.bf16 %v4176_v6, %v4175_v15  ;;  %v4103_v3 = vadd.f32 %v7261_v18, %v7149_v55  ;;  %v7264_v11 = vadd.f32 %v7263_v16, %v7262_v13 }
 0x27a   : > { %6580 = vst [vmem:[%s8504_s20 + $0x168] sm:$0xff] %v6444_v8   ;;  %v4145_v63 = vadd.f32 %v8873_v36, %v4103_v3  ;;  %v4106_v35 = vadd.f32 %v7264_v11, %v7152_v2 }
 0x27b   : > { %v7153_v57 = vpop.f32.mrb[188].mxu0 }
 0x27c   : > { %v4146_v39 = vadd.f32 %v8873_v36, %v4106_v35  ;;  %v7265_v41 = vpop.f32.mrb[188].mxu1  ;;  %v7154_v12 = vpop.f32.mrb[189].mxu0  ;;  %v4177_v34 = vmax.f32 %v4145_v63, 0.0 }
 0x27d   : > { %v7266_v29 = vpop.f32.mrb[189].mxu1  ;;  %v7155_v10 = vadd.f32 %v7154_v12, %v7153_v57  ;;  %v7156_v30 = vpop.f32.mrb[190].mxu0 }
 0x27e   : > { %v4178_v54 = vmax.f32 %v4146_v39, 0.0  ;;  %v7267_v52 = vadd.f32 %v7266_v29, %v7265_v41  ;;  %v7268_v4 = vpop.f32.mrb[190].mxu1  ;;  %v7157_v28 = vpop.f32.mrb[191].mxu0 }
 0x27f   : > { %v7269_v53 = vpop.f32.mrb[191].mxu1  ;;  %v7158_v24 = vadd.f32 %v7157_v28, %v7156_v30 }
 0x280   : > { %v6449_v59 = vpack.c.bf16 %v4178_v54, %v4177_v34  ;;  %v4111_v19 = vadd.f32 %v7267_v52, %v7155_v10  ;;  %v7270_v61 = vadd.f32 %v7269_v53, %v7268_v4 }
 0x282   : > { %6581 = vst [vmem:[%s8504_s20 + $0x170] sm:$0xff] %v6449_v59   ;;  %v4147_v0 = vadd.f32 %v8873_v36, %v4111_v19  ;;  %v4114_v56 = vadd.f32 %v7270_v61, %v7158_v24 }
 0x283   : > { %v7287_v23 = vpop.f32.mrb[192].mxu0 }
 0x284   : > { %v4148_v32 = vadd.f32 %v8873_v36, %v4114_v56  ;;  %v7399_v49 = vpop.f32.mrb[192].mxu1  ;;  %v7288_v38 = vpop.f32.mrb[193].mxu0  ;;  %v4179_v44 = vmax.f32 %v4147_v0, 0.0 }
 0x285   : > { %v7400_v5 = vpop.f32.mrb[193].mxu1  ;;  %v7289_v14 = vadd.f32 %v7288_v38, %v7287_v23  ;;  %v7290_v33 = vpop.f32.mrb[194].mxu0 }
 0x286   : > { %v4180_v25 = vmax.f32 %v4148_v32, 0.0  ;;  %v7401_v43 = vadd.f32 %v7400_v5, %v7399_v49  ;;  %v7402_v42 = vpop.f32.mrb[194].mxu1  ;;  %v7291_v20 = vpop.f32.mrb[195].mxu0 }
 0x287   : > { %v7403_v58 = vpop.f32.mrb[195].mxu1  ;;  %v7292_v21 = vadd.f32 %v7291_v20, %v7290_v33 }
 0x288   : > { %v6454_v60 = vpack.c.bf16 %v4180_v25, %v4179_v44  ;;  %v4861_v22 = vadd.f32 %v7401_v43, %v7289_v14  ;;  %v7404_v37 = vadd.f32 %v7403_v58, %v7402_v42 }
 0x28a   : > { %6582 = vst [vmem:[%s8504_s20 + $0x178] sm:$0xff] %v6454_v60   ;;  %v4987_v1 = vadd.f32 %v8873_v36, %v4861_v22  ;;  %v4864_v47 = vadd.f32 %v7404_v37, %v7292_v21 }
 0x28b   : > { %v7293_v50 = vpop.f32.mrb[196].mxu0 }
 0x28c   : > { %v4988_v31 = vadd.f32 %v8873_v36, %v4864_v47  ;;  %v7405_v62 = vpop.f32.mrb[196].mxu1  ;;  %v7294_v48 = vpop.f32.mrb[197].mxu0  ;;  %v5019_v9 = vmax.f32 %v4987_v1, 0.0 }
 0x28d   : > { %v7406_v26 = vpop.f32.mrb[197].mxu1  ;;  %v7295_v7 = vadd.f32 %v7294_v48, %v7293_v50  ;;  %v7296_v46 = vpop.f32.mrb[198].mxu0 }
 0x28e   : > { %v5020_v17 = vmax.f32 %v4988_v31, 0.0  ;;  %v7407_v40 = vadd.f32 %v7406_v26, %v7405_v62  ;;  %v7408_v51 = vpop.f32.mrb[198].mxu1  ;;  %v7297_v15 = vpop.f32.mrb[199].mxu0 }
 0x28f   : > { %v7409_v6 = vpop.f32.mrb[199].mxu1  ;;  %v7298_v27 = vadd.f32 %v7297_v15, %v7296_v46 }
 0x290   : > { %v6459_v55 = vpack.c.bf16 %v5020_v17, %v5019_v9  ;;  %v4869_v18 = vadd.f32 %v7407_v40, %v7295_v7  ;;  %v7410_v13 = vadd.f32 %v7409_v6, %v7408_v51 }
 0x292   : > { %6583 = vst [vmem:[%s8504_s20 + $0x180] sm:$0xff] %v6459_v55   ;;  %v4989_v45 = vadd.f32 %v8873_v36, %v4869_v18  ;;  %v4872_v16 = vadd.f32 %v7410_v13, %v7298_v27 }
 0x293   : > { %v7299_v3 = vpop.f32.mrb[200].mxu0 }
 0x294   : > { %v4990_v8 = vadd.f32 %v8873_v36, %v4872_v16  ;;  %v7411_v2 = vpop.f32.mrb[200].mxu1  ;;  %v7300_v11 = vpop.f32.mrb[201].mxu0  ;;  %v5021_v35 = vmax.f32 %v4989_v45, 0.0 }
 0x295   : > { %v7412_v63 = vpop.f32.mrb[201].mxu1  ;;  %v7301_v57 = vadd.f32 %v7300_v11, %v7299_v3  ;;  %v7302_v12 = vpop.f32.mrb[202].mxu0 }
 0x296   : > { %v5022_v39 = vmax.f32 %v4990_v8, 0.0  ;;  %v7413_v41 = vadd.f32 %v7412_v63, %v7411_v2  ;;  %v7414_v29 = vpop.f32.mrb[202].mxu1  ;;  %v7303_v34 = vpop.f32.mrb[203].mxu0 }
 0x297   : > { %v7415_v54 = vpop.f32.mrb[203].mxu1  ;;  %v7304_v30 = vadd.f32 %v7303_v34, %v7302_v12 }
 0x298   : > { %v6464_v10 = vpack.c.bf16 %v5022_v39, %v5021_v35  ;;  %v4877_v52 = vadd.f32 %v7413_v41, %v7301_v57  ;;  %v7416_v4 = vadd.f32 %v7415_v54, %v7414_v29 }
 0x29a   : > { %6584 = vst [vmem:[%s8504_s20 + $0x188] sm:$0xff] %v6464_v10   ;;  %v4991_v28 = vadd.f32 %v8873_v36, %v4877_v52  ;;  %v4880_v53 = vadd.f32 %v7416_v4, %v7304_v30 }
 0x29b   : > { %v7305_v19 = vpop.f32.mrb[204].mxu0 }
 0x29c   : > { %v4992_v59 = vadd.f32 %v8873_v36, %v4880_v53  ;;  %v7417_v24 = vpop.f32.mrb[204].mxu1  ;;  %v7306_v61 = vpop.f32.mrb[205].mxu0  ;;  %v5023_v56 = vmax.f32 %v4991_v28, 0.0 }
 0x29d   : > { %v7418_v0 = vpop.f32.mrb[205].mxu1  ;;  %v7307_v23 = vadd.f32 %v7306_v61, %v7305_v19  ;;  %v7308_v38 = vpop.f32.mrb[206].mxu0 }
 0x29e   : > { %v5024_v32 = vmax.f32 %v4992_v59, 0.0  ;;  %v7419_v49 = vadd.f32 %v7418_v0, %v7417_v24  ;;  %v7420_v5 = vpop.f32.mrb[206].mxu1  ;;  %v7309_v44 = vpop.f32.mrb[207].mxu0 }
 0x29f   : > { %v7421_v25 = vpop.f32.mrb[207].mxu1  ;;  %v7310_v33 = vadd.f32 %v7309_v44, %v7308_v38 }
 0x2a0   : > { %v6469_v14 = vpack.c.bf16 %v5024_v32, %v5023_v56  ;;  %v4885_v43 = vadd.f32 %v7419_v49, %v7307_v23  ;;  %v7422_v42 = vadd.f32 %v7421_v25, %v7420_v5 }
 0x2a2   : > { %6585 = vst [vmem:[%s8504_s20 + $0x190] sm:$0xff] %v6469_v14   ;;  %v4993_v20 = vadd.f32 %v8873_v36, %v4885_v43  ;;  %v4888_v58 = vadd.f32 %v7422_v42, %v7310_v33 }
 0x2a3   : > { %v7311_v22 = vpop.f32.mrb[208].mxu0 }
 0x2a4   : > { %v4994_v60 = vadd.f32 %v8873_v36, %v4888_v58  ;;  %v7423_v21 = vpop.f32.mrb[208].mxu1  ;;  %v7312_v37 = vpop.f32.mrb[209].mxu0  ;;  %v5025_v47 = vmax.f32 %v4993_v20, 0.0 }
 0x2a5   : > { %v7424_v1 = vpop.f32.mrb[209].mxu1  ;;  %v7313_v50 = vadd.f32 %v7312_v37, %v7311_v22  ;;  %v7314_v48 = vpop.f32.mrb[210].mxu0 }
 0x2a6   : > { %v5026_v31 = vmax.f32 %v4994_v60, 0.0  ;;  %v7425_v62 = vadd.f32 %v7424_v1, %v7423_v21  ;;  %v7426_v26 = vpop.f32.mrb[210].mxu1  ;;  %v7315_v9 = vpop.f32.mrb[211].mxu0 }
 0x2a7   : > { %v7427_v17 = vpop.f32.mrb[211].mxu1  ;;  %v7316_v46 = vadd.f32 %v7315_v9, %v7314_v48 }
 0x2a8   : > { %v6474_v7 = vpack.c.bf16 %v5026_v31, %v5025_v47  ;;  %v4893_v40 = vadd.f32 %v7425_v62, %v7313_v50  ;;  %v7428_v51 = vadd.f32 %v7427_v17, %v7426_v26 }
 0x2aa   : > { %6586 = vst [vmem:[%s8504_s20 + $0x198] sm:$0xff] %v6474_v7   ;;  %v4995_v15 = vadd.f32 %v8873_v36, %v4893_v40  ;;  %v4896_v6 = vadd.f32 %v7428_v51, %v7316_v46 }
 0x2ab   : > { %v7317_v18 = vpop.f32.mrb[212].mxu0 }
 0x2ac   : > { %v4996_v55 = vadd.f32 %v8873_v36, %v4896_v6  ;;  %v7429_v27 = vpop.f32.mrb[212].mxu1  ;;  %v7318_v13 = vpop.f32.mrb[213].mxu0  ;;  %v5027_v16 = vmax.f32 %v4995_v15, 0.0 }
 0x2ad   : > { %v7430_v45 = vpop.f32.mrb[213].mxu1  ;;  %v7319_v3 = vadd.f32 %v7318_v13, %v7317_v18  ;;  %v7320_v11 = vpop.f32.mrb[214].mxu0 }
 0x2ae   : > { %v5028_v8 = vmax.f32 %v4996_v55, 0.0  ;;  %v7431_v2 = vadd.f32 %v7430_v45, %v7429_v27  ;;  %v7432_v63 = vpop.f32.mrb[214].mxu1  ;;  %v7321_v35 = vpop.f32.mrb[215].mxu0 }
 0x2af   : > { %v7433_v39 = vpop.f32.mrb[215].mxu1  ;;  %v7322_v12 = vadd.f32 %v7321_v35, %v7320_v11 }
 0x2b0   : > { %v6479_v57 = vpack.c.bf16 %v5028_v8, %v5027_v16  ;;  %v4901_v41 = vadd.f32 %v7431_v2, %v7319_v3  ;;  %v7434_v29 = vadd.f32 %v7433_v39, %v7432_v63 }
 0x2b2   : > { %6587 = vst [vmem:[%s8504_s20 + $0x1a0] sm:$0xff] %v6479_v57   ;;  %v4997_v34 = vadd.f32 %v8873_v36, %v4901_v41  ;;  %v4904_v54 = vadd.f32 %v7434_v29, %v7322_v12 }
 0x2b3   : > { %v7323_v52 = vpop.f32.mrb[216].mxu0 }
 0x2b4   : > { %v4998_v10 = vadd.f32 %v8873_v36, %v4904_v54  ;;  %v7435_v30 = vpop.f32.mrb[216].mxu1  ;;  %v7324_v4 = vpop.f32.mrb[217].mxu0  ;;  %v5029_v53 = vmax.f32 %v4997_v34, 0.0 }
 0x2b5   : > { %v7436_v28 = vpop.f32.mrb[217].mxu1  ;;  %v7325_v19 = vadd.f32 %v7324_v4, %v7323_v52  ;;  %v7326_v61 = vpop.f32.mrb[218].mxu0 }
 0x2b6   : > { %v5030_v59 = vmax.f32 %v4998_v10, 0.0  ;;  %v7437_v24 = vadd.f32 %v7436_v28, %v7435_v30  ;;  %v7438_v0 = vpop.f32.mrb[218].mxu1  ;;  %v7327_v56 = vpop.f32.mrb[219].mxu0 }
 0x2b7   : > { %v7439_v32 = vpop.f32.mrb[219].mxu1  ;;  %v7328_v38 = vadd.f32 %v7327_v56, %v7326_v61 }
 0x2b8   : > { %v6484_v23 = vpack.c.bf16 %v5030_v59, %v5029_v53  ;;  %v4909_v49 = vadd.f32 %v7437_v24, %v7325_v19  ;;  %v7440_v5 = vadd.f32 %v7439_v32, %v7438_v0 }
 0x2ba   : > { %6588 = vst [vmem:[%s8504_s20 + $0x1a8] sm:$0xff] %v6484_v23   ;;  %v4999_v44 = vadd.f32 %v8873_v36, %v4909_v49  ;;  %v4912_v25 = vadd.f32 %v7440_v5, %v7328_v38 }
 0x2bb   : > { %v7329_v43 = vpop.f32.mrb[220].mxu0 }
 0x2bc   : > { %v5000_v14 = vadd.f32 %v8873_v36, %v4912_v25  ;;  %v7441_v33 = vpop.f32.mrb[220].mxu1  ;;  %v7330_v42 = vpop.f32.mrb[221].mxu0  ;;  %v5031_v58 = vmax.f32 %v4999_v44, 0.0 }
 0x2bd   : > { %v7442_v20 = vpop.f32.mrb[221].mxu1  ;;  %v7331_v22 = vadd.f32 %v7330_v42, %v7329_v43  ;;  %v7332_v37 = vpop.f32.mrb[222].mxu0 }
 0x2be   : > { %v5032_v60 = vmax.f32 %v5000_v14, 0.0  ;;  %v7443_v21 = vadd.f32 %v7442_v20, %v7441_v33  ;;  %v7444_v1 = vpop.f32.mrb[222].mxu1  ;;  %v7333_v47 = vpop.f32.mrb[223].mxu0 }
 0x2bf   : > { %v7445_v31 = vpop.f32.mrb[223].mxu1  ;;  %v7334_v48 = vadd.f32 %v7333_v47, %v7332_v37 }
 0x2c0   : > { %v6489_v50 = vpack.c.bf16 %v5032_v60, %v5031_v58  ;;  %v4917_v62 = vadd.f32 %v7443_v21, %v7331_v22  ;;  %v7446_v26 = vadd.f32 %v7445_v31, %v7444_v1 }
 0x2c2   : > { %6589 = vst [vmem:[%s8504_s20 + $0x1b0] sm:$0xff] %v6489_v50   ;;  %v5001_v9 = vadd.f32 %v8873_v36, %v4917_v62  ;;  %v4920_v17 = vadd.f32 %v7446_v26, %v7334_v48 }
 0x2c3   : > { %v7335_v40 = vpop.f32.mrb[224].mxu0 }
 0x2c4   : > { %v5002_v7 = vadd.f32 %v8873_v36, %v4920_v17  ;;  %v7447_v46 = vpop.f32.mrb[224].mxu1  ;;  %v7336_v51 = vpop.f32.mrb[225].mxu0  ;;  %v5033_v6 = vmax.f32 %v5001_v9, 0.0 }
 0x2c5   : > { %v7448_v15 = vpop.f32.mrb[225].mxu1  ;;  %v7337_v18 = vadd.f32 %v7336_v51, %v7335_v40  ;;  %v7338_v13 = vpop.f32.mrb[226].mxu0 }
 0x2c6   : > { %v5034_v55 = vmax.f32 %v5002_v7, 0.0  ;;  %v7449_v27 = vadd.f32 %v7448_v15, %v7447_v46  ;;  %v7450_v45 = vpop.f32.mrb[226].mxu1  ;;  %v7339_v16 = vpop.f32.mrb[227].mxu0 }
 0x2c7   : > { %v7451_v8 = vpop.f32.mrb[227].mxu1  ;;  %v7340_v11 = vadd.f32 %v7339_v16, %v7338_v13 }
 0x2c8   : > { %v6494_v3 = vpack.c.bf16 %v5034_v55, %v5033_v6  ;;  %v4925_v2 = vadd.f32 %v7449_v27, %v7337_v18  ;;  %v7452_v63 = vadd.f32 %v7451_v8, %v7450_v45 }
 0x2ca   : > { %6590 = vst [vmem:[%s8504_s20 + $0x1b8] sm:$0xff] %v6494_v3   ;;  %v5003_v35 = vadd.f32 %v8873_v36, %v4925_v2  ;;  %v4928_v39 = vadd.f32 %v7452_v63, %v7340_v11 }
 0x2cb   : > { %v7341_v41 = vpop.f32.mrb[228].mxu0 }
 0x2cc   : > { %v5004_v57 = vadd.f32 %v8873_v36, %v4928_v39  ;;  %v7453_v12 = vpop.f32.mrb[228].mxu1  ;;  %v7342_v29 = vpop.f32.mrb[229].mxu0  ;;  %v5035_v54 = vmax.f32 %v5003_v35, 0.0 }
 0x2cd   : > { %v7454_v34 = vpop.f32.mrb[229].mxu1  ;;  %v7343_v52 = vadd.f32 %v7342_v29, %v7341_v41  ;;  %v7344_v4 = vpop.f32.mrb[230].mxu0 }
 0x2ce   : > { %v5036_v10 = vmax.f32 %v5004_v57, 0.0  ;;  %v7455_v30 = vadd.f32 %v7454_v34, %v7453_v12  ;;  %v7456_v28 = vpop.f32.mrb[230].mxu1  ;;  %v7345_v53 = vpop.f32.mrb[231].mxu0 }
 0x2cf   : > { %v7457_v59 = vpop.f32.mrb[231].mxu1  ;;  %v7346_v61 = vadd.f32 %v7345_v53, %v7344_v4 }
 0x2d0   : > { %v6499_v19 = vpack.c.bf16 %v5036_v10, %v5035_v54  ;;  %v4933_v24 = vadd.f32 %v7455_v30, %v7343_v52  ;;  %v7458_v0 = vadd.f32 %v7457_v59, %v7456_v28 }
 0x2d2   : > { %6591 = vst [vmem:[%s8504_s20 + $0x1c0] sm:$0xff] %v6499_v19   ;;  %v5005_v56 = vadd.f32 %v8873_v36, %v4933_v24  ;;  %v4936_v32 = vadd.f32 %v7458_v0, %v7346_v61 }
 0x2d3   : > { %v7347_v49 = vpop.f32.mrb[232].mxu0 }
 0x2d4   : > { %v5006_v23 = vadd.f32 %v8873_v36, %v4936_v32  ;;  %v7459_v38 = vpop.f32.mrb[232].mxu1  ;;  %v7348_v5 = vpop.f32.mrb[233].mxu0  ;;  %v5037_v25 = vmax.f32 %v5005_v56, 0.0 }
 0x2d5   : > { %v7460_v44 = vpop.f32.mrb[233].mxu1  ;;  %v7349_v43 = vadd.f32 %v7348_v5, %v7347_v49  ;;  %v7350_v42 = vpop.f32.mrb[234].mxu0 }
 0x2d6   : > { %v5038_v14 = vmax.f32 %v5006_v23, 0.0  ;;  %v7461_v33 = vadd.f32 %v7460_v44, %v7459_v38  ;;  %v7462_v20 = vpop.f32.mrb[234].mxu1  ;;  %v7351_v58 = vpop.f32.mrb[235].mxu0 }
 0x2d7   : > { %v7463_v60 = vpop.f32.mrb[235].mxu1  ;;  %v7352_v37 = vadd.f32 %v7351_v58, %v7350_v42 }
 0x2d8   : > { %v6504_v22 = vpack.c.bf16 %v5038_v14, %v5037_v25  ;;  %v4941_v21 = vadd.f32 %v7461_v33, %v7349_v43  ;;  %v7464_v1 = vadd.f32 %v7463_v60, %v7462_v20 }
 0x2da   : > { %6592 = vst [vmem:[%s8504_s20 + $0x1c8] sm:$0xff] %v6504_v22   ;;  %v5007_v47 = vadd.f32 %v8873_v36, %v4941_v21  ;;  %v4944_v31 = vadd.f32 %v7464_v1, %v7352_v37 }
 0x2db   : > { %v7353_v62 = vpop.f32.mrb[236].mxu0 }
 0x2dc   : > { %v5008_v50 = vadd.f32 %v8873_v36, %v4944_v31  ;;  %v7465_v48 = vpop.f32.mrb[236].mxu1  ;;  %v7354_v26 = vpop.f32.mrb[237].mxu0  ;;  %v5039_v17 = vmax.f32 %v5007_v47, 0.0 }
 0x2dd   : > { %v7466_v9 = vpop.f32.mrb[237].mxu1  ;;  %v7355_v40 = vadd.f32 %v7354_v26, %v7353_v62  ;;  %v7356_v51 = vpop.f32.mrb[238].mxu0 }
 0x2de   : > { %v5040_v7 = vmax.f32 %v5008_v50, 0.0  ;;  %v7467_v46 = vadd.f32 %v7466_v9, %v7465_v48  ;;  %v7468_v15 = vpop.f32.mrb[238].mxu1  ;;  %v7357_v6 = vpop.f32.mrb[239].mxu0 }
 0x2df   : > { %v7469_v55 = vpop.f32.mrb[239].mxu1  ;;  %v7358_v13 = vadd.f32 %v7357_v6, %v7356_v51 }
 0x2e0   : > { %v6509_v18 = vpack.c.bf16 %v5040_v7, %v5039_v17  ;;  %v4949_v27 = vadd.f32 %v7467_v46, %v7355_v40  ;;  %v7470_v45 = vadd.f32 %v7469_v55, %v7468_v15 }
 0x2e2   : > { %6593 = vst [vmem:[%s8504_s20 + $0x1d0] sm:$0xff] %v6509_v18   ;;  %v5009_v16 = vadd.f32 %v8873_v36, %v4949_v27  ;;  %v4952_v8 = vadd.f32 %v7470_v45, %v7358_v13 }
 0x2e3   : > { %v7359_v2 = vpop.f32.mrb[240].mxu0 }
 0x2e4   : > { %v5010_v3 = vadd.f32 %v8873_v36, %v4952_v8  ;;  %v7471_v11 = vpop.f32.mrb[240].mxu1  ;;  %v7360_v63 = vpop.f32.mrb[241].mxu0  ;;  %v5041_v39 = vmax.f32 %v5009_v16, 0.0 }
 0x2e5   : > { %v7472_v35 = vpop.f32.mrb[241].mxu1  ;;  %v7361_v41 = vadd.f32 %v7360_v63, %v7359_v2  ;;  %v7362_v29 = vpop.f32.mrb[242].mxu0 }
 0x2e6   : > { %v5042_v57 = vmax.f32 %v5010_v3, 0.0  ;;  %v7473_v12 = vadd.f32 %v7472_v35, %v7471_v11  ;;  %v7474_v34 = vpop.f32.mrb[242].mxu1  ;;  %v7363_v54 = vpop.f32.mrb[243].mxu0 }
 0x2e7   : > { %v7475_v10 = vpop.f32.mrb[243].mxu1  ;;  %v7364_v4 = vadd.f32 %v7363_v54, %v7362_v29 }
 0x2e8   : > { %v6514_v52 = vpack.c.bf16 %v5042_v57, %v5041_v39  ;;  %v4957_v30 = vadd.f32 %v7473_v12, %v7361_v41  ;;  %v7476_v28 = vadd.f32 %v7475_v10, %v7474_v34 }
 0x2ea   : > { %6594 = vst [vmem:[%s8504_s20 + $0x1d8] sm:$0xff] %v6514_v52   ;;  %v5011_v53 = vadd.f32 %v8873_v36, %v4957_v30  ;;  %v4960_v59 = vadd.f32 %v7476_v28, %v7364_v4 }
 0x2eb   : > { %v7365_v24 = vpop.f32.mrb[244].mxu0 }
 0x2ec   : > { %v5012_v19 = vadd.f32 %v8873_v36, %v4960_v59  ;;  %v7477_v61 = vpop.f32.mrb[244].mxu1  ;;  %v7366_v0 = vpop.f32.mrb[245].mxu0  ;;  %v5043_v32 = vmax.f32 %v5011_v53, 0.0 }
 0x2ed   : > { %v7478_v56 = vpop.f32.mrb[245].mxu1  ;;  %v7367_v49 = vadd.f32 %v7366_v0, %v7365_v24  ;;  %v7368_v5 = vpop.f32.mrb[246].mxu0 }
 0x2ee   : > { %v5044_v23 = vmax.f32 %v5012_v19, 0.0  ;;  %v7479_v38 = vadd.f32 %v7478_v56, %v7477_v61  ;;  %v7480_v44 = vpop.f32.mrb[246].mxu1  ;;  %v7369_v25 = vpop.f32.mrb[247].mxu0 }
 0x2ef   : > { %v7481_v14 = vpop.f32.mrb[247].mxu1  ;;  %v7370_v42 = vadd.f32 %v7369_v25, %v7368_v5 }
 0x2f0   : > { %v6519_v43 = vpack.c.bf16 %v5044_v23, %v5043_v32  ;;  %v4965_v33 = vadd.f32 %v7479_v38, %v7367_v49  ;;  %v7482_v20 = vadd.f32 %v7481_v14, %v7480_v44 }
 0x2f2   : > { %6595 = vst [vmem:[%s8504_s20 + $0x1e0] sm:$0xff] %v6519_v43   ;;  %v5013_v58 = vadd.f32 %v8873_v36, %v4965_v33  ;;  %v4968_v60 = vadd.f32 %v7482_v20, %v7370_v42 }
 0x2f3   : > { %v7371_v21 = vpop.f32.mrb[248].mxu0 }
 0x2f4   : > { %v5014_v22 = vadd.f32 %v8873_v36, %v4968_v60  ;;  %v7483_v37 = vpop.f32.mrb[248].mxu1  ;;  %v7372_v1 = vpop.f32.mrb[249].mxu0  ;;  %v5045_v31 = vmax.f32 %v5013_v58, 0.0 }
 0x2f5   : > { %v7484_v47 = vpop.f32.mrb[249].mxu1  ;;  %v7373_v62 = vadd.f32 %v7372_v1, %v7371_v21  ;;  %v7374_v26 = vpop.f32.mrb[250].mxu0 }
 0x2f6   : > { %v5046_v50 = vmax.f32 %v5014_v22, 0.0  ;;  %v7485_v48 = vadd.f32 %v7484_v47, %v7483_v37  ;;  %v7486_v9 = vpop.f32.mrb[250].mxu1  ;;  %v7375_v17 = vpop.f32.mrb[251].mxu0 }
 0x2f7   : > { %v7487_v7 = vpop.f32.mrb[251].mxu1  ;;  %v7376_v51 = vadd.f32 %v7375_v17, %v7374_v26 }
 0x2f8   : > { %v6524_v40 = vpack.c.bf16 %v5046_v50, %v5045_v31  ;;  %v4973_v46 = vadd.f32 %v7485_v48, %v7373_v62  ;;  %v7488_v15 = vadd.f32 %v7487_v7, %v7486_v9 }
 0x2fa   : > { %6596 = vst [vmem:[%s8504_s20 + $0x1e8] sm:$0xff] %v6524_v40   ;;  %v5015_v6 = vadd.f32 %v8873_v36, %v4973_v46  ;;  %v4976_v55 = vadd.f32 %v7488_v15, %v7376_v51 }
 0x2fb   : > { %v7377_v27 = vpop.f32.mrb[252].mxu0 }
 0x2fc   : > { %v5016_v18 = vadd.f32 %v8873_v36, %v4976_v55  ;;  %v7489_v13 = vpop.f32.mrb[252].mxu1  ;;  %v7378_v45 = vpop.f32.mrb[253].mxu0  ;;  %v5047_v8 = vmax.f32 %v5015_v6, 0.0 }
 0x2fd   : > { %v7490_v16 = vpop.f32.mrb[253].mxu1  ;;  %v7379_v2 = vadd.f32 %v7378_v45, %v7377_v27  ;;  %v7380_v63 = vpop.f32.mrb[254].mxu0 }
 0x2fe   : > { %v5048_v3 = vmax.f32 %v5016_v18, 0.0  ;;  %v7491_v11 = vadd.f32 %v7490_v16, %v7489_v13  ;;  %v7492_v35 = vpop.f32.mrb[254].mxu1  ;;  %v7381_v39 = vpop.f32.mrb[255].mxu0 }
 0x2ff   : > { %v7493_v57 = vpop.f32.mrb[255].mxu1  ;;  %v7382_v29 = vadd.f32 %v7381_v39, %v7380_v63 }
 0x300   : > { %v6529_v41 = vpack.c.bf16 %v5048_v3, %v5047_v8  ;;  %v4981_v12 = vadd.f32 %v7491_v11, %v7379_v2  ;;  %v7494_v34 = vadd.f32 %v7493_v57, %v7492_v35 }
 0x302   : > { %6597 = vst [vmem:[%s8504_s20 + $0x1f0] sm:$0xff] %v6529_v41   ;;  %v5017_v54 = vadd.f32 %v8873_v36, %v4981_v12  ;;  %v4984_v10 = vadd.f32 %v7494_v34, %v7382_v29 }
 0x304   : > { %v5018_v52 = vadd.f32 %v8873_v36, %v4984_v10  ;;  %v5049_v30 = vmax.f32 %v5017_v54, 0.0 }
 0x306   : > { %v5050_v4 = vmax.f32 %v5018_v52, 0.0 }
 0x308   : > { %v6534_v28 = vpack.c.bf16 %v5050_v4, %v5049_v30 }
 0x30a   : > { %6598 = vst [vmem:[%s8504_s20 + $0x1f8] sm:$0xff] %v6534_v28  }
 0x30b PF: > { %s14_s17 = sadd.s32 1, %s7816_s17   ;;  %s9011_s15 = smov %s7812_s16 }
 0x30c   : > { %p11_p5 = scmp.ge.s32.totalorder %s14_s17, 4   ;;  %s9012_s16 = smov %s9014_s18 }
 0x30e   :  { %13 = sbr.rel (!%p11_p5) target bundleno = 2 (0x2), region = 97 }

</bundles_post_ra>
